<compile_context>
chip_gen: v5e
topology: v5e:2x2
jax: 0.10.0
libtpu: 0.0.40
codegen_flags: <defaults>
</compile_context>

<pallas_src>
import functools

import jax
import jax.numpy as jnp
from jax.experimental import pallas as pl
from jax.experimental.pallas import tpu as pltpu


def wpinn_kernel(xy_ref,
                 w1i_ref, b1i_ref, w1h_ref, b1h_ref, w1o_ref, b1o_ref,
                 w2i_ref, b2i_ref, w2h_ref, b2h_ref, w2o_ref, b2o_ref,
                 out_ref):
    _, TB, S = xy_ref.shape
    H1 = w1i_ref.shape[1]
    L1 = w1h_ref.shape[0]
    L2 = w2h_ref.shape[0]

    x = xy_ref[0]                        # (TB, S)
    y = xy_ref[1]                        # (TB, S)

    # ---- first stage: per-point MLP on stack([x, y], -1) -> scalar feature --
    # Linear(2, H1): contraction dim is only 2, cheaper as broadcast-multiply
    # on the VPU than a degenerate K=2 matmul.
    wx = w1i_ref[0:1, :]                 # (1, H1)
    wy = w1i_ref[1:2, :]                 # (1, H1)
    h = jnp.tanh(x[:, :, None] * wx[None, :, :]
                 + y[:, :, None] * wy[None, :, :]
                 + b1i_ref[...][None, :, :])          # (TB, S, H1)

    # Hidden layers on the MXU: flatten points to rows, H1 on lanes.
    h = h.reshape(TB * S, H1)
    for l in range(L1):
        h = jnp.tanh(jnp.dot(h, w1h_ref[l],
                             preferred_element_type=jnp.float32)
                     + b1h_ref[l])                    # (TB*S, H1)

    # Final Linear(H1, 1) + squeeze(-1): lane reduction, then re-tile points
    # as (TB, S).  The reshape is a sublane->lane relayout; it is inherent to
    # the model structure (S is the row axis of stage 1 and the contraction
    # axis of stage 2) and costs only O(TB*S) XLU work.
    pf = jnp.sum(h * w1o_ref[...], axis=-1, keepdims=True) + b1o_ref[...]
    pf = pf.reshape(TB, S)                            # (TB, S)

    # ---- second stage: fused (u, v, p) heads via block-diagonal matmuls ----
    h2 = jnp.tanh(jnp.dot(pf, w2i_ref[...],
                          preferred_element_type=jnp.float32)
                  + b2i_ref[...])                     # (TB, 3*H2)
    for l in range(L2):
        h2 = jnp.tanh(jnp.dot(h2, w2h_ref[l],
                              preferred_element_type=jnp.float32)
                      + b2h_ref[l])                   # (TB, 3*H2)
    # Single lane-dense store of all three heads.
    out_ref[...] = (jnp.dot(h2, w2o_ref[...],
                            preferred_element_type=jnp.float32)
                    + b2o_ref[...])                   # (TB, 3*F)


def _xavier_uniform(key, shape, fan_in, fan_out):
    bound = (6.0 / (fan_in + fan_out)) ** 0.5
    return jax.random.uniform(key, shape, jnp.float32, -bound, bound)


def init_wpinn_params(key, input_size, family_size,
                      num_hidden_layers1, num_hidden_layers2,
                      hidden_neurons1, hidden_neurons2):
    """Xavier-uniform weights, zero biases (matches the PyTorch module init)."""
    H1, H2 = hidden_neurons1, hidden_neurons2
    L1, L2 = num_hidden_layers1, num_hidden_layers2
    S, F = input_size, family_size
    keys = jax.random.split(key, 6)
    params = {
        # first stage (stored as x @ W convention, i.e. torch weight transposed)
        "w1_in":  _xavier_uniform(keys[0], (2, H1), 2, H1),
        "b1_in":  jnp.zeros((1, H1), jnp.float32),
        "w1_hid": _xavier_uniform(keys[1], (L1, H1, H1), H1, H1),
        "b1_hid": jnp.zeros((L1, 1, H1), jnp.float32),
        "w1_out": _xavier_uniform(keys[2], (1, H1), H1, 1),  # row vector
        "b1_out": jnp.zeros((1, 1), jnp.float32),
        # second stage: heads stacked along axis 0 as (u, v, p)
        "w2_in":  _xavier_uniform(keys[3], (3, S, H2), S, H2),
        "b2_in":  jnp.zeros((3, 1, H2), jnp.float32),
        "w2_hid": _xavier_uniform(keys[4], (3, L2, H2, H2), H2, H2),
        "b2_hid": jnp.zeros((3, L2, 1, H2), jnp.float32),
        "w2_out": _xavier_uniform(keys[5], (3, H2, F), H2, F),
        "b2_out": jnp.zeros((3, 1, F), jnp.float32),
        # scalar nn.Parameters
        "bias_u": jnp.float32(0.5),
        "bias_v": jnp.float32(0.5),
        "bias_p": jnp.float32(0.5),
    }
    return params


def pack_wpinn_params(params):
    """Fuse the three second-stage heads into block-diagonal wide matrices.

    Done once (outside the hot path); mathematically identical to running the
    three heads separately.
    """
    L2, H2 = params["w2_hid"].shape[1], params["w2_hid"].shape[-1]
    F = params["w2_out"].shape[-1]

    w2_in_f = jnp.concatenate([params["w2_in"][k] for k in range(3)], axis=-1)
    b2_in_f = jnp.concatenate([params["b2_in"][k] for k in range(3)], axis=-1)

    w2_hid_f = jnp.zeros((L2, 3 * H2, 3 * H2), jnp.float32)
    for k in range(3):
        w2_hid_f = w2_hid_f.at[:, k * H2:(k + 1) * H2,
                               k * H2:(k + 1) * H2].set(params["w2_hid"][k])
    b2_hid_f = jnp.concatenate([params["b2_hid"][k] for k in range(3)], axis=-1)

    w2_out_f = jnp.zeros((3 * H2, 3 * F), jnp.float32)
    for k in range(3):
        w2_out_f = w2_out_f.at[k * H2:(k + 1) * H2,
                               k * F:(k + 1) * F].set(params["w2_out"][k])
    b2_out_f = jnp.concatenate([params["b2_out"][k] for k in range(3)], axis=-1)

    return {
        "w1_in": params["w1_in"], "b1_in": params["b1_in"],
        "w1_hid": params["w1_hid"], "b1_hid": params["b1_hid"],
        "w1_out": params["w1_out"], "b1_out": params["b1_out"],
        "w2_in_f": w2_in_f, "b2_in_f": b2_in_f,
        "w2_hid_f": w2_hid_f, "b2_hid_f": b2_hid_f,
        "w2_out_f": w2_out_f, "b2_out_f": b2_out_f,
        "bias_u": params["bias_u"],
        "bias_v": params["bias_v"],
        "bias_p": params["bias_p"],
    }


def wpinn_forward(packed, x, y, *, block_rows=512):
    """Forward pass.  block_rows is the per-grid-step batch tile (8-aligned)."""
    B, S = x.shape
    F3 = packed["w2_out_f"].shape[-1]         # 3 * family_size
    F = F3 // 3

    if B <= block_rows:
        TB, Bp = B, B                          # single block == full batch
    else:
        TB = max(8, (block_rows // 8) * 8)     # sublane-aligned tile
        Bp = pl.cdiv(B, TB) * TB

    xy = jnp.stack([x, y], axis=0)             # (2, B, S) -> one input DMA
    if Bp != B:
        xy = jnp.pad(xy, ((0, 0), (0, Bp - B), (0, 0)))

    weight_args = (packed["w1_in"], packed["b1_in"],
                   packed["w1_hid"], packed["b1_hid"],
                   packed["w1_out"], packed["b1_out"],
                   packed["w2_in_f"], packed["b2_in_f"],
                   packed["w2_hid_f"], packed["b2_hid_f"],
                   packed["w2_out_f"], packed["b2_out_f"])

    out = pl.pallas_call(
        wpinn_kernel,
        out_shape=jax.ShapeDtypeStruct((Bp, F3), jnp.float32),
        grid=(Bp // TB,),
        in_specs=[pl.BlockSpec((2, TB, S), lambda i: (0, i, 0))]
                 + [pl.BlockSpec(memory_space=pltpu.MemorySpace.VMEM)]
                 * len(weight_args),
        out_specs=pl.BlockSpec((TB, F3), lambda i: (i, 0)),
        compiler_params=pltpu.CompilerParams(
            dimension_semantics=("parallel",)),   # shards batch across TCs (v7x)
    )(xy, *weight_args)

    out = out[:B]
    coeff_u = out[:, 0 * F:1 * F]
    coeff_v = out[:, 1 * F:2 * F]
    coeff_p = out[:, 2 * F:3 * F]
    return ((coeff_u, coeff_v, coeff_p),
            (packed["bias_u"], packed["bias_v"], packed["bias_p"]))


def wpinn_reference(params, x, y):
    """Pure-JAX mirror of the PyTorch forward (unfused heads), for checking."""
    L1 = params["w1_hid"].shape[0]
    L2 = params["w2_hid"].shape[1]
    inputs = jnp.stack([x, y], axis=-1)                       # (B, S, 2)
    h = jnp.tanh(inputs @ params["w1_in"] + params["b1_in"])  # (B, S, H1)
    for l in range(L1):
        h = jnp.tanh(h @ params["w1_hid"][l] + params["b1_hid"][l])
    pf = (h @ params["w1_out"].T + params["b1_out"])[..., 0]  # (B, S)
    coeffs = []
    for k in range(3):
        h2 = jnp.tanh(pf @ params["w2_in"][k] + params["b2_in"][k])
        for l in range(L2):
            h2 = jnp.tanh(h2 @ params["w2_hid"][k, l] + params["b2_hid"][k, l])
        coeffs.append(h2 @ params["w2_out"][k] + params["b2_out"][k])
    return tuple(coeffs)


if __name__ == "__main__":
    # Small, module-consistent shapes.  B is large enough (B*S ~ 1K points)
    # to exercise the MXU and the batch-tiled grid path (grid of 2, with a
    # padded final tile).
    B = 60
    input_size = 16
    family_size = 8
    num_hidden_layers1 = 2
    num_hidden_layers2 = 2
    hidden_neurons1 = 32
    hidden_neurons2 = 32

    key = jax.random.PRNGKey(0)
    kp, kx, ky = jax.random.split(key, 3)
    params = init_wpinn_params(kp, input_size, family_size,
                               num_hidden_layers1, num_hidden_layers2,
                               hidden_neurons1, hidden_neurons2)
    packed = pack_wpinn_params(params)
    x = jax.random.uniform(kx, (B, input_size), jnp.float32)
    y = jax.random.uniform(ky, (B, input_size), jnp.float32)

    forward = jax.jit(functools.partial(wpinn_forward, block_rows=32))
    (coeff_u, coeff_v, coeff_p), (bias_u, bias_v, bias_p) = forward(
        packed, x, y)
    jax.block_until_ready((coeff_u, coeff_v, coeff_p))

    ref_u, ref_v, ref_p = wpinn_reference(params, x, y)
    assert coeff_u.shape == (B, family_size)
    assert coeff_v.shape == (B, family_size)
    assert coeff_p.shape == (B, family_size)
    assert jnp.allclose(coeff_u, ref_u, rtol=1e-3, atol=1e-3)
    assert jnp.allclose(coeff_v, ref_v, rtol=1e-3, atol=1e-3)
    assert jnp.allclose(coeff_p, ref_p, rtol=1e-3, atol=1e-3)
    assert float(bias_u) == 0.5 and float(bias_v) == 0.5 and float(bias_p) == 0.5

    print("KERNEL_OK")
</pallas_src>

<mosaic_0001>
module attributes {stable_mosaic.version = 11 : i64} {
  func.func @wpinn_kernel(%arg0: i32, %arg1: memref<2x32x16xf32, #tpu.memory_space<vmem>>, %arg2: memref<2x32xf32, #tpu.memory_space<vmem>>, %arg3: memref<1x32xf32, #tpu.memory_space<vmem>>, %arg4: memref<2x32x32xf32, #tpu.memory_space<vmem>>, %arg5: memref<2x1x32xf32, #tpu.memory_space<vmem>>, %arg6: memref<1x32xf32, #tpu.memory_space<vmem>>, %arg7: memref<1x1xf32, #tpu.memory_space<vmem>>, %arg8: memref<16x96xf32, #tpu.memory_space<vmem>>, %arg9: memref<1x96xf32, #tpu.memory_space<vmem>>, %arg10: memref<2x96x96xf32, #tpu.memory_space<vmem>>, %arg11: memref<2x1x96xf32, #tpu.memory_space<vmem>>, %arg12: memref<96x24xf32, #tpu.memory_space<vmem>>, %arg13: memref<1x24xf32, #tpu.memory_space<vmem>>, %arg14: memref<32x24xf32, #tpu.memory_space<vmem>>) attributes {dimension_semantics = [#tpu.dimension_semantics<parallel>], iteration_bounds = array<i64: 2>, scalar_prefetch = 0 : i64, scratch_operands = 0 : i64, tpu.core_type = #tpu.core_type<tc>, window_params = [{transform_indices = @transform_0, window_bounds = array<i64: 2, 32, 16>}, {pipeline_mode = #tpu.pipeline_mode<synchronous>, transform_indices = @transform_1, window_bounds = array<i64: 2, 32>}, {pipeline_mode = #tpu.pipeline_mode<synchronous>, transform_indices = @transform_2, window_bounds = array<i64: 1, 32>}, {pipeline_mode = #tpu.pipeline_mode<synchronous>, transform_indices = @transform_3, window_bounds = array<i64: 2, 32, 32>}, {pipeline_mode = #tpu.pipeline_mode<synchronous>, transform_indices = @transform_4, window_bounds = array<i64: 2, 1, 32>}, {pipeline_mode = #tpu.pipeline_mode<synchronous>, transform_indices = @transform_5, window_bounds = array<i64: 1, 32>}, {pipeline_mode = #tpu.pipeline_mode<synchronous>, transform_indices = @transform_6, window_bounds = array<i64: 1, 1>}, {pipeline_mode = #tpu.pipeline_mode<synchronous>, transform_indices = @transform_7, window_bounds = array<i64: 16, 96>}, {pipeline_mode = #tpu.pipeline_mode<synchronous>, transform_indices = @transform_8, window_bounds = array<i64: 1, 96>}, {pipeline_mode = #tpu.pipeline_mode<synchronous>, transform_indices = @transform_9, window_bounds = array<i64: 2, 96, 96>}, {pipeline_mode = #tpu.pipeline_mode<synchronous>, transform_indices = @transform_10, window_bounds = array<i64: 2, 1, 96>}, {pipeline_mode = #tpu.pipeline_mode<synchronous>, transform_indices = @transform_11, window_bounds = array<i64: 96, 24>}, {pipeline_mode = #tpu.pipeline_mode<synchronous>, transform_indices = @transform_12, window_bounds = array<i64: 1, 24>}, {transform_indices = @transform_13, window_bounds = array<i64: 32, 24>}]} {
    %c0 = arith.constant 0 : index
    %c0_0 = arith.constant 0 : index
    %c0_1 = arith.constant 0 : index
    %0 = vector.load %arg1[%c0, %c0_0, %c0_1] : memref<2x32x16xf32, #tpu.memory_space<vmem>>, vector<1x32x16xf32>
    %1 = vector.shape_cast %0 : vector<1x32x16xf32> to vector<32x16xf32>
    %c1 = arith.constant 1 : index
    %c0_2 = arith.constant 0 : index
    %c0_3 = arith.constant 0 : index
    %2 = vector.load %arg1[%c1, %c0_2, %c0_3] : memref<2x32x16xf32, #tpu.memory_space<vmem>>, vector<1x32x16xf32>
    %3 = vector.shape_cast %2 : vector<1x32x16xf32> to vector<32x16xf32>
    %c0_4 = arith.constant 0 : index
    %c0_5 = arith.constant 0 : index
    %4 = vector.load %arg2[%c0_4, %c0_5] : memref<2x32xf32, #tpu.memory_space<vmem>>, vector<1x32xf32>
    %c1_6 = arith.constant 1 : index
    %c0_7 = arith.constant 0 : index
    %5 = vector.load %arg2[%c1_6, %c0_7] : memref<2x32xf32, #tpu.memory_space<vmem>>, vector<1x32xf32>
    %6 = vector.shape_cast %1 : vector<32x16xf32> to vector<32x16x1xf32>
    %7 = vector.shape_cast %4 : vector<1x32xf32> to vector<1x1x32xf32>
    %8 = vector.broadcast %6 : vector<32x16x1xf32> to vector<32x16x32xf32>
    %9 = vector.broadcast %7 : vector<1x1x32xf32> to vector<32x16x32xf32>
    %10 = arith.mulf %8, %9 : vector<32x16x32xf32>
    %11 = vector.shape_cast %3 : vector<32x16xf32> to vector<32x16x1xf32>
    %12 = vector.shape_cast %5 : vector<1x32xf32> to vector<1x1x32xf32>
    %13 = vector.broadcast %11 : vector<32x16x1xf32> to vector<32x16x32xf32>
    %14 = vector.broadcast %12 : vector<1x1x32xf32> to vector<32x16x32xf32>
    %15 = arith.mulf %13, %14 : vector<32x16x32xf32>
    %16 = arith.addf %10, %15 : vector<32x16x32xf32>
    %c0_8 = arith.constant 0 : index
    %c0_9 = arith.constant 0 : index
    %17 = vector.load %arg3[%c0_8, %c0_9] : memref<1x32xf32, #tpu.memory_space<vmem>>, vector<1x32xf32>
    %18 = vector.shape_cast %17 : vector<1x32xf32> to vector<1x1x32xf32>
    %19 = vector.broadcast %18 : vector<1x1x32xf32> to vector<32x16x32xf32>
    %20 = arith.addf %16, %19 : vector<32x16x32xf32>
    %21 = math.tanh %20 : vector<32x16x32xf32>
    %22 = vector.shape_cast %21 : vector<32x16x32xf32> to vector<512x32xf32>
    %c0_10 = arith.constant 0 : index
    %c0_11 = arith.constant 0 : index
    %c0_12 = arith.constant 0 : index
    %23 = vector.load %arg4[%c0_10, %c0_11, %c0_12] : memref<2x32x32xf32, #tpu.memory_space<vmem>>, vector<1x32x32xf32>
    %24 = vector.shape_cast %23 : vector<1x32x32xf32> to vector<32x32xf32>
    %cst = arith.constant dense<0.000000e+00> : vector<512x32xf32>
    %25 = tpu.matmul %22, %24, %cst {dimension_numbers = #tpu.dot_dimension_numbers<[1], [0], [0], [1], [0, 0, 1, 1], [], []>} : vector<512x32xf32>, vector<32x32xf32>, vector<512x32xf32> -> vector<512x32xf32>
    %c0_13 = arith.constant 0 : index
    %c0_14 = arith.constant 0 : index
    %c0_15 = arith.constant 0 : index
    %26 = vector.load %arg5[%c0_13, %c0_14, %c0_15] : memref<2x1x32xf32, #tpu.memory_space<vmem>>, vector<1x1x32xf32>
    %27 = vector.shape_cast %26 : vector<1x1x32xf32> to vector<1x32xf32>
    %28 = vector.broadcast %27 : vector<1x32xf32> to vector<512x32xf32>
    %29 = arith.addf %25, %28 : vector<512x32xf32>
    %30 = math.tanh %29 : vector<512x32xf32>
    %c1_16 = arith.constant 1 : index
    %c0_17 = arith.constant 0 : index
    %c0_18 = arith.constant 0 : index
    %31 = vector.load %arg4[%c1_16, %c0_17, %c0_18] : memref<2x32x32xf32, #tpu.memory_space<vmem>>, vector<1x32x32xf32>
    %32 = vector.shape_cast %31 : vector<1x32x32xf32> to vector<32x32xf32>
    %cst_19 = arith.constant dense<0.000000e+00> : vector<512x32xf32>
    %33 = tpu.matmul %30, %32, %cst_19 {dimension_numbers = #tpu.dot_dimension_numbers<[1], [0], [0], [1], [0, 0, 1, 1], [], []>} : vector<512x32xf32>, vector<32x32xf32>, vector<512x32xf32> -> vector<512x32xf32>
    %c1_20 = arith.constant 1 : index
    %c0_21 = arith.constant 0 : index
    %c0_22 = arith.constant 0 : index
    %34 = vector.load %arg5[%c1_20, %c0_21, %c0_22] : memref<2x1x32xf32, #tpu.memory_space<vmem>>, vector<1x1x32xf32>
    %35 = vector.shape_cast %34 : vector<1x1x32xf32> to vector<1x32xf32>
    %36 = vector.broadcast %35 : vector<1x32xf32> to vector<512x32xf32>
    %37 = arith.addf %33, %36 : vector<512x32xf32>
    %38 = math.tanh %37 : vector<512x32xf32>
    %c0_23 = arith.constant 0 : index
    %c0_24 = arith.constant 0 : index
    %39 = vector.load %arg6[%c0_23, %c0_24] : memref<1x32xf32, #tpu.memory_space<vmem>>, vector<1x32xf32>
    %40 = vector.broadcast %39 : vector<1x32xf32> to vector<512x32xf32>
    %41 = arith.mulf %38, %40 : vector<512x32xf32>
    %cst_25 = arith.constant dense<0.000000e+00> : vector<512xf32>
    %42 = vector.multi_reduction <add>, %41, %cst_25 [1] : vector<512x32xf32> to vector<512xf32>
    %43 = vector.shape_cast %42 : vector<512xf32> to vector<512x1xf32>
    %c0_26 = arith.constant 0 : index
    %c0_27 = arith.constant 0 : index
    %44 = vector.load %arg7[%c0_26, %c0_27] : memref<1x1xf32, #tpu.memory_space<vmem>>, vector<1x1xf32>
    %45 = vector.broadcast %44 : vector<1x1xf32> to vector<512x1xf32>
    %46 = arith.addf %43, %45 : vector<512x1xf32>
    %47 = vector.shape_cast %46 : vector<512x1xf32> to vector<32x16xf32>
    %c0_28 = arith.constant 0 : index
    %c0_29 = arith.constant 0 : index
    %48 = vector.load %arg8[%c0_28, %c0_29] : memref<16x96xf32, #tpu.memory_space<vmem>>, vector<16x96xf32>
    %cst_30 = arith.constant dense<0.000000e+00> : vector<32x96xf32>
    %49 = tpu.matmul %47, %48, %cst_30 {dimension_numbers = #tpu.dot_dimension_numbers<[1], [0], [0], [1], [0, 0, 1, 1], [], []>} : vector<32x16xf32>, vector<16x96xf32>, vector<32x96xf32> -> vector<32x96xf32>
    %c0_31 = arith.constant 0 : index
    %c0_32 = arith.constant 0 : index
    %50 = vector.load %arg9[%c0_31, %c0_32] : memref<1x96xf32, #tpu.memory_space<vmem>>, vector<1x96xf32>
    %51 = vector.broadcast %50 : vector<1x96xf32> to vector<32x96xf32>
    %52 = arith.addf %49, %51 : vector<32x96xf32>
    %53 = math.tanh %52 : vector<32x96xf32>
    %c0_33 = arith.constant 0 : index
    %c0_34 = arith.constant 0 : index
    %c0_35 = arith.constant 0 : index
    %54 = vector.load %arg10[%c0_33, %c0_34, %c0_35] : memref<2x96x96xf32, #tpu.memory_space<vmem>>, vector<1x96x96xf32>
    %55 = vector.shape_cast %54 : vector<1x96x96xf32> to vector<96x96xf32>
    %cst_36 = arith.constant dense<0.000000e+00> : vector<32x96xf32>
    %56 = tpu.matmul %53, %55, %cst_36 {dimension_numbers = #tpu.dot_dimension_numbers<[1], [0], [0], [1], [0, 0, 1, 1], [], []>} : vector<32x96xf32>, vector<96x96xf32>, vector<32x96xf32> -> vector<32x96xf32>
    %c0_37 = arith.constant 0 : index
    %c0_38 = arith.constant 0 : index
    %c0_39 = arith.constant 0 : index
    %57 = vector.load %arg11[%c0_37, %c0_38, %c0_39] : memref<2x1x96xf32, #tpu.memory_space<vmem>>, vector<1x1x96xf32>
    %58 = vector.shape_cast %57 : vector<1x1x96xf32> to vector<1x96xf32>
    %59 = vector.broadcast %58 : vector<1x96xf32> to vector<32x96xf32>
    %60 = arith.addf %56, %59 : vector<32x96xf32>
    %61 = math.tanh %60 : vector<32x96xf32>
    %c1_40 = arith.constant 1 : index
    %c0_41 = arith.constant 0 : index
    %c0_42 = arith.constant 0 : index
    %62 = vector.load %arg10[%c1_40, %c0_41, %c0_42] : memref<2x96x96xf32, #tpu.memory_space<vmem>>, vector<1x96x96xf32>
    %63 = vector.shape_cast %62 : vector<1x96x96xf32> to vector<96x96xf32>
    %cst_43 = arith.constant dense<0.000000e+00> : vector<32x96xf32>
    %64 = tpu.matmul %61, %63, %cst_43 {dimension_numbers = #tpu.dot_dimension_numbers<[1], [0], [0], [1], [0, 0, 1, 1], [], []>} : vector<32x96xf32>, vector<96x96xf32>, vector<32x96xf32> -> vector<32x96xf32>
    %c1_44 = arith.constant 1 : index
    %c0_45 = arith.constant 0 : index
    %c0_46 = arith.constant 0 : index
    %65 = vector.load %arg11[%c1_44, %c0_45, %c0_46] : memref<2x1x96xf32, #tpu.memory_space<vmem>>, vector<1x1x96xf32>
    %66 = vector.shape_cast %65 : vector<1x1x96xf32> to vector<1x96xf32>
    %67 = vector.broadcast %66 : vector<1x96xf32> to vector<32x96xf32>
    %68 = arith.addf %64, %67 : vector<32x96xf32>
    %69 = math.tanh %68 : vector<32x96xf32>
    %c0_47 = arith.constant 0 : index
    %c0_48 = arith.constant 0 : index
    %70 = vector.load %arg12[%c0_47, %c0_48] : memref<96x24xf32, #tpu.memory_space<vmem>>, vector<96x24xf32>
    %cst_49 = arith.constant dense<0.000000e+00> : vector<32x24xf32>
    %71 = tpu.matmul %69, %70, %cst_49 {dimension_numbers = #tpu.dot_dimension_numbers<[1], [0], [0], [1], [0, 0, 1, 1], [], []>} : vector<32x96xf32>, vector<96x24xf32>, vector<32x24xf32> -> vector<32x24xf32>
    %c0_50 = arith.constant 0 : index
    %c0_51 = arith.constant 0 : index
    %72 = vector.load %arg13[%c0_50, %c0_51] : memref<1x24xf32, #tpu.memory_space<vmem>>, vector<1x24xf32>
    %73 = vector.broadcast %72 : vector<1x24xf32> to vector<32x24xf32>
    %74 = arith.addf %71, %73 : vector<32x24xf32>
    %c0_52 = arith.constant 0 : index
    %c0_53 = arith.constant 0 : index
    %75 = vector.load %arg14[%c0_52, %c0_53] : memref<32x24xf32, #tpu.memory_space<vmem>>, vector<32x24xf32>
    tpu.vector_store %arg14[%c0_52, %c0_53], %74 {strides = array<i32>} : memref<32x24xf32, #tpu.memory_space<vmem>>, vector<32x24xf32>,
    return
  }
  func.func @transform_0(%arg0: i32) -> (i32, i32, i32) {
    %c0_i32 = arith.constant 0 : i32
    %c0_i32_0 = arith.constant 0 : i32
    %c0_i32_1 = arith.constant 0 : i32
    return %c0_i32, %arg0, %c0_i32_0 : i32, i32, i32
  }
  func.func @transform_1(%arg0: i32) -> (i32, i32) {
    %c0_i32 = arith.constant 0 : i32
    %c0_i32_0 = arith.constant 0 : i32
    %c0_i32_1 = arith.constant 0 : i32
    return %c0_i32, %c0_i32_0 : i32, i32
  }
  func.func @transform_2(%arg0: i32) -> (i32, i32) {
    %c0_i32 = arith.constant 0 : i32
    %c0_i32_0 = arith.constant 0 : i32
    %c0_i32_1 = arith.constant 0 : i32
    return %c0_i32, %c0_i32_0 : i32, i32
  }
  func.func @transform_3(%arg0: i32) -> (i32, i32, i32) {
    %c0_i32 = arith.constant 0 : i32
    %c0_i32_0 = arith.constant 0 : i32
    %c0_i32_1 = arith.constant 0 : i32
    %c0_i32_2 = arith.constant 0 : i32
    return %c0_i32, %c0_i32_0, %c0_i32_1 : i32, i32, i32
  }
  func.func @transform_4(%arg0: i32) -> (i32, i32, i32) {
    %c0_i32 = arith.constant 0 : i32
    %c0_i32_0 = arith.constant 0 : i32
    %c0_i32_1 = arith.constant 0 : i32
    %c0_i32_2 = arith.constant 0 : i32
    return %c0_i32, %c0_i32_0, %c0_i32_1 : i32, i32, i32
  }
  func.func @transform_5(%arg0: i32) -> (i32, i32) {
    %c0_i32 = arith.constant 0 : i32
    %c0_i32_0 = arith.constant 0 : i32
    %c0_i32_1 = arith.constant 0 : i32
    return %c0_i32, %c0_i32_0 : i32, i32
  }
  func.func @transform_6(%arg0: i32) -> (i32, i32) {
    %c0_i32 = arith.constant 0 : i32
    %c0_i32_0 = arith.constant 0 : i32
    %c0_i32_1 = arith.constant 0 : i32
    return %c0_i32, %c0_i32_0 : i32, i32
  }
  func.func @transform_7(%arg0: i32) -> (i32, i32) {
    %c0_i32 = arith.constant 0 : i32
    %c0_i32_0 = arith.constant 0 : i32
    %c0_i32_1 = arith.constant 0 : i32
    return %c0_i32, %c0_i32_0 : i32, i32
  }
  func.func @transform_8(%arg0: i32) -> (i32, i32) {
    %c0_i32 = arith.constant 0 : i32
    %c0_i32_0 = arith.constant 0 : i32
    %c0_i32_1 = arith.constant 0 : i32
    return %c0_i32, %c0_i32_0 : i32, i32
  }
  func.func @transform_9(%arg0: i32) -> (i32, i32, i32) {
    %c0_i32 = arith.constant 0 : i32
    %c0_i32_0 = arith.constant 0 : i32
    %c0_i32_1 = arith.constant 0 : i32
    %c0_i32_2 = arith.constant 0 : i32
    return %c0_i32, %c0_i32_0, %c0_i32_1 : i32, i32, i32
  }
  func.func @transform_10(%arg0: i32) -> (i32, i32, i32) {
    %c0_i32 = arith.constant 0 : i32
    %c0_i32_0 = arith.constant 0 : i32
    %c0_i32_1 = arith.constant 0 : i32
    %c0_i32_2 = arith.constant 0 : i32
    return %c0_i32, %c0_i32_0, %c0_i32_1 : i32, i32, i32
  }
  func.func @transform_11(%arg0: i32) -> (i32, i32) {
    %c0_i32 = arith.constant 0 : i32
    %c0_i32_0 = arith.constant 0 : i32
    %c0_i32_1 = arith.constant 0 : i32
    return %c0_i32, %c0_i32_0 : i32, i32
  }
  func.func @transform_12(%arg0: i32) -> (i32, i32) {
    %c0_i32 = arith.constant 0 : i32
    %c0_i32_0 = arith.constant 0 : i32
    %c0_i32_1 = arith.constant 0 : i32
    return %c0_i32, %c0_i32_0 : i32, i32
  }
  func.func @transform_13(%arg0: i32) -> (i32, i32) {
    %c0_i32 = arith.constant 0 : i32
    %c0_i32_0 = arith.constant 0 : i32
    return %arg0, %c0_i32 : i32, i32
  }
}

</mosaic_0001>

<bundles_post_ra>
// kernel: wpinn_forward.1
= control target key start
LH: loop header
LB: loop body
LE: loop exit
PB: predicated region body
PF: predicated region fallthrough
CT: control target
= control target key end

     0   :  { %s6152_s0 = inlined_call_operand.vmem [shape: f32[2,64,16], index: 0, kind: input, shape index: {}]   ;;  %s6153_s1 = inlined_call_operand.vmem [shape: f32[2,32], index: 1, kind: input, shape index: {}]   ;;  %s6154_s2 = inlined_call_operand.vmem [shape: f32[1,32], index: 2, kind: input, shape index: {}]   ;;  %s6155_s3 = inlined_call_operand.vmem [shape: f32[2,32,32], index: 3, kind: input, shape index: {}]   ;;  %s6156_s4 = inlined_call_operand.vmem [shape: f32[2,1,32], index: 4, kind: input, shape index: {}]   ;;  %s6157_s5 = inlined_call_operand.vmem [shape: f32[1,32], index: 5, kind: input, shape index: {}]   ;;  %s6158_s6 = inlined_call_operand.<no memory space> [shape: f32[1,1], index: 6, kind: input, shape index: {}]   ;;  %s6159_s7 = inlined_call_operand.vmem [shape: f32[16,96], index: 7, kind: input, shape index: {}]   ;;  %s6160_s8 = inlined_call_operand.vmem [shape: f32[1,96], index: 8, kind: input, shape index: {}]   ;;  %s6161_s9 = inlined_call_operand.vmem [shape: f32[2,96,96], index: 9, kind: input, shape index: {}]   ;;  %s6162_s10 = inlined_call_operand.vmem [shape: f32[2,1,96], index: 10, kind: input, shape index: {}]   ;;  %s6163_s11 = inlined_call_operand.vmem [shape: f32[96,24], index: 11, kind: input, shape index: {}]   ;;  %s6164_s12 = inlined_call_operand.vmem [shape: f32[1,24], index: 12, kind: input, shape index: {}]   ;;  %s6165_s13 = inlined_call_operand.vmem [shape: f32[64,24], index: 13, kind: output, shape index: {}]  }
   0x1   :  { %v18_v0 = vstv %s6158_s6 }
   0x2   :  { %19 = vst [vmem:[#allocation2] sm:$0x1] %v18_v0 }
   0x3   :  { %s4464_s27 = smov 0   ;;  %s4466_s28 = smov 0  }
   0x4   :  { %s4468_s29 = smov 0  }
   0x5 LB: > { %s3643_s6 = sadd.s32 4294967295, %s4388_s29   ;;  %s4481_s30 = sadd.s32 1, %s4388_s29   ;;  %s4388_s29 = sphi %s4468_s29, %s6186_s29   ;;  %s4384_s28 = sphi %s4466_s28, %s6185_s28   ;;  %s4380_s27 = sphi %s4464_s27, %s6184_s27  }
   0x6   : > { %s29_s14 = ssub.s32 %s4388_s29, %s4481_s30  ;;  %s32_s15 = sadd.s32 1, %s4384_s28 }
   0x7   : > { %p30_p0 = scmp.eq.s32.totalorder %s29_s14, 0  ;;  %p39_p1 = scmp.ne.s32.totalorder %s4384_s28, %s4380_s27 }
   0x8   : > { %p40_p2 = scmp.eq.s32.totalorder %s4388_s29, 0  ;;  %p3646_p4 = scmp.ge.s32.totalorder %s4388_s29, 2 }
   0x9   : > { %s4490_s16 = scalar_select %p30_p0, %s4384_s28, %s32_s15  }
   0xa   : > { %p41_p3 = por %p40_p2, %p39_p1  ;;  %379 = sbr.rel (%p3646_p4) target bundleno = 27 (0x1b), region = 64 }
   0xf   : > { %382 = sbr.rel (!%p41_p3) target bundleno = 27 (0x1b), region = 68  ;;  %s384_s17 = sand.u32 (%p41_p3), 1, %s4384_s28  }
  0x10   : > { %s3822_s18 = sshll.u32 (%p41_p3), %s4388_s29, 5  ;;  %s3647_s19 = sshll.u32 (%p41_p3), %s384_s17, 6 }
  0x11   : > { %s389_s22 = scalar_lea.vmem (%p41_p3), %s6152_s0, %s3822_s18  ;;  %s386_s23 = scalar_lea.vmem (%p41_p3), [#allocation3], %s3647_s19 }
  0x12   : > { %v432_v1 = vld [vmem:[%s389_s22] sm:$0xff] (%p41_p3)  ;;  %v434_v2 = vld [vmem:[%s389_s22 + $0x8] sm:$0xff] (%p41_p3)  ;;  %v436_v3 = vld [vmem:[%s389_s22 + $0x10] sm:$0xff] (%p41_p3) }
  0x13   : > { %433 = vst [vmem:[%s386_s23] sm:$0xff] (%p41_p3), %v432_v1  ;;  %v438_v4 = vld [vmem:[%s389_s22 + $0x18] sm:$0xff] (%p41_p3)  ;;  %v440_v5 = vld [vmem:[%s389_s22 + $0x40] sm:$0xff] (%p41_p3)  ;;  %v442_v6 = vld [vmem:[%s389_s22 + $0x48] sm:$0xff] (%p41_p3) }
  0x14   : > { %435 = vst [vmem:[%s386_s23 + $0x8] sm:$0xff] %v434_v2  ;;  %v444_v7 = vld [vmem:[%s389_s22 + $0x50] sm:$0xff]  ;;  %v446_v8 = vld [vmem:[%s389_s22 + $0x58] sm:$0xff] }
  0x15   : > { %437 = vst [vmem:[%s386_s23 + $0x10] sm:$0xff] %v436_v3 }
  0x16   : > { %439 = vst [vmem:[%s386_s23 + $0x18] sm:$0xff] %v438_v4 }
  0x17   : > { %441 = vst [vmem:[%s386_s23 + $0x20] sm:$0xff] %v440_v5 }
  0x18   : > { %443 = vst [vmem:[%s386_s23 + $0x28] sm:$0xff] %v442_v6 }
  0x19   : > { %445 = vst [vmem:[%s386_s23 + $0x30] sm:$0xff] %v444_v7 }
  0x1a   : > { %447 = vst [vmem:[%s386_s23 + $0x38] sm:$0xff] %v446_v8 }
  0x1b PF: > { %p3650_p5 = scmp.ge.s32.totalorder %s4388_s29, 1  ;;  %p452_p6 = scmp.lt.s32.totalorder %s4388_s29, 3 }
  0x1d   : > { %p453_p7 = pnand %p3650_p5, %p452_p6 }
  0x1e   : > { %s459_s24 = sand.u32 (!%p453_p7), 1, %s4380_s27   ;;  %s3652_s20 = sshll.u32 (!%p453_p7), %s3643_s6, 2 }
  0x1f   : > { %456 = sbr.rel (%p453_p7) target bundleno = 2233 (0x8b9), region = 106  ;;  %s3651_s25 = sshll.u32 (!%p453_p7), %s459_s24, 6 }
  0x20   : > { %s4509_s26 = scalar_lea.vmem (!%p453_p7), [#allocation3], %s3651_s25  ;;  %p504_p8 = scmp.lt.s32.totalorder (!%p453_p7), %s3652_s20, 7 }
  0x24   : > { %v6166_v9 = vlaneseq  ;;  %v4512_v12 = vld [vmem:[%s4509_s26] sm:$0xff]  ;;  %v4524_v17 = vld [vmem:[%s4509_s26 + $0x8] sm:$0xff]  ;;  %v4539_v25 = vld [vmem:[%s4509_s26 + $0x10] sm:$0xff]  ;;  %vm1686_vm0 = vcmask 261120   ;;  %vm3222_vm1 = vcmask 130112   ;;  %vm3317_vm2 = vcmask 1041409  }
  0x25   : > { %v546_v13 = vperm.slane %v4512_v12, 2  ;;  %v533_v14 = vperm.slane %v4512_v12, 1  ;;  %v520_v15 = vperm.slane %v4512_v12, 0  ;;  %v598_v16 = vperm.slane %v4512_v12, 6  ;;  %v4528_v19 = vld [vmem:[%s4509_s26 + $0x20] sm:$0xff]  ;;  %v4548_v29 = vld [vmem:[%s4509_s26 + $0x30] sm:$0xff] }
  0x26   : > { %v4502_v10 = vshrl.u32 %v6166_v9, 7  ;;  %v624_v18 = vperm.slane %v4524_v17, 0  ;;  %v559_v20 = vperm.slane %v4512_v12, 3  ;;  %v1014_v21 = vperm.slane %v4528_v19, 1  ;;  %v4560_v33 = vld [vmem:[%s4509_s26 + $0x18] sm:$0xff]  ;;  %s6188_s20 = smov (!%p504_p8, %s3652_s20), 7 }
  0x27   : > { %v1027_v22 = vperm.slane %v4528_v19, 2  ;;  %v585_v23 = vperm.slane %v4512_v12, 5  ;;  %v1040_v24 = vperm.slane %v4528_v19, 3  ;;  %v572_v26 = vperm.slane %v4512_v12, 4  ;;  %v4625_v59 = vld [vmem:[%s4509_s26 + $0x38] sm:$0xff]  ;;  %s3653_s21 = sshll.u32 %s6188_s20, 3 }
  0x28   : > { %3858 = vset.pattern.permute.xlu2 %v4502_v10  ;;  %3857 = vset.pattern.permute.xlu1 %v4502_v10  ;;  %v4507_v11 = vadd.s32 8, %v4502_v10  ;;  %v767_v27 = vperm.slane %v4539_v25, 3  ;;  %v1079_v28 = vperm.slane %v4528_v19, 6  ;;  %v611_v30 = vperm.slane %v4512_v12, 7  ;;  %s507_s25 = scalar_lea.vmem %s6165_s13, %s3653_s21 }
  0x29   : > { %v1274_v31 = vperm.slane %v4548_v29, 5  ;;  %v806_v32 = vperm.slane %v4539_v25, 6  ;;  %v1001_v34 = vperm.slane %v4528_v19, 0  ;;  %v832_v35 = vperm.slane %v4560_v33, 0 }
  0x2a   : > { %3856 = vset.pattern.permute.xlu0 %v4507_v11  ;;  %v858_v36 = vperm.slane %v4560_v33, 2  ;;  %v6171_v37 = vperm.slane %v4560_v33, 4  ;;  %v6167_v38 = vperm.slane %v4560_v33, 6  ;;  %v637_v39 = vperm.slane %v4524_v17, 1 }
  0x2b   : > { %v754_v42 = vperm.slane %v4539_v25, 2  ;;  %v1053_v43 = vperm.slane %v4528_v19, 4  ;;  %v1235_v45 = vperm.slane %v4548_v29, 2  ;;  %v1092_v48 = vperm.slane %v4528_v19, 7 }
  0x2c   : > { %v1066_v50 = vperm.slane %v4528_v19, 5  ;;  %v819_v52 = vperm.slane %v4539_v25, 7  ;;  %v1248_v54 = vperm.slane %v4548_v29, 3  ;;  %v650_v56 = vperm.slane %v4524_v17, 2 }
  0x2d   : > { %v1313_v61 = vperm.slane %v4625_v59, 0  ;;  %v1326_v1 = vperm.slane %v4625_v59, 1  ;;  %v676_v5 = vperm.slane %v4524_v17, 4  ;;  %v1261_v8 = vperm.slane %v4548_v29, 4 }
  0x2e   : > { %v780_v12 = vperm.slane %v4539_v25, 4  ;;  %vm3319_vm3 = vcmask 1042434   ;;  %vm3321_vm4 = vcmask 1043459   ;;  %vm3323_vm5 = vcmask 1044484  }
  0x2f   : > { %vm3325_vm6 = vcmask 1045509   ;;  %vm3327_vm7 = vcmask 1046534   ;;  %vm3329_vm8 = vcmask 1047559   ;;  %vm3352_vm9 = vcmask 130048  }
  0x30   : > { %551 = vperm.xlu2 %3858, %v546_v13   ;;  %538 = vperm.xlu1 %3857, %v533_v14   ;;  %vm3410_vm10 = vcmask 785408   ;;  %vm3576_vm11 = vcmask 195584  }
  0x32   : > { %531 = vperm.xlu0 %3856, %v520_v15  }
  0x38   : > { %3861 = vset.pattern.permute.xlu2 %v4507_v11  ;;  %3859 = vset.pattern.permute.xlu1 %v4507_v11 }
  0x3a   : > { %609 = vperm.xlu0 %3856, %v598_v16  }
  0x40   : > { %557 = vperm.xlu2 %3861, %v546_v13   ;;  %544 = vperm.xlu1 %3859, %v533_v14   ;;  %v1339_v14 = vperm.slane %v4625_v59, 2 }
  0x42   : > { %635 = vperm.xlu0 %3856, %v624_v18  }
  0x48   : > { %570 = vperm.xlu2 %3861, %v559_v20   ;;  %3860 = vset.pattern.permute.xlu1 %v4502_v10 }
  0x4a   : > { %1025 = vperm.xlu0 %3856, %v1014_v21  }
  0x50   : > { %3863 = vset.pattern.permute.xlu2 %v4502_v10  ;;  %564 = vperm.xlu1 %3860, %v559_v20  }
  0x52   : > { %1038 = vperm.xlu0 %3856, %v1027_v22  }
  0x58   : > { %590 = vperm.xlu2 %3863, %v585_v23   ;;  %3862 = vset.pattern.permute.xlu1 %v4507_v11 }
  0x5a   : > { %1051 = vperm.xlu0 %3856, %v1040_v24  }
  0x60   : > { %603 = vperm.xlu2 %3863, %v598_v16   ;;  %583 = vperm.xlu1 %3862, %v572_v26  }
  0x62   : > { %778 = vperm.xlu0 %3856, %v767_v27  }
  0x68   : > { %3865 = vset.pattern.permute.xlu2 %v4507_v11  ;;  %596 = vperm.xlu1 %3862, %v585_v23  }
  0x6a   : > { %1090 = vperm.xlu0 %3856, %v1079_v28  }
  0x70   : > { %622 = vperm.xlu2 %3865, %v611_v30   ;;  %3864 = vset.pattern.permute.xlu1 %v4502_v10 }
  0x72   : > { %1285 = vperm.xlu0 %3856, %v1274_v31  }
  0x78   : > { %3866 = vset.pattern.permute.xlu2 %v4502_v10  ;;  %616 = vperm.xlu1 %3864, %v611_v30   ;;  %v1678_v30 = vld [vmem:[%s6155_s3] sm:$0xff] }
  0x7a   : > { %817 = vperm.xlu0 %3856, %v806_v32  }
  0x80   : > { %1006 = vperm.xlu2 %3866, %v1001_v34   ;;  %629 = vperm.xlu1 %3864, %v624_v18   ;;  %v6172_v18 = vperm.slane %v4625_v59, 3 }
  0x82   : > { %843 = vperm.xlu0 %3856, %v832_v35  }
  0x88   : > { %1019 = vperm.xlu2 %3866, %v1014_v21   ;;  %3867 = vset.pattern.permute.xlu1 %v4507_v11  ;;  %v1681_v21 = vld [vmem:[%s6155_s3 + $0x18] sm:$0xff] }
  0x89   : > { %1891 = vmatpush.msra.mxu0 %v1681_v21  ;;  %3823 = vmatpush.msra.mxu2 %v1681_v21  ;;  %v4719_v21 = vld [vmem:[%s6153_s1 + $0x1] ss:$0 sm:$0xff] }
  0x8a   : > { %869 = vperm.xlu0 %3856, %v858_v36   ;;  %v4605_v51 = vpop.permute.xlu2 %551 }
  0x90   : > { %1032 = vperm.xlu2 %3866, %v1027_v22   ;;  %1012 = vperm.xlu1 %3867, %v1001_v34   ;;  %v1680_v22 = vld [vmem:[%s6155_s3 + $0x10] sm:$0xff] }
  0x91   : > { %1892 = vmatpush.msra.mxu0 %v1680_v22  ;;  %3824 = vmatpush.msra.mxu2 %v1680_v22 }
  0x92   : > { %895 = vperm.xlu0 %3856, %v6171_v37  }
  0x98   : > { %3869 = vset.pattern.permute.xlu2 %v4507_v11  ;;  %3868 = vset.pattern.permute.xlu1 %v4502_v10 }
  0x9a   : > { %921 = vperm.xlu0 %3856, %v6167_v38   ;;  %v4617_v57 = vpop.permute.xlu2 %557  ;;  %v4729_v38 = vld [vmem:[%s6154_s2] ss:$0 sm:$0xff] }
  0xa0   : > { %648 = vperm.xlu2 %3869, %v637_v39   ;;  %642 = vperm.xlu1 %3868, %v637_v39   ;;  %v6169_v39 = vperm.slane %v4625_v59, 4 }
  0xa2   : > { %3921 = vset.pattern.permute.xlu0 %v4502_v10  ;;  %v4609_v53 = vpop.permute.xlu1 %538  ;;  %v4631_v62 = vpop.permute.xlu2 %570 }
  0xa4   : > { %v4580_v40 = vpop.permute.xlu0 %531 }
  0xa8   : > { %3870 = vset.pattern.permute.xlu2 %v4502_v10  ;;  %1045 = vperm.xlu1 %3868, %v1040_v24  }
  0xaa   : > { %525 = vperm.xlu0 %3921, %v520_v15  }
  0xac   : > { %v4585_v41 = vpop.permute.xlu0 %609 }
  0xb0   : > { %759 = vperm.xlu2 %3870, %v754_v42   ;;  %1058 = vperm.xlu1 %3868, %v1053_v43  }
  0xb2   : > { %577 = vperm.xlu0 %3921, %v572_v26   ;;  %v4620_v58 = vpop.permute.xlu1 %544  ;;  %v4641_v2 = vpop.permute.xlu2 %590  ;;  %v6170_v26 = vperm.slane %v4524_v17, 6 }
  0xb4   : > { %v4589_v44 = vpop.permute.xlu0 %635 }
  0xb8   : > { %3872 = vset.pattern.permute.xlu2 %v4507_v11  ;;  %3871 = vset.pattern.permute.xlu1 %v4507_v11 }
  0xba   : > { %1240 = vperm.xlu0 %3921, %v1235_v45   ;;  %v4655_v6 = vpop.permute.xlu2 %603 }
  0xbc   : > { %v4594_v46 = vpop.permute.xlu0 %1025 }
  0xc0   : > { %765 = vperm.xlu2 %3872, %v754_v42   ;;  %1064 = vperm.xlu1 %3871, %v1053_v43  }
  0xc2   : > { %772 = vperm.xlu0 %3921, %v767_v27   ;;  %v4633_v63 = vpop.permute.xlu1 %564  ;;  %v1679_v27 = vld [vmem:[%s6155_s3 + $0x8] sm:$0xff] }
  0xc3   : > { %1893 = vmatpush.msra.mxu0 %v1679_v27  ;;  %3825 = vmatpush.msra.mxu2 %v1679_v27 }
  0xc4   : > { %v4596_v47 = vpop.permute.xlu0 %1038 }
  0xc5   : > { %1894 = vmatpush.msra.mxu0 %v1678_v30  ;;  %3826 = vmatpush.msra.mxu2 %v1678_v30  ;;  %v6173_v30 = vperm.slane %v4539_v25, 0 }
  0xc8   : > { %3873 = vset.pattern.permute.xlu2 %v4502_v10  ;;  %1246 = vperm.xlu1 %3871, %v1235_v45   ;;  %v793_v45 = vperm.slane %v4539_v25, 5 }
  0xca   : > { %1097 = vperm.xlu0 %3921, %v1092_v48   ;;  %v4666_v15 = vpop.permute.xlu2 %622 }
  0xcc   : > { %v4602_v49 = vpop.permute.xlu0 %1051 }
  0xd0   : > { %1071 = vperm.xlu2 %3873, %v1066_v50   ;;  %3874 = vset.pattern.permute.xlu1 %v4502_v10 }
  0xd2   : > { %824 = vperm.xlu0 %3921, %v819_v52   ;;  %v4643_v3 = vpop.permute.xlu1 %583 }
  0xd4   : > { %v4614_v55 = vpop.permute.xlu0 %778 }
  0xd8   : > { %3875 = vset.pattern.permute.xlu2 %v4507_v11  ;;  %1253 = vperm.xlu1 %3874, %v1248_v54  }
  0xda   : > { %655 = vperm.xlu0 %3921, %v650_v56   ;;  %v4657_v7 = vpop.permute.xlu1 %596  ;;  %v1007_v23 = vpop.permute.xlu2 %1006 }
  0xdb   : > { %v1418_v27 = vmul.f32 %v4719_v21, %v1007_v23 }
  0xdc   : > { %v4627_v60 = vpop.permute.xlu0 %1090 }
  0xe0   : > { %1077 = vperm.xlu2 %3875, %v1066_v50   ;;  %3876 = vset.pattern.permute.xlu1 %v4507_v11 }
  0xe2   : > { %1318 = vperm.xlu0 %3921, %v1313_v61   ;;  %v1020_v42 = vpop.permute.xlu2 %1019 }
  0xe4   : > { %v4637_v0 = vpop.permute.xlu0 %1285 }
  0xe8   : > { %3877 = vset.pattern.permute.xlu2 %v4502_v10  ;;  %1259 = vperm.xlu1 %3876, %v1248_v54   ;;  %v6168_v54 = vperm.slane %v4625_v59, 5 }
  0xea   : > { %1331 = vperm.xlu0 %3921, %v1326_v1   ;;  %v4668_v16 = vpop.permute.xlu1 %616 }
  0xec   : > { %v4647_v4 = vpop.permute.xlu0 %817 }
  0xf0   : > { %1084 = vperm.xlu2 %3877, %v1079_v28   ;;  %3878 = vset.pattern.permute.xlu1 %v4502_v10 }
  0xf2   : > { %681 = vperm.xlu0 %3921, %v676_v5   ;;  %v4683_v24 = vpop.permute.xlu1 %629 }
  0xf4   : > { %v4661_v13 = vpop.permute.xlu0 %843 }
  0xf8   : > { %1266 = vperm.xlu2 %3877, %v1261_v8   ;;  %785 = vperm.xlu1 %3878, %v780_v12  }
  0xfa   : > { %1344 = vperm.xlu0 %3921, %v1339_v14  }
  0xfc   : > { %v4671_v20 = vpop.permute.xlu0 %869 }
 0x100   : > { %3880 = vset.pattern.permute.xlu2 %v4507_v11  ;;  %3879 = vset.pattern.permute.xlu1 %v4507_v11 }
 0x102   : > { %1357 = vperm.xlu0 %3921, %v6172_v18   ;;  %v1013_v34 = vpop.permute.xlu1 %1012 }
 0x104   : > { %v4689_v28 = vpop.permute.xlu0 %895 }
 0x108   : > { %1272 = vperm.xlu2 %3880, %v1261_v8   ;;  %791 = vperm.xlu1 %3879, %v780_v12   ;;  %v1033_v8 = vpop.permute.xlu2 %1032  ;;  %v4714_v12 = vld [vmem:[%s6153_s1] ss:$0 sm:$0xff] }
 0x109   : > { %v938_v9 = vmul.f32 %v4714_v12, %v4580_v40  ;;  %v939_v18 = vmul.f32 %v4714_v12, %v4609_v53 }
 0x10a   : > { %707 = vperm.xlu0 %3921, %v6170_v26  }
 0x10c   : > { %v4701_v43 = vpop.permute.xlu0 %921 }
 0x110   : > { %3882 = vset.pattern.permute.xlu2 %v4502_v10  ;;  %3881 = vset.pattern.permute.xlu1 %v4502_v10 }
 0x112   : > { %1370 = vperm.xlu0 %3921, %v6169_v39   ;;  %v4704_v50 = vpop.permute.xlu1 %642 }
 0x118   : > { %1279 = vperm.xlu2 %3882, %v1274_v31   ;;  %798 = vperm.xlu1 %3881, %v793_v45  }
 0x11a   : > { %1383 = vperm.xlu0 %3921, %v6168_v54   ;;  %v1419_v54 = vmul.f32 %v4719_v21, %v1013_v34  ;;  %v4732_v26 = vpop.permute.xlu1 %1045  ;;  %v1420_v34 = vmul.f32 %v4719_v21, %v1020_v42 }
 0x11c   : > { %v526_v22 = vpop.permute.xlu0 %525  ;;  %v1483_v40 = vadd.f32 %v1419_v54, %v938_v9 }
 0x11d   : > { %v937_v31 = vmul.f32 %v4714_v12, %v526_v22  ;;  %v4737_v22 = vpop.permute.xlu2 %648 }
 0x11f   : > { %v1482_v39 = vadd.f32 %v1418_v27, %v937_v31  ;;  %v1391_v27 = vperm.slane %v4625_v59, 6  ;;  %v1551_v31 = vadd.f32 %v4729_v38, %v1483_v40 }
 0x120   : > { %3884 = vset.pattern.permute.xlu2 %v4507_v11  ;;  %3883 = vset.pattern.permute.xlu1 %v4507_v11 }
 0x121   : > { %v1550_v23 = vadd.f32 %v4729_v38, %v1482_v39 }
 0x122   : > { %733 = vperm.xlu0 %3921, %v6173_v30   ;;  %v1484_v30 = vadd.f32 %v1420_v34, %v939_v18  ;;  %v4750_v54 = vpop.permute.xlu1 %1058  ;;  %v1421_v18 = vmul.f32 %v4719_v21, %v4594_v46  ;;  %v940_v34 = vmul.f32 %v4714_v12, %v4620_v58  ;;  %v1422_v58 = vmul.f32 %v4719_v21, %v1033_v8 }
 0x123   : > { %3940 = vtanh.f32 %v1550_v23 }
 0x124   : > { %v4741_v37 = vpop.permute.xlu0 %577  ;;  %3942 = vtanh.f32 %v1551_v31  ;;  %v1552_v19 = vadd.f32 %v4729_v38, %v1484_v30  ;;  %v1485_v46 = vadd.f32 %v1421_v18, %v940_v34  ;;  %v1287_v34 = vperm.slane %v4548_v29, 6 }
 0x125   : > { %v760_v9 = vpop.permute.xlu2 %759 }
 0x126   : > { %v973_v23 = vmul.f32 %v4714_v12, %v760_v9  ;;  %3944 = vtanh.f32 %v1552_v19  ;;  %v941_v19 = vmul.f32 %v4714_v12, %v4605_v51 }
 0x128   : > { %804 = vperm.xlu2 %3884, %v793_v45   ;;  %1103 = vperm.xlu1 %3883, %v1092_v48   ;;  %v6174_v48 = vperm.slane %v4625_v59, 7  ;;  %v1486_v18 = vadd.f32 %v1422_v58, %v941_v19 }
 0x129   : > { %v3941_v39 = vpop.eup %3940 }
 0x12a   : > { %1396 = vperm.xlu0 %3921, %v1391_v27   ;;  %3658 = vmatmul.msk.f32.vlgmr.msra.gmra.mxu0 %vm1686_vm0, %v3941_v39  ;;  %v3943_v40 = vpop.eup %3942  ;;  %v4767_v39 = vld [vmem:[%s4509_s26 + $0x28] sm:$0xff]  ;;  %v1554_v51 = vadd.f32 %v4729_v38, %v1486_v18  ;;  %v943_v18 = vmul.f32 %v4714_v12, %v4633_v63 }
 0x12b   : > { %v1105_v9 = vperm.slane %v4767_v39, 0 }
 0x12c   : > { %v1241_v42 = vpop.permute.xlu0 %1240 }
 0x12d   : > { %v1454_v53 = vmul.f32 %v4719_v21, %v1241_v42  ;;  %v1553_v42 = vadd.f32 %v4729_v38, %v1485_v46 }
 0x12f   : > { %v1518_v45 = vadd.f32 %v1454_v53, %v973_v23  ;;  %v3945_v23 = vpop.eup %3944 }
 0x130   : > { %3886 = vset.pattern.permute.xlu2 %v4502_v10  ;;  %3885 = vset.pattern.permute.xlu1 %v4502_v10 }
 0x131   : > { %v1586_v31 = vadd.f32 %v4729_v38, %v1518_v45  ;;  %v766_v45 = vpop.permute.xlu2 %765 }
 0x132   : > { %v4769_v30 = vpop.permute.xlu1 %1064  ;;  %1409 = vperm.xlu0 %3921, %v6174_v48   ;;  %3659 = vmatmul.msk.f32.gmra.mxu0 %vm1686_vm0, %v3943_v40  ;;  %v974_v40 = vmul.f32 %v4714_v12, %v766_v45 }
 0x133   : > { %3946 = vtanh.f32 %v1586_v31  ;;  %v1423_v31 = vmul.f32 %v4719_v21, %v4596_v47  ;;  %v1424_v47 = vmul.f32 %v4719_v21, %v4732_v26 }
 0x134   : > { %3948 = vtanh.f32 %v1553_v42  ;;  %v942_v42 = vmul.f32 %v4714_v12, %v4617_v57  ;;  %v773_v19 = vpop.permute.xlu0 %772 }
 0x135   : > { %v975_v57 = vmul.f32 %v4714_v12, %v773_v19 }
 0x138   : > { %811 = vperm.xlu2 %3886, %v806_v32   ;;  %1110 = vperm.xlu1 %3885, %v1105_v9  }
 0x139   : > { %v3947_v53 = vpop.eup %3946  ;;  %v1072_v63 = vpop.permute.xlu2 %1071 }
 0x13a   : > { %v1247_v48 = vpop.permute.xlu1 %1246  ;;  %3660 = vmatmul.msk.f32.gmra.mxu0 %vm1686_vm0, %v3945_v23  ;;  %3694 = vmatmul.msk.f32.vlgmr.msra.gmra.mxu2 %vm1686_vm0, %v3947_v53  ;;  %v3949_v23 = vpop.eup %3948 }
 0x13b   : > { %v1455_v8 = vmul.f32 %v4719_v21, %v1247_v48  ;;  %v1487_v48 = vadd.f32 %v1423_v31, %v942_v42 }
 0x13d   : > { %v1519_v32 = vadd.f32 %v1455_v8, %v974_v40  ;;  %v1555_v58 = vadd.f32 %v4729_v38, %v1487_v48  ;;  %v1488_v8 = vadd.f32 %v1424_v47, %v943_v18  ;;  %v1118_v48 = vperm.slane %v4767_v39, 1 }
 0x13f   : > { %v1587_v46 = vadd.f32 %v4729_v38, %v1519_v32  ;;  %v1556_v31 = vadd.f32 %v4729_v38, %v1488_v8 }
 0x140   : > { %3887 = vset.pattern.permute.xlu2 %v4507_v11  ;;  %1292 = vperm.xlu1 %3885, %v1287_v34  }
 0x141   : > { %3950 = vtanh.f32 %v1587_v46 }
 0x142   : > { %3661 = vmatmul.msk.f32.gmra.mxu0 %vm1686_vm0, %v3949_v23  ;;  %3952 = vtanh.f32 %v1554_v51  ;;  %v944_v23 = vmul.f32 %v4714_v12, %v4631_v62  ;;  %v1426_v62 = vmul.f32 %v4719_v21, %v4750_v54  ;;  %v1427_v54 = vmul.f32 %v4719_v21, %v4769_v30 }
 0x143   : > { %3954 = vtanh.f32 %v1555_v58  ;;  %v945_v58 = vmul.f32 %v4714_v12, %v4741_v37 }
 0x145   : > { %v1490_v18 = vadd.f32 %v1426_v62, %v945_v58 }
 0x147   : > { %v3951_v53 = vpop.eup %3950  ;;  %v1558_v8 = vadd.f32 %v4729_v38, %v1490_v18 }
 0x148   : > { %1116 = vperm.xlu2 %3887, %v1105_v9   ;;  %3888 = vset.pattern.permute.xlu1 %v4507_v11  ;;  %v3953_v45 = vpop.eup %3952  ;;  %v1425_v9 = vmul.f32 %v4719_v21, %v4602_v49 }
 0x149   : > { %3695 = vmatmul.msk.f32.gmra.mxu2 %vm1686_vm0, %v3951_v53  ;;  %v3955_v46 = vpop.eup %3954  ;;  %v1078_v53 = vpop.permute.xlu2 %1077 }
 0x14a   : > { %v1254_v40 = vpop.permute.xlu1 %1253  ;;  %3662 = vmatmul.msk.f32.gmra.mxu0 %vm1686_vm0, %v3953_v45  ;;  %v1489_v42 = vadd.f32 %v1425_v9, %v944_v23  ;;  %v976_v45 = vmul.f32 %v4714_v12, %v4614_v55  ;;  %v946_v55 = vmul.f32 %v4714_v12, %v4643_v3 }
 0x14b   : > { %v1456_v26 = vmul.f32 %v4719_v21, %v1254_v40 }
 0x14c   : > { %v1557_v49 = vadd.f32 %v4729_v38, %v1489_v42  ;;  %v947_v42 = vmul.f32 %v4714_v12, %v4641_v2 }
 0x14d   : > { %v1520_v32 = vadd.f32 %v1456_v26, %v975_v57  ;;  %v1300_v57 = vperm.slane %v4548_v29, 7  ;;  %v1491_v29 = vadd.f32 %v1427_v54, %v946_v55  ;;  %v950_v55 = vmul.f32 %v4714_v12, %v4585_v41 }
 0x14f   : > { %v1588_v51 = vadd.f32 %v4729_v38, %v1520_v32  ;;  %v1559_v30 = vadd.f32 %v4729_v38, %v1491_v29 }
 0x150   : > { %3889 = vset.pattern.permute.xlu2 %v4502_v10  ;;  %1298 = vperm.xlu1 %3888, %v1287_v34  }
 0x151   : > { %3956 = vtanh.f32 %v1588_v51  ;;  %v1085_v32 = vpop.permute.xlu2 %1084  ;;  %v1428_v51 = vmul.f32 %v4719_v21, %v1072_v63 }
 0x152   : > { %3663 = vmatmul.msk.f32.gmra.mxu0 %vm1686_vm0, %v3955_v46  ;;  %3958 = vtanh.f32 %v1556_v31 }
 0x153   : > { %3960 = vtanh.f32 %v1557_v49  ;;  %v1492_v49 = vadd.f32 %v1428_v51, %v947_v42 }
 0x157   : > { %v3957_v47 = vpop.eup %3956 }
 0x158   : > { %1123 = vperm.xlu2 %3889, %v1118_v48   ;;  %3890 = vset.pattern.permute.xlu1 %v4502_v10  ;;  %v3959_v34 = vpop.eup %3958 }
 0x159   : > { %3696 = vmatmul.msk.f32.gmra.mxu2 %vm1686_vm0, %v3957_v47  ;;  %v3961_v9 = vpop.eup %3960  ;;  %v1267_v46 = vpop.permute.xlu2 %1266 }
 0x15a   : > { %v1260_v19 = vpop.permute.xlu1 %1259  ;;  %3664 = vmatmul.msk.f32.gmra.mxu0 %vm1686_vm0, %v3959_v34  ;;  %v1458_v58 = vmul.f32 %v4719_v21, %v1267_v46  ;;  %v1429_v34 = vmul.f32 %v4719_v21, %v1078_v53  ;;  %v1430_v53 = vmul.f32 %v4719_v21, %v1085_v32  ;;  %v1131_v32 = vperm.slane %v4767_v39, 2 }
 0x15b   : > { %v1457_v37 = vmul.f32 %v4719_v21, %v1260_v19  ;;  %v948_v19 = vmul.f32 %v4714_v12, %v4657_v7 }
 0x15d   : > { %v1521_v40 = vadd.f32 %v1457_v37, %v976_v45  ;;  %v1493_v45 = vadd.f32 %v1429_v34, %v948_v19  ;;  %v3723_v19 = vld [vmem:[%s6155_s3 + $0x28] sm:$0xff] }
 0x15f   : > { %v1589_v26 = vadd.f32 %v4729_v38, %v1521_v40  ;;  %v1561_v37 = vadd.f32 %v4729_v38, %v1493_v45 }
 0x160   : > { %3891 = vset.pattern.permute.xlu2 %v4507_v11  ;;  %1305 = vperm.xlu1 %3890, %v1300_v57  }
 0x161   : > { %3962 = vtanh.f32 %v1589_v26 }
 0x162   : > { %3665 = vmatmul.msk.f32.gmra.mxu0 %vm1686_vm0, %v3961_v9  ;;  %3964 = vtanh.f32 %v1558_v8  ;;  %v1273_v40 = vpop.permute.xlu2 %1272 }
 0x163   : > { %3966 = vtanh.f32 %v1559_v30  ;;  %v1459_v54 = vmul.f32 %v4719_v21, %v1273_v40 }
 0x167   : > { %v3963_v31 = vpop.eup %3962 }
 0x168   : > { %1129 = vperm.xlu2 %3891, %v1118_v48   ;;  %3892 = vset.pattern.permute.xlu1 %v4507_v11  ;;  %v3965_v23 = vpop.eup %3964  ;;  %v1560_v48 = vadd.f32 %v4729_v38, %v1492_v49 }
 0x169   : > { %3697 = vmatmul.msk.f32.gmra.mxu2 %vm1686_vm0, %v3963_v31  ;;  %v3967_v2 = vpop.eup %3966 }
 0x16a   : > { %v786_v3 = vpop.permute.xlu1 %785  ;;  %3666 = vmatmul.msk.f32.gmra.mxu0 %vm1686_vm0, %v3965_v23  ;;  %v1098_v23 = vpop.permute.xlu0 %1097 }
 0x16b   : > { %v977_v63 = vmul.f32 %v4714_v12, %v786_v3 }
 0x16d   : > { %v1522_v47 = vadd.f32 %v1458_v58, %v977_v63  ;;  %v3725_v58 = vld [vmem:[%s6155_s3 + $0x38] sm:$0xff] }
 0x16e   : > { %2366 = vmatpush.msra.mxu1 %v3725_v58  ;;  %3827 = vmatpush.msra.mxu3 %v3725_v58 }
 0x16f   : > { %v1590_v62 = vadd.f32 %v4729_v38, %v1522_v47 }
 0x170   : > { %1311 = vperm.xlu2 %3891, %v1300_v57   ;;  %830 = vperm.xlu1 %3892, %v819_v52   ;;  %v949_v57 = vmul.f32 %v4714_v12, %v4655_v6  ;;  %v1431_v6 = vmul.f32 %v4719_v21, %v4627_v60  ;;  %v1432_v60 = vmul.f32 %v4719_v21, %v1098_v23 }
 0x171   : > { %3968 = vtanh.f32 %v1590_v62 }
 0x172   : > { %3667 = vmatmul.msk.f32.gmra.mxu0 %vm1686_vm0, %v3967_v2  ;;  %3970 = vtanh.f32 %v1560_v48  ;;  %v1494_v8 = vadd.f32 %v1430_v53, %v949_v57  ;;  %v1280_v30 = vpop.permute.xlu2 %1279  ;;  %v1495_v46 = vadd.f32 %v1431_v6, %v950_v55  ;;  %v3722_v53 = vld [vmem:[%s6155_s3 + $0x20] sm:$0xff] }
 0x173   : > { %3972 = vtanh.f32 %v1561_v37  ;;  %v1460_v47 = vmul.f32 %v4719_v21, %v1280_v30  ;;  %v1461_v37 = vmul.f32 %v4719_v21, %v4637_v0 }
 0x174   : > { %v1562_v29 = vadd.f32 %v4729_v38, %v1494_v8  ;;  %v1563_v42 = vadd.f32 %v4729_v38, %v1495_v46  ;;  %v952_v8 = vmul.f32 %v4714_v12, %v4666_v15  ;;  %v845_v15 = vperm.slane %v4560_v33, 1 }
 0x177   : > { %v3969_v18 = vpop.eup %3968 }
 0x178   : > { %3894 = vset.pattern.permute.xlu2 %v4502_v10  ;;  %3893 = vset.pattern.permute.xlu1 %v4502_v10  ;;  %v3971_v52 = vpop.eup %3970 }
 0x179   : > { %3698 = vmatmul.msk.f32.gmra.mxu2 %vm1686_vm0, %v3969_v18  ;;  %v3973_v51 = vpop.eup %3972 }
 0x17a   : > { %v792_v7 = vpop.permute.xlu1 %791  ;;  %3668 = vmatmul.msk.f32.gmra.mxu0 %vm1686_vm0, %v3971_v52 }
 0x17b   : > { %v978_v26 = vmul.f32 %v4714_v12, %v792_v7 }
 0x17d   : > { %v1523_v9 = vadd.f32 %v1459_v54, %v978_v26  ;;  %v663_v26 = vperm.slane %v4524_v17, 3 }
 0x17f   : > { %v1591_v31 = vadd.f32 %v4729_v38, %v1523_v9 }
 0x180   : > { %837 = vperm.xlu2 %3894, %v832_v35   ;;  %1136 = vperm.xlu1 %3893, %v1131_v32   ;;  %v951_v35 = vmul.f32 %v4714_v12, %v4668_v16  ;;  %v3724_v16 = vld [vmem:[%s6155_s3 + $0x30] sm:$0xff] }
 0x181   : > { %3974 = vtanh.f32 %v1591_v31  ;;  %2367 = vmatpush.msra.mxu1 %v3724_v16  ;;  %3828 = vmatpush.msra.mxu3 %v3724_v16 }
 0x182   : > { %3669 = vmatmul.msk.f32.gmra.mxu0 %vm1686_vm0, %v3973_v51  ;;  %3976 = vtanh.f32 %v1562_v29  ;;  %v1496_v63 = vadd.f32 %v1432_v60, %v951_v35  ;;  %v805_v48 = vpop.permute.xlu2 %804  ;;  %v1144_v29 = vperm.slane %v4767_v39, 3  ;;  %v954_v35 = vmul.f32 %v4714_v12, %v4589_v44 }
 0x183   : > { %3978 = vtanh.f32 %v1563_v42  ;;  %v980_v2 = vmul.f32 %v4714_v12, %v805_v48  ;;  %2368 = vmatpush.msra.mxu1 %v3723_v19  ;;  %3829 = vmatpush.msra.mxu3 %v3723_v19 }
 0x184   : > { %v1564_v45 = vadd.f32 %v4729_v38, %v1496_v63 }
 0x185   : > { %2369 = vmatpush.msra.mxu1 %v3722_v53  ;;  %3830 = vmatpush.msra.mxu3 %v3722_v53  ;;  %v1525_v52 = vadd.f32 %v1461_v37, %v980_v2 }
 0x187   : > { %v3975_v41 = vpop.eup %3974  ;;  %v1593_v57 = vadd.f32 %v4729_v38, %v1525_v52 }
 0x188   : > { %3896 = vset.pattern.permute.xlu2 %v4507_v11  ;;  %3895 = vset.pattern.permute.xlu1 %v4507_v11  ;;  %v3977_v3 = vpop.eup %3976 }
 0x189   : > { %3699 = vmatmul.msk.f32.gmra.mxu2 %vm1686_vm0, %v3975_v41  ;;  %v3979_v40 = vpop.eup %3978  ;;  %v953_v41 = vmul.f32 %v4714_v12, %v4683_v24 }
 0x18a   : > { %v799_v49 = vpop.permute.xlu1 %798  ;;  %3670 = vmatmul.msk.f32.gmra.mxu0 %vm1686_vm0, %v3977_v3 }
 0x18b   : > { %v979_v34 = vmul.f32 %v4714_v12, %v799_v49 }
 0x18d   : > { %v1524_v62 = vadd.f32 %v1460_v47, %v979_v34 }
 0x18f   : > { %v1592_v18 = vadd.f32 %v4729_v38, %v1524_v62 }
 0x190   : > { %1142 = vperm.xlu2 %3896, %v1131_v32   ;;  %661 = vperm.xlu1 %3895, %v650_v56  }
 0x191   : > { %3980 = vtanh.f32 %v1592_v18  ;;  %v955_v18 = vmul.f32 %v4714_v12, %v4704_v50 }
 0x192   : > { %3671 = vmatmul.msk.f32.gmra.mxu0 %vm1686_vm0, %v3979_v40  ;;  %3982 = vtanh.f32 %v1564_v45  ;;  %v812_v6 = vpop.permute.xlu2 %811 }
 0x193   : > { %3984 = vtanh.f32 %v1593_v57  ;;  %v981_v16 = vmul.f32 %v4714_v12, %v812_v6  ;;  %v982_v6 = vmul.f32 %v4714_v12, %v4647_v4 }
 0x197   : > { %v3981_v7 = vpop.eup %3980 }
 0x198   : > { %3897 = vset.pattern.permute.xlu2 %v4502_v10  ;;  %1324 = vperm.xlu1 %3895, %v1313_v61   ;;  %v3983_v56 = vpop.eup %3982  ;;  %v4916_v61 = vld [vmem:[%s6156_s4] ss:$0 sm:$0xff] }
 0x199   : > { %3700 = vmatmul.msk.f32.gmra.mxu2 %vm1686_vm0, %v3981_v7  ;;  %v3985_v55 = vpop.eup %3984 }
 0x19a   : > { %v1104_v0 = vpop.permute.xlu1 %1103  ;;  %3672 = vmatmul.msk.f32.gmra.mxu0 %vm1686_vm0, %v3983_v56 }
 0x19b   : > { %v1433_v54 = vmul.f32 %v4719_v21, %v1104_v0 }
 0x19d   : > { %v1497_v32 = vadd.f32 %v1433_v54, %v952_v8 }
 0x19f   : > { %v1565_v9 = vadd.f32 %v4729_v38, %v1497_v32 }
 0x1a0   : > { %668 = vperm.xlu2 %3897, %v663_v26   ;;  %3898 = vset.pattern.permute.xlu1 %v4502_v10 }
 0x1a1   : > { %3986 = vtanh.f32 %v1565_v9  ;;  %3701 = vmatmul.msk.f32.gmra.mxu2 %vm1686_vm0, %v3985_v55 }
 0x1a2   : > { %v1117_v46 = vpop.permute.xlu2 %1116 }
 0x1a3   : > { %v1435_v60 = vmul.f32 %v4719_v21, %v1117_v46 }
 0x1a5   : > { %v1499_v48 = vadd.f32 %v1435_v60, %v954_v35 }
 0x1a7   : > { %v3987_v31 = vpop.eup %3986  ;;  %v1896_v51 = vpop.f32.mrf.mxu0  ;;  %v1567_v62 = vadd.f32 %v4729_v38, %v1499_v48 }
 0x1a8   : > { %v1897_v30 = vadd.f32 %v4916_v61, %v1896_v51  ;;  %850 = vperm.xlu2 %3897, %v845_v15   ;;  %1149 = vperm.xlu1 %3898, %v1144_v29  }
 0x1a9   : > { %3673 = vmatmul.msk.f32.gmra.mxu0 %vm1686_vm0, %v3987_v31 }
 0x1aa   : > { %3988 = vtanh.f32 %v1897_v30  ;;  %v1111_v23 = vpop.permute.xlu1 %1110 }
 0x1ab   : > { %v1434_v42 = vmul.f32 %v4719_v21, %v1111_v23 }
 0x1ad   : > { %v1498_v3 = vadd.f32 %v1434_v42, %v953_v41 }
 0x1af   : > { %v1566_v49 = vadd.f32 %v4729_v38, %v1498_v3  ;;  %v1899_v58 = vpop.f32.mrf.mxu0  ;;  %v1157_v3 = vperm.slane %v4767_v39, 4 }
 0x1b0   : > { %v3989_v63 = vpop.eup %3988  ;;  %v1900_v47 = vadd.f32 %v4916_v61, %v1899_v58  ;;  %3900 = vset.pattern.permute.xlu2 %v4507_v11  ;;  %3899 = vset.pattern.permute.xlu1 %v4507_v11 }
 0x1b1   : > { %3990 = vtanh.f32 %v1566_v49  ;;  %3727 = vmatmul.msk.f32.vlgmr.msra.gmra.mxu1 %vm1686_vm0, %v3989_v63 }
 0x1b2   : > { %3992 = vtanh.f32 %v1900_v47  ;;  %v1124_v24 = vpop.permute.xlu2 %1123  ;;  %v1293_v34 = vpop.permute.xlu1 %1292 }
 0x1b3   : > { %v1462_v44 = vmul.f32 %v4719_v21, %v1293_v34  ;;  %v1436_v2 = vmul.f32 %v4719_v21, %v1124_v24  ;;  %3994 = vtanh.f32 %v1567_v62  ;;  %v825_v24 = vpop.permute.xlu0 %824 }
 0x1b5   : > { %v1526_v19 = vadd.f32 %v1462_v44, %v981_v16  ;;  %v1500_v57 = vadd.f32 %v1436_v2, %v955_v18  ;;  %v983_v16 = vmul.f32 %v4714_v12, %v825_v24 }
 0x1b7   : > { %v3991_v45 = vpop.eup %3990  ;;  %v1594_v37 = vadd.f32 %v4729_v38, %v1526_v19  ;;  %v1902_v53 = vpop.f32.mrf.mxu0  ;;  %v1568_v7 = vadd.f32 %v4729_v38, %v1500_v57 }
 0x1b8   : > { %v3993_v40 = vpop.eup %3992  ;;  %v1903_v52 = vadd.f32 %v4916_v61, %v1902_v53  ;;  %1155 = vperm.xlu2 %3900, %v1144_v29   ;;  %674 = vperm.xlu1 %3899, %v663_v26   ;;  %v956_v29 = vmul.f32 %v4714_v12, %v4737_v22 }
 0x1b9   : > { %3674 = vmatmul.msk.f32.gmra.mxu0 %vm1686_vm0, %v3991_v45  ;;  %3728 = vmatmul.msk.f32.gmra.mxu1 %vm1686_vm0, %v3993_v40  ;;  %3996 = vtanh.f32 %v1594_v37  ;;  %v3995_v0 = vpop.eup %3994 }
 0x1ba   : > { %3998 = vtanh.f32 %v1903_v52 }
 0x1bb   : > { %v656_v53 = vpop.permute.xlu0 %655 }
 0x1bd   : > { %v2004_v56 = vpop.f32.mrf.mxu2 }
 0x1be   : > { %v2005_v50 = vadd.f32 %v4916_v61, %v2004_v56 }
 0x1bf   : > { %v1905_v8 = vpop.f32.mrf.mxu0  ;;  %v3997_v54 = vpop.eup %3996 }
 0x1c0   : > { %4000 = vtanh.f32 %v2005_v50  ;;  %v1906_v32 = vadd.f32 %v4916_v61, %v1905_v8  ;;  %1337 = vperm.xlu2 %3900, %v1326_v1   ;;  %856 = vperm.xlu1 %3899, %v845_v15   ;;  %v3999_v26 = vpop.eup %3998 }
 0x1c1   : > { %4002 = vtanh.f32 %v1568_v7  ;;  %3675 = vmatmul.msk.f32.gmra.mxu0 %vm1686_vm0, %v3995_v0  ;;  %3702 = vmatmul.msk.f32.gmra.mxu2 %vm1686_vm0, %v3997_v54 }
 0x1c2   : > { %4004 = vtanh.f32 %v1906_v32  ;;  %3729 = vmatmul.msk.f32.gmra.mxu1 %vm1686_vm0, %v3999_v26  ;;  %v1130_v9 = vpop.permute.xlu2 %1129  ;;  %v1299_v55 = vpop.permute.xlu1 %1298 }
 0x1c3   : > { %v1437_v1 = vmul.f32 %v4719_v21, %v1130_v9  ;;  %v1463_v15 = vmul.f32 %v4719_v21, %v1299_v55 }
 0x1c5   : > { %v1501_v31 = vadd.f32 %v1437_v1, %v956_v29  ;;  %v1527_v51 = vadd.f32 %v1463_v15, %v982_v6  ;;  %v1319_v6 = vpop.permute.xlu0 %1318 }
 0x1c6   : > { %v4001_v30 = vpop.eup %4000 }
 0x1c7   : > { %v4003_v46 = vpop.eup %4002  ;;  %v1569_v23 = vadd.f32 %v4729_v38, %v1501_v31  ;;  %v1595_v41 = vadd.f32 %v4729_v38, %v1527_v51  ;;  %v1908_v42 = vpop.f32.mrf.mxu0  ;;  %3763 = vmatmul.msk.f32.vlgmr.msra.gmra.mxu3 %vm1686_vm0, %v4001_v30 }
 0x1c8   : > { %v4005_v60 = vpop.eup %4004  ;;  %v1909_v4 = vadd.f32 %v4916_v61, %v1908_v42  ;;  %3902 = vset.pattern.permute.xlu2 %v4502_v10  ;;  %3901 = vset.pattern.permute.xlu1 %v4502_v10 }
 0x1c9   : > { %4006 = vtanh.f32 %v1569_v23  ;;  %3676 = vmatmul.msk.f32.gmra.mxu0 %vm1686_vm0, %v4003_v46  ;;  %v4999_v46 = vld [vmem:[%s4509_s26 + $0x8] sm:$0xff] }
 0x1ca   : > { %4008 = vtanh.f32 %v1595_v41  ;;  %3730 = vmatmul.msk.f32.gmra.mxu1 %vm1686_vm0, %v4005_v60  ;;  %v1312_v18 = vpop.permute.xlu2 %1311  ;;  %v689_v23 = vperm.slane %v4999_v46, 5 }
 0x1cb   : > { %4010 = vtanh.f32 %v1909_v4  ;;  %v1465_v54 = vmul.f32 %v4719_v21, %v1312_v18 }
 0x1cc   : > { %v2007_v22 = vpop.f32.mrf.mxu2 }
 0x1cd   : > { %v2008_v35 = vadd.f32 %v4916_v61, %v2007_v22 }
 0x1cf   : > { %v4007_v49 = vpop.eup %4006  ;;  %4012 = vtanh.f32 %v2008_v35  ;;  %v1911_v58 = vpop.f32.mrf.mxu0  ;;  %v957_v35 = vmul.f32 %v4714_v12, %v656_v53 }
 0x1d0   : > { %v4009_v63 = vpop.eup %4008  ;;  %v1912_v47 = vadd.f32 %v4916_v61, %v1911_v58  ;;  %863 = vperm.xlu2 %3902, %v858_v36   ;;  %1162 = vperm.xlu1 %3901, %v1157_v3   ;;  %v5011_v58 = vld [vmem:[%s4509_s26 + $0x18] sm:$0xff] }
 0x1d1   : > { %v4011_v48 = vpop.eup %4010  ;;  %3677 = vmatmul.msk.f32.gmra.mxu0 %vm1686_vm0, %v4007_v49  ;;  %3703 = vmatmul.msk.f32.gmra.mxu2 %vm1686_vm0, %v4009_v63  ;;  %v871_v63 = vperm.slane %v5011_v58, 3 }
 0x1d2   : > { %4014 = vtanh.f32 %v1912_v47  ;;  %3731 = vmatmul.msk.f32.gmra.mxu1 %vm1686_vm0, %v4011_v48  ;;  %v1306_v34 = vpop.permute.xlu1 %1305  ;;  %v1170_v47 = vperm.slane %v4767_v39, 5 }
 0x1d3   : > { %v1464_v44 = vmul.f32 %v4719_v21, %v1306_v34 }
 0x1d5   : > { %v4013_v62 = vpop.eup %4012  ;;  %v1528_v2 = vadd.f32 %v1464_v44, %v983_v16 }
 0x1d6   : > { %3764 = vmatmul.msk.f32.gmra.mxu3 %vm1686_vm0, %v4013_v62 }
 0x1d7   : > { %v1596_v36 = vadd.f32 %v4729_v38, %v1528_v2  ;;  %v1914_v19 = vpop.f32.mrf.mxu0 }
 0x1d8   : > { %v4015_v45 = vpop.eup %4014  ;;  %v1915_v37 = vadd.f32 %v4916_v61, %v1914_v19  ;;  %3904 = vset.pattern.permute.xlu2 %v4507_v11  ;;  %3903 = vset.pattern.permute.xlu1 %v4507_v11 }
 0x1d9   : > { %4016 = vtanh.f32 %v1596_v36 }
 0x1da   : > { %4018 = vtanh.f32 %v1915_v37  ;;  %3732 = vmatmul.msk.f32.gmra.mxu1 %vm1686_vm0, %v4015_v45  ;;  %v838_v0 = vpop.permute.xlu2 %837 }
 0x1db   : > { %v985_v9 = vmul.f32 %v4714_v12, %v838_v0 }
 0x1dc   : > { %v2010_v40 = vpop.f32.mrf.mxu2 }
 0x1dd   : > { %v2011_v52 = vadd.f32 %v4916_v61, %v2010_v40 }
 0x1df   : > { %v4017_v57 = vpop.eup %4016  ;;  %4020 = vtanh.f32 %v2011_v52  ;;  %v1917_v7 = vpop.f32.mrf.mxu0 }
 0x1e0   : > { %v4019_v56 = vpop.eup %4018  ;;  %v1918_v50 = vadd.f32 %v4916_v61, %v1917_v7  ;;  %1168 = vperm.xlu2 %3904, %v1157_v3   ;;  %687 = vperm.xlu1 %3903, %v676_v5   ;;  %v1466_v5 = vmul.f32 %v4719_v21, %v1319_v6  ;;  %v986_v6 = vmul.f32 %v4714_v12, %v4661_v13  ;;  %v6175_v13 = vperm.slane %v4625_v59, 3 }
 0x1e1   : > { %3704 = vmatmul.msk.f32.gmra.mxu2 %vm1686_vm0, %v4017_v57 }
 0x1e2   : > { %4022 = vtanh.f32 %v1918_v50  ;;  %3733 = vmatmul.msk.f32.gmra.mxu1 %vm1686_vm0, %v4019_v56  ;;  %v831_v8 = vpop.permute.xlu1 %830  ;;  %v1530_v51 = vadd.f32 %v1466_v5, %v985_v9 }
 0x1e3   : > { %v984_v32 = vmul.f32 %v4714_v12, %v831_v8 }
 0x1e4   : > { %v1598_v41 = vadd.f32 %v4729_v38, %v1530_v51  ;;  %v1332_v51 = vpop.permute.xlu0 %1331 }
 0x1e5   : > { %v4021_v26 = vpop.eup %4020  ;;  %v1529_v55 = vadd.f32 %v1465_v54, %v984_v32 }
 0x1e6   : > { %3765 = vmatmul.msk.f32.gmra.mxu3 %vm1686_vm0, %v4021_v26 }
 0x1e7   : > { %v1597_v29 = vadd.f32 %v4729_v38, %v1529_v55  ;;  %v1920_v1 = vpop.f32.mrf.mxu0 }
 0x1e8   : > { %v4023_v15 = vpop.eup %4022  ;;  %v1921_v31 = vadd.f32 %v4916_v61, %v1920_v1  ;;  %3905 = vset.pattern.permute.xlu2 %v4502_v10  ;;  %1350 = vperm.xlu1 %3903, %v1339_v14  }
 0x1e9   : > { %4024 = vtanh.f32 %v1597_v29 }
 0x1ea   : > { %4026 = vtanh.f32 %v1921_v31  ;;  %3734 = vmatmul.msk.f32.gmra.mxu1 %vm1686_vm0, %v4023_v15  ;;  %v1143_v34 = vpop.permute.xlu2 %1142 }
 0x1eb   : > { %v1439_v7 = vmul.f32 %v4719_v21, %v1143_v34 }
 0x1ec   : > { %v2013_v30 = vpop.f32.mrf.mxu2 }
 0x1ed   : > { %v2014_v42 = vadd.f32 %v4916_v61, %v2013_v30  ;;  %v1468_v30 = vmul.f32 %v4719_v21, %v1332_v51 }
 0x1ef   : > { %v4025_v60 = vpop.eup %4024  ;;  %4028 = vtanh.f32 %v2014_v42  ;;  %v1923_v4 = vpop.f32.mrf.mxu0 }
 0x1f0   : > { %v4027_v22 = vpop.eup %4026  ;;  %v1924_v14 = vadd.f32 %v4916_v61, %v1923_v4  ;;  %694 = vperm.xlu2 %3905, %v689_v23   ;;  %3906 = vset.pattern.permute.xlu1 %v4502_v10  ;;  %4030 = vtanh.f32 %v1598_v41 }
 0x1f1   : > { %3705 = vmatmul.msk.f32.gmra.mxu2 %vm1686_vm0, %v4025_v60 }
 0x1f2   : > { %4032 = vtanh.f32 %v1924_v14  ;;  %3735 = vmatmul.msk.f32.gmra.mxu1 %vm1686_vm0, %v4027_v22  ;;  %v1137_v3 = vpop.permute.xlu1 %1136 }
 0x1f3   : > { %v1438_v49 = vmul.f32 %v4719_v21, %v1137_v3 }
 0x1f5   : > { %v4029_v48 = vpop.eup %4028  ;;  %v1502_v24 = vadd.f32 %v1438_v49, %v957_v35 }
 0x1f6   : > { %3766 = vmatmul.msk.f32.gmra.mxu3 %vm1686_vm0, %v4029_v48  ;;  %v4031_v16 = vpop.eup %4030 }
 0x1f7   : > { %v1570_v44 = vadd.f32 %v4729_v38, %v1502_v24  ;;  %v1926_v62 = vpop.f32.mrf.mxu0 }
 0x1f8   : > { %v4033_v2 = vpop.eup %4032  ;;  %v1927_v36 = vadd.f32 %v4916_v61, %v1926_v62  ;;  %876 = vperm.xlu2 %3905, %v871_v63   ;;  %1175 = vperm.xlu1 %3906, %v1170_v47  }
 0x1f9   : > { %4034 = vtanh.f32 %v1570_v44  ;;  %3706 = vmatmul.msk.f32.gmra.mxu2 %vm1686_vm0, %v4031_v16  ;;  %v1183_v44 = vperm.slane %v4767_v39, 6 }
 0x1fa   : > { %4036 = vtanh.f32 %v1927_v36  ;;  %3736 = vmatmul.msk.f32.gmra.mxu1 %vm1686_vm0, %v4033_v2  ;;  %v669_v40 = vpop.permute.xlu2 %668 }
 0x1fb   : > { %v959_v24 = vmul.f32 %v4714_v12, %v669_v40 }
 0x1fc   : > { %v2016_v19 = vpop.f32.mrf.mxu2 }
 0x1fd   : > { %v2017_v45 = vadd.f32 %v4916_v61, %v2016_v19 }
 0x1ff   : > { %v4035_v18 = vpop.eup %4034  ;;  %4038 = vtanh.f32 %v2017_v45  ;;  %v1929_v37 = vpop.f32.mrf.mxu0 }
 0x200   : > { %v4037_v53 = vpop.eup %4036  ;;  %v1930_v52 = vadd.f32 %v4916_v61, %v1929_v37  ;;  %3908 = vset.pattern.permute.xlu2 %v4507_v11  ;;  %3907 = vset.pattern.permute.xlu1 %v4507_v11  ;;  %v6176_v37 = vperm.slane %v4560_v33, 4 }
 0x201   : > { %3678 = vmatmul.msk.f32.gmra.mxu0 %vm1686_vm0, %v4035_v18 }
 0x202   : > { %4040 = vtanh.f32 %v1930_v52  ;;  %3737 = vmatmul.msk.f32.gmra.mxu1 %vm1686_vm0, %v4037_v53  ;;  %v662_v57 = vpop.permute.xlu1 %661  ;;  %v851_v9 = vpop.permute.xlu2 %850 }
 0x203   : > { %v958_v56 = vmul.f32 %v4714_v12, %v662_v57  ;;  %v987_v1 = vmul.f32 %v4714_v12, %v851_v9  ;;  %v5068_v57 = vld [vmem:[%s6153_s1 + $0x1] ss:$0 sm:$0xff] }
 0x205   : > { %v4039_v50 = vpop.eup %4038  ;;  %v1503_v0 = vadd.f32 %v1439_v7, %v958_v56  ;;  %v1532_v22 = vadd.f32 %v1468_v30, %v987_v1 }
 0x206   : > { %3767 = vmatmul.msk.f32.gmra.mxu3 %vm1686_vm0, %v4039_v50  ;;  %v682_v50 = vpop.permute.xlu0 %681 }
 0x207   : > { %v1571_v8 = vadd.f32 %v4729_v38, %v1503_v0  ;;  %v1932_v54 = vpop.f32.mrf.mxu0  ;;  %v1600_v3 = vadd.f32 %v4729_v38, %v1532_v22  ;;  %v5075_v0 = vld [vmem:[%s6153_s1] ss:$0 sm:$0xff] }
 0x208   : > { %v4041_v32 = vpop.eup %4040  ;;  %v1933_v26 = vadd.f32 %v4916_v61, %v1932_v54  ;;  %1181 = vperm.xlu2 %3908, %v1170_v47   ;;  %700 = vperm.xlu1 %3907, %v689_v23   ;;  %v5081_v54 = vld [vmem:[%s6156_s4 + $0x1] ss:$0 sm:$0xff] }
 0x209   : > { %4042 = vtanh.f32 %v1571_v8 }
 0x20a   : > { %3738 = vmatmul.msk.f32.gmra.mxu1 %vm1686_vm0, %v4041_v32  ;;  %v1325_v55 = vpop.permute.xlu1 %1324  ;;  %4044 = vtanh.f32 %v1933_v26 }
 0x20b   : > { %v1467_v5 = vmul.f32 %v4719_v21, %v1325_v55 }
 0x20c   : > { %v2019_v29 = vpop.f32.mrf.mxu2 }
 0x20d   : > { %v1531_v15 = vadd.f32 %v1467_v5, %v986_v6  ;;  %v2020_v31 = vadd.f32 %v4916_v61, %v2019_v29  ;;  %v5087_v6 = vld [vmem:[%s6154_s2] ss:$0 sm:$0xff] }
 0x20f   : > { %v1599_v23 = vadd.f32 %v4729_v38, %v1531_v15  ;;  %4046 = vtanh.f32 %v2020_v31  ;;  %v1935_v41 = vpop.f32.mrf.mxu0  ;;  %v4043_v42 = vpop.eup %4042  ;;  %v6177_v31 = vperm.slane %v4524_v17, 6 }
 0x210   : > { %v1936_v60 = vadd.f32 %v4916_v61, %v1935_v41  ;;  %1363 = vperm.xlu2 %3908, %v6175_v13   ;;  %882 = vperm.xlu1 %3907, %v871_v63   ;;  %v4045_v4 = vpop.eup %4044  ;;  %v1345_v41 = vpop.permute.xlu0 %1344 }
 0x211   : > { %4048 = vtanh.f32 %v1599_v23  ;;  %3679 = vmatmul.msk.f32.gmra.mxu0 %vm1686_vm0, %v4043_v42 }
 0x212   : > { %4050 = vtanh.f32 %v1936_v60  ;;  %3739 = vmatmul.msk.f32.gmra.mxu1 %vm1686_vm0, %v4045_v4  ;;  %v1156_v62 = vpop.permute.xlu2 %1155  ;;  %v1470_v60 = vmul.f32 %v5068_v57, %v1345_v41  ;;  %v5101_v4 = vld [vmem:[%s6157_s5] ss:$0 sm:$0xff] }
 0x213   : > { %4052 = vtanh.f32 %v1600_v3  ;;  %v1441_v7 = vmul.f32 %v5068_v57, %v1156_v62 }
 0x215   : > { %v4047_v14 = vpop.eup %4046 }
 0x216   : > { %3768 = vmatmul.msk.f32.gmra.mxu3 %vm1686_vm0, %v4047_v14 }
 0x217   : > { %v4049_v35 = vpop.eup %4048  ;;  %v1938_v49 = vpop.f32.mrf.mxu0 }
 0x218   : > { %v4051_v47 = vpop.eup %4050  ;;  %v1939_v48 = vadd.f32 %v4916_v61, %v1938_v49  ;;  %3910 = vset.pattern.permute.xlu2 %v4502_v10  ;;  %3909 = vset.pattern.permute.xlu1 %v4502_v10  ;;  %v6178_v49 = vperm.slane %v4625_v59, 4 }
 0x219   : > { %3707 = vmatmul.msk.f32.gmra.mxu2 %vm1686_vm0, %v4049_v35  ;;  %v4053_v19 = vpop.eup %4052 }
 0x21a   : > { %4054 = vtanh.f32 %v1939_v48  ;;  %3740 = vmatmul.msk.f32.gmra.mxu1 %vm1686_vm0, %v4051_v47  ;;  %v1150_v63 = vpop.permute.xlu1 %1149 }
 0x21b   : > { %v1440_v34 = vmul.f32 %v4719_v21, %v1150_v63 }
 0x21c   : > { %v2022_v16 = vpop.f32.mrf.mxu2 }
 0x21d   : > { %v1504_v2 = vadd.f32 %v1440_v34, %v959_v24  ;;  %v2023_v36 = vadd.f32 %v4916_v61, %v2022_v16  ;;  %v715_v34 = vperm.slane %v4999_v46, 7 }
 0x21f   : > { %v1572_v45 = vadd.f32 %v4729_v38, %v1504_v2  ;;  %4056 = vtanh.f32 %v2023_v36  ;;  %v1338_v38 = vpop.permute.xlu2 %1337 }
 0x220   : > { %v4055_v18 = vpop.eup %4054  ;;  %889 = vperm.xlu2 %3910, %v6176_v37   ;;  %1188 = vperm.xlu1 %3909, %v1183_v44   ;;  %v1469_v1 = vmul.f32 %v5068_v57, %v1338_v38 }
 0x221   : > { %4058 = vtanh.f32 %v1572_v45  ;;  %3708 = vmatmul.msk.f32.gmra.mxu2 %vm1686_vm0, %v4053_v19  ;;  %v961_v19 = vmul.f32 %v5075_v0, %v682_v50 }
 0x222   : > { %3741 = vmatmul.msk.f32.gmra.mxu1 %vm1686_vm0, %v4055_v18  ;;  %v897_v18 = vperm.slane %v5011_v58, 5 }
 0x224   : > { %v2025_v12 = vpop.f32.mrf.mxu2 }
 0x225   : > { %v4057_v21 = vpop.eup %4056  ;;  %v2026_v39 = vadd.f32 %v4916_v61, %v2025_v12 }
 0x226   : > { %v1941_v53 = vpop.f32.mrf.mxu0  ;;  %3769 = vmatmul.msk.f32.gmra.mxu3 %vm1686_vm0, %v4057_v21 }
 0x227   : > { %v4059_v40 = vpop.eup %4058  ;;  %4060 = vtanh.f32 %v2026_v39  ;;  %v1942_v52 = vadd.f32 %v4916_v61, %v1941_v53  ;;  %v4353_v39 = vld [vmem:[%s4509_s26 + $0x28] sm:$0xff] }
 0x228   : > { %3912 = vset.pattern.permute.xlu2 %v4507_v11  ;;  %3911 = vset.pattern.permute.xlu1 %v4507_v11  ;;  %v1196_v53 = vperm.slane %v4353_v39, 7 }
 0x229   : > { %4062 = vtanh.f32 %v1942_v52  ;;  %3680 = vmatmul.msk.f32.gmra.mxu0 %vm1686_vm0, %v4059_v40 }
 0x22a   : > { %v675_v56 = vpop.permute.xlu1 %674  ;;  %v864_v15 = vpop.permute.xlu2 %863 }
 0x22b   : > { %v960_v8 = vmul.f32 %v5075_v0, %v675_v56  ;;  %v989_v23 = vmul.f32 %v5075_v0, %v864_v15 }
 0x22d   : > { %v4061_v32 = vpop.eup %4060  ;;  %v1505_v26 = vadd.f32 %v1441_v7, %v960_v8  ;;  %v1534_v3 = vadd.f32 %v1470_v60, %v989_v23 }
 0x22e   : > { %3770 = vmatmul.msk.f32.gmra.mxu3 %vm1686_vm0, %v4061_v32  ;;  %v2371_v9 = vpop.f32.mrf.mxu1 }
 0x22f   : > { %v4063_v55 = vpop.eup %4062  ;;  %v1573_v5 = vadd.f32 %v5087_v6, %v1505_v26  ;;  %v2372_v29 = vadd.f32 %v5081_v54, %v2371_v9  ;;  %v1602_v63 = vadd.f32 %v5087_v6, %v1534_v3 }
 0x230   : > { %3742 = vmatmul.msk.f32.gmra.mxu1 %vm1686_vm0, %v4063_v55  ;;  %1194 = vperm.xlu2 %3912, %v1183_v44  }
 0x231   : > { %713 = vperm.xlu1 %3911, %v6177_v31   ;;  %4064 = vtanh.f32 %v1573_v5 }
 0x232   : > { %v857_v51 = vpop.permute.xlu1 %856  ;;  %4066 = vtanh.f32 %v2372_v29 }
 0x233   : > { %v988_v30 = vmul.f32 %v5075_v0, %v857_v51 }
 0x235   : > { %v1533_v42 = vadd.f32 %v1469_v1, %v988_v30 }
 0x236   : > { %v1944_v13 = vpop.f32.mrf.mxu0  ;;  %v5110_v48 = vpop.f32.mrf.mxu1 }
 0x237   : > { %v1601_v17 = vadd.f32 %v5087_v6, %v1533_v42  ;;  %v1945_v22 = vadd.f32 %v4916_v61, %v1944_v13  ;;  %v4065_v14 = vpop.eup %4064 }
 0x238   : > { %3913 = vset.pattern.permute.xlu2 %v4502_v10  ;;  %v4067_v35 = vpop.eup %4066  ;;  %3681 = vmatmul.msk.f32.gmra.mxu0 %vm1686_vm0, %v4065_v14 }
 0x239   : > { %4068 = vtanh.f32 %v1601_v17  ;;  %1376 = vperm.xlu1 %3911, %v6178_v49   ;;  %v2631_v47 = vmul.f32 %v4067_v35, %v5101_v4  ;;  %v990_v35 = vmul.f32 %v5075_v0, %v4671_v20  ;;  %v6179_v20 = vperm.slane %v4625_v59, 5 }
 0x23a   : > { %4070 = vtanh.f32 %v1945_v22  ;;  %v1169_v38 = vpop.permute.xlu2 %1168 }
 0x23b   : > { %v2695_v24 = vsel %vm1686_vm0, %v2631_v47, 0.0  ;;  %4072 = vtanh.f32 %v1602_v63  ;;  %v1443_v1 = vmul.f32 %v5068_v57, %v1169_v38 }
 0x23c   : > { %2696 = vadd.xlane.f32.xlu0 %v2695_v24 }
 0x23e   : > { %v1947_v16 = vpop.f32.mrf.mxu0 }
 0x23f   : > { %v4069_v44 = vpop.eup %4068  ;;  %v1948_v62 = vadd.f32 %v4916_v61, %v1947_v16  ;;  %v5122_v37 = vpop.f32.mrf.mxu1 }
 0x240   : > { %v4071_v2 = vpop.eup %4070  ;;  %720 = vperm.xlu2 %3913, %v715_v34   ;;  %3709 = vmatmul.msk.f32.gmra.mxu2 %vm1686_vm0, %v4069_v44  ;;  %v1358_v44 = vpop.permute.xlu0 %1357 }
 0x241   : > { %4074 = vtanh.f32 %v1948_v62  ;;  %3743 = vmatmul.msk.f32.gmra.mxu1 %vm1686_vm0, %v4071_v2  ;;  %3914 = vset.pattern.permute.xlu1 %v4502_v10  ;;  %v4073_v40 = vpop.eup %4072 }
 0x242   : > { %v1163_v36 = vpop.permute.xlu1 %1162 }
 0x243   : > { %v1442_v46 = vmul.f32 %v5068_v57, %v1163_v36 }
 0x244   : > { %v2028_v45 = vpop.f32.mrf.mxu2 }
 0x245   : > { %v1506_v12 = vadd.f32 %v1442_v46, %v961_v19  ;;  %v2029_v21 = vadd.f32 %v4916_v61, %v2028_v45 }
 0x246   : > { %v1950_v52 = vpop.f32.mrf.mxu0 }
 0x247   : > { %v4075_v7 = vpop.eup %4074  ;;  %v1574_v56 = vadd.f32 %v5087_v6, %v1506_v12  ;;  %4076 = vtanh.f32 %v2029_v21  ;;  %v1951_v50 = vadd.f32 %v4916_v61, %v1950_v52  ;;  %v5133_v9 = vpop.f32.mrf.mxu1 }
 0x248   : > { %902 = vperm.xlu2 %3913, %v897_v18   ;;  %3710 = vmatmul.msk.f32.gmra.mxu2 %vm1686_vm0, %v4073_v40 }
 0x249   : > { %4078 = vtanh.f32 %v1574_v56  ;;  %3744 = vmatmul.msk.f32.gmra.mxu1 %vm1686_vm0, %v4075_v7  ;;  %1201 = vperm.xlu1 %3914, %v1196_v53  }
 0x24a   : > { %4080 = vtanh.f32 %v1951_v50  ;;  %v695_v29 = vpop.permute.xlu2 %694  ;;  %v5139_v15 = vpop.f32.mrf.mxu3 }
 0x24d   : > { %v4077_v8 = vpop.eup %4076 }
 0x24e   : > { %v1953_v32 = vpop.f32.mrf.mxu0  ;;  %3771 = vmatmul.msk.f32.gmra.mxu3 %vm1686_vm0, %v4077_v8  ;;  %v5173_v8 = vld [vmem:[%s4509_s26 + $0x30] sm:$0xff] }
 0x24f   : > { %v4079_v26 = vpop.eup %4078  ;;  %v1954_v55 = vadd.f32 %v4916_v61, %v1953_v32  ;;  %v2383_v13 = vpop.f32.mrf.mxu1  ;;  %v1209_v32 = vperm.slane %v5173_v8, 0 }
 0x250   : > { %v4081_v5 = vpop.eup %4080  ;;  %3916 = vset.pattern.permute.xlu2 %v4507_v11  ;;  %3682 = vmatmul.msk.f32.gmra.mxu0 %vm1686_vm0, %v4079_v26  ;;  %v2384_v47 = vadd.f32 %v5081_v54, %v2383_v13 }
 0x251   : > { %4082 = vtanh.f32 %v1954_v55  ;;  %3745 = vmatmul.msk.f32.gmra.mxu1 %vm1686_vm0, %v4081_v5  ;;  %3915 = vset.pattern.permute.xlu1 %v4507_v11 }
 0x252   : > { %v688_v31 = vpop.permute.xlu1 %687  ;;  %v877_v22 = vpop.permute.xlu2 %876 }
 0x253   : > { %v962_v51 = vmul.f32 %v5075_v0, %v688_v31  ;;  %v991_v24 = vmul.f32 %v5075_v0, %v877_v22 }
 0x254   : > { %v2031_v30 = vpop.f32.mrf.mxu2 }
 0x255   : > { %v1507_v23 = vadd.f32 %v1443_v1, %v962_v51  ;;  %v2032_v41 = vadd.f32 %v4916_v61, %v2031_v30  ;;  %v6180_v1 = vperm.slane %v4560_v33, 6 }
 0x257   : > { %v4083_v42 = vpop.eup %4082  ;;  %v1575_v60 = vadd.f32 %v5087_v6, %v1507_v23  ;;  %4084 = vtanh.f32 %v2032_v41  ;;  %v5181_v51 = vpop.f32.mrf.mxu1 }
 0x258   : > { %1207 = vperm.xlu2 %3916, %v1196_v53  }
 0x259   : > { %3746 = vmatmul.msk.f32.gmra.mxu1 %vm1686_vm0, %v4083_v42  ;;  %726 = vperm.xlu1 %3915, %v715_v34   ;;  %v2482_v17 = vpop.f32.mrf.mxu3  ;;  %4086 = vtanh.f32 %v1575_v60  ;;  %v1472_v34 = vmul.f32 %v5068_v57, %v1358_v44 }
 0x25a   : > { %v2483_v14 = vadd.f32 %v5081_v54, %v2482_v17  ;;  %v1351_v3 = vpop.permute.xlu1 %1350 }
 0x25b   : > { %v1471_v49 = vmul.f32 %v5068_v57, %v1351_v3  ;;  %v1536_v36 = vadd.f32 %v1472_v34, %v991_v24  ;;  %v6181_v34 = vperm.slane %v4539_v25, 0 }
 0x25c   : > { %4088 = vtanh.f32 %v2483_v14  ;;  %v708_v14 = vpop.permute.xlu0 %707 }
 0x25d   : > { %v4085_v63 = vpop.eup %4084  ;;  %v1535_v16 = vadd.f32 %v1471_v49, %v990_v35  ;;  %4090 = vtanh.f32 %v2384_v47  ;;  %v1604_v12 = vadd.f32 %v5087_v6, %v1536_v36 }
 0x25e   : > { %3772 = vmatmul.msk.f32.gmra.mxu3 %vm1686_vm0, %v4085_v63 }
 0x25f   : > { %v1603_v62 = vadd.f32 %v5087_v6, %v1535_v16  ;;  %v4087_v2 = vpop.eup %4086  ;;  %v5193_v47 = vpop.f32.mrf.mxu1 }
 0x260   : > { %1389 = vperm.xlu2 %3916, %v6179_v20   ;;  %3683 = vmatmul.msk.f32.gmra.mxu0 %vm1686_vm0, %v4087_v2 }
 0x261   : > { %4092 = vtanh.f32 %v1603_v62  ;;  %908 = vperm.xlu1 %3915, %v897_v18   ;;  %v963_v18 = vmul.f32 %v5075_v0, %v695_v29 }
 0x262   : > { %v4089_v19 = vpop.eup %4088  ;;  %v1182_v5 = vpop.permute.xlu2 %1181 }
 0x263   : > { %v2668_v46 = vmul.f32 %v4089_v19, %v5101_v4  ;;  %v4091_v53 = vpop.eup %4090  ;;  %v1445_v33 = vmul.f32 %v5068_v57, %v1182_v5 }
 0x264   : > { %v2034_v45 = vpop.f32.mrf.mxu2  ;;  %v2635_v38 = vmul.f32 %v4091_v53, %v5101_v4 }
 0x265   : > { %v2035_v21 = vadd.f32 %v4916_v61, %v2034_v45  ;;  %v2806_v39 = vsel %vm1686_vm0, %v2668_v46, 0.0  ;;  %v1371_v45 = vpop.permute.xlu0 %1370 }
 0x266   : > { %2807 = vadd.xlane.f32.xlu0 %v2806_v39  ;;  %v2707_v50 = vsel %vm1686_vm0, %v2635_v38, 0.0  ;;  %v1474_v25 = vmul.f32 %v5068_v57, %v1371_v45 }
 0x267   : > { %v4093_v40 = vpop.eup %4092  ;;  %4094 = vtanh.f32 %v2035_v21  ;;  %v2392_v53 = vpop.f32.mrf.mxu1 }
 0x268   : > { %3918 = vset.pattern.permute.xlu2 %v4502_v10  ;;  %3711 = vmatmul.msk.f32.gmra.mxu2 %vm1686_vm0, %v4093_v40  ;;  %4096 = vtanh.f32 %v1604_v12 }
 0x269   : > { %3917 = vset.pattern.permute.xlu1 %v4502_v10  ;;  %v5186_v41 = vpop.f32.mrf.mxu3 }
 0x26a   : > { %v1176_v52 = vpop.permute.xlu1 %1175  ;;  %v1364_v42 = vpop.permute.xlu2 %1363 }
 0x26b   : > { %v1444_v7 = vmul.f32 %v5068_v57, %v1176_v52  ;;  %v1473_v16 = vmul.f32 %v5068_v57, %v1364_v42  ;;  %v2393_v52 = vadd.f32 %v5081_v54, %v2392_v53  ;;  %v994_v53 = vmul.f32 %v5075_v0, %v4689_v28 }
 0x26d   : > { %v4095_v56 = vpop.eup %4094  ;;  %v1508_v26 = vadd.f32 %v1444_v7, %v963_v18  ;;  %v4355_v7 = vld [vmem:[%s4509_s26 + $0x10] sm:$0xff] }
 0x26e   : > { %2708 = vadd.xlane.f32.xlu0 %v2707_v50  ;;  %3773 = vmatmul.msk.f32.gmra.mxu3 %vm1686_vm0, %v4095_v56  ;;  %v4097_v55 = vpop.eup %4096  ;;  %v741_v56 = vperm.slane %v4355_v7, 1  ;;  %v1384_v7 = vpop.permute.xlu0 %1383 }
 0x26f   : > { %v1576_v29 = vadd.f32 %v5087_v6, %v1508_v26 }
 0x270   : > { %915 = vperm.xlu2 %3918, %v6180_v1   ;;  %3712 = vmatmul.msk.f32.gmra.mxu2 %vm1686_vm0, %v4097_v55 }
 0x271   : > { %1214 = vperm.xlu1 %3917, %v1209_v32   ;;  %4098 = vtanh.f32 %v1576_v29  ;;  %v965_v29 = vmul.f32 %v5075_v0, %v708_v14  ;;  %v5229_v14 = vpop.f32.mrf.mxu1 }
 0x274   : > { %v2037_v31 = vpop.f32.mrf.mxu2 }
 0x275   : > { %v2038_v30 = vadd.f32 %v4916_v61, %v2037_v31 }
 0x277   : > { %v4099_v23 = vpop.eup %4098  ;;  %4100 = vtanh.f32 %v2038_v30  ;;  %v923_v30 = vperm.slane %v5011_v58, 7 }
 0x278   : > { %3920 = vset.pattern.permute.xlu2 %v4507_v11  ;;  %3684 = vmatmul.msk.f32.gmra.mxu0 %vm1686_vm0, %v4099_v23 }
 0x279   : > { %3919 = vset.pattern.permute.xlu1 %v4507_v11  ;;  %v5198_v44 = vpop.f32.mrf.mxu3  ;;  %v5247_v45 = vpop.f32.mrf.mxu1 }
 0x27a   : > { %v701_v60 = vpop.permute.xlu1 %700  ;;  %v890_v2 = vpop.permute.xlu2 %889 }
 0x27b   : > { %v964_v13 = vmul.f32 %v5075_v0, %v701_v60  ;;  %v993_v46 = vmul.f32 %v5075_v0, %v890_v2 }
 0x27c   : > { %v2040_v17 = vpop.f32.mrf.mxu2 }
 0x27d   : > { %v4101_v22 = vpop.eup %4100  ;;  %v1509_v3 = vadd.f32 %v1445_v33, %v964_v13  ;;  %v2041_v35 = vadd.f32 %v4916_v61, %v2040_v17  ;;  %v1538_v18 = vadd.f32 %v1474_v25, %v993_v46  ;;  %v1222_v33 = vperm.slane %v5173_v8, 1  ;;  %v5234_v8 = vld [vmem:[%s6156_s4] ss:$0 sm:$0xff] }
 0x27e   : > { %v1956_v49 = vpop.f32.mrf.mxu0  ;;  %3774 = vmatmul.msk.f32.gmra.mxu3 %vm1686_vm0, %v4101_v22 }
 0x27f   : > { %v1577_v63 = vadd.f32 %v5087_v6, %v1509_v3  ;;  %4102 = vtanh.f32 %v2041_v35  ;;  %v1957_v24 = vadd.f32 %v4916_v61, %v1956_v49  ;;  %v1606_v50 = vadd.f32 %v5087_v6, %v1538_v18 }
 0x280   : > { %1220 = vperm.xlu2 %3920, %v1209_v32  }
 0x281   : > { %739 = vperm.xlu1 %3919, %v6181_v34   ;;  %4104 = vtanh.f32 %v1577_v63 }
 0x282   : > { %v883_v62 = vpop.permute.xlu1 %882  ;;  %4106 = vtanh.f32 %v1957_v24 }
 0x283   : > { %v992_v20 = vmul.f32 %v5075_v0, %v883_v62 }
 0x285   : > { %v4103_v36 = vpop.eup %4102  ;;  %v1537_v19 = vadd.f32 %v1473_v16, %v992_v20 }
 0x286   : > { %3775 = vmatmul.msk.f32.gmra.mxu3 %vm1686_vm0, %v4103_v36 }
 0x287   : > { %v1605_v12 = vadd.f32 %v5087_v6, %v1537_v19  ;;  %v4105_v21 = vpop.eup %4104 }
 0x288   : > { %3922 = vset.pattern.permute.xlu2 %v4502_v10  ;;  %v4107_v39 = vpop.eup %4106  ;;  %3685 = vmatmul.msk.f32.gmra.mxu0 %vm1686_vm0, %v4105_v21 }
 0x289   : > { %4108 = vtanh.f32 %v1605_v12  ;;  %1402 = vperm.xlu1 %3919, %v1391_v27   ;;  %v2491_v40 = vpop.f32.mrf.mxu3  ;;  %3747 = vmatmul.msk.f32.gmra.mxu1 %vm1686_vm0, %v4107_v39 }
 0x28a   : > { %v2492_v38 = vadd.f32 %v5081_v54, %v2491_v40 }
 0x28c   : > { %4110 = vtanh.f32 %v2492_v38 }
 0x28d   : > { %4112 = vtanh.f32 %v2393_v52 }
 0x28e   : > { %v1959_v32 = vpop.f32.mrf.mxu0 }
 0x28f   : > { %v4109_v26 = vpop.eup %4108  ;;  %v1960_v55 = vadd.f32 %v4916_v61, %v1959_v32 }
 0x290   : > { %746 = vperm.xlu2 %3922, %v741_v56   ;;  %3713 = vmatmul.msk.f32.gmra.mxu2 %vm1686_vm0, %v4109_v26  ;;  %v6182_v26 = vperm.slane %v4625_v59, 7 }
 0x291   : > { %4114 = vtanh.f32 %v1960_v55  ;;  %3923 = vset.pattern.permute.xlu1 %v4502_v10  ;;  %v1195_v10 = vpop.permute.xlu2 %1194 }
 0x292   : > { %v4111_v27 = vpop.eup %4110  ;;  %4116 = vtanh.f32 %v1606_v50  ;;  %v1189_v5 = vpop.permute.xlu1 %1188  ;;  %v1447_v16 = vmul.f32 %v5068_v57, %v1195_v10 }
 0x293   : > { %v1446_v1 = vmul.f32 %v5068_v57, %v1189_v5  ;;  %v2671_v31 = vmul.f32 %v4111_v27, %v5101_v4  ;;  %v4113_v42 = vpop.eup %4112  ;;  %v2401_v27 = vpop.f32.mrf.mxu1 }
 0x294   : > { %v2638_v58 = vmul.f32 %v4113_v42, %v5101_v4 }
 0x295   : > { %v1510_v23 = vadd.f32 %v1446_v1, %v965_v29  ;;  %v2815_v61 = vsel %vm1686_vm0, %v2671_v31, 0.0  ;;  %v2402_v1 = vadd.f32 %v5081_v54, %v2401_v27 }
 0x296   : > { %2816 = vadd.xlane.f32.xlu0 %v2815_v61  ;;  %v2716_v35 = vsel %vm1686_vm0, %v2638_v58, 0.0 }
 0x297   : > { %v4115_v60 = vpop.eup %4114  ;;  %v1578_v13 = vadd.f32 %v5087_v6, %v1510_v23 }
 0x298   : > { %v4117_v17 = vpop.eup %4116  ;;  %3748 = vmatmul.msk.f32.gmra.mxu1 %vm1686_vm0, %v4115_v60  ;;  %928 = vperm.xlu2 %3922, %v923_v30  }
 0x299   : > { %4118 = vtanh.f32 %v1578_v13  ;;  %1227 = vperm.xlu1 %3923, %v1222_v33   ;;  %3714 = vmatmul.msk.f32.gmra.mxu2 %vm1686_vm0, %v4117_v17  ;;  %v5240_v63 = vpop.f32.mrf.mxu3 }
 0x29a   : > { %v721_v24 = vpop.permute.xlu2 %720 }
 0x29c   : > { %v2043_v22 = vpop.f32.mrf.mxu2 }
 0x29d   : > { %v2044_v3 = vadd.f32 %v5234_v8, %v2043_v22 }
 0x29e   : > { %2717 = vadd.xlane.f32.xlu0 %v2716_v35 }
 0x29f   : > { %v4119_v49 = vpop.eup %4118  ;;  %4120 = vtanh.f32 %v2044_v3 }
 0x2a0   : > { %3925 = vset.pattern.permute.xlu2 %v4507_v11  ;;  %3686 = vmatmul.msk.f32.gmra.mxu0 %vm1686_vm0, %v4119_v49 }
 0x2a1   : > { %3924 = vset.pattern.permute.xlu1 %v4507_v11 }
 0x2a2   : > { %v903_v25 = vpop.permute.xlu2 %902 }
 0x2a3   : > { %v714_v34 = vpop.permute.xlu1 %713  ;;  %v995_v38 = vmul.f32 %v5075_v0, %v903_v25 }
 0x2a4   : > { %v966_v62 = vmul.f32 %v5075_v0, %v714_v34  ;;  %v2046_v2 = vpop.f32.mrf.mxu2 }
 0x2a5   : > { %v4121_v20 = vpop.eup %4120  ;;  %v2047_v36 = vadd.f32 %v5234_v8, %v2046_v2  ;;  %v2480_v2 = vadd.f32 %v5081_v54, %v5139_v15 }
 0x2a6   : > { %v1511_v19 = vadd.f32 %v1447_v16, %v966_v62  ;;  %v1962_v46 = vpop.f32.mrf.mxu0  ;;  %3776 = vmatmul.msk.f32.gmra.mxu3 %vm1686_vm0, %v4121_v20 }
 0x2a7   : > { %4122 = vtanh.f32 %v2047_v36  ;;  %v1963_v12 = vadd.f32 %v5234_v8, %v1962_v46  ;;  %v2375_v36 = vadd.f32 %v5081_v54, %v5110_v48  ;;  %v5284_v46 = vpop.permute.xlu0 %733 }
 0x2a8   : > { %v1579_v11 = vadd.f32 %v5087_v6, %v1511_v19  ;;  %1233 = vperm.xlu2 %3925, %v1222_v33   ;;  %v967_v33 = vmul.f32 %v5075_v0, %v721_v24 }
 0x2a9   : > { %752 = vperm.xlu1 %3924, %v741_v56   ;;  %v5251_v21 = vpop.f32.mrf.mxu3  ;;  %v1476_v56 = vmul.f32 %v5068_v57, %v1384_v7 }
 0x2aa   : > { %4124 = vtanh.f32 %v1579_v11 }
 0x2ab   : > { %4126 = vtanh.f32 %v1963_v12  ;;  %v1377_v39 = vpop.permute.xlu1 %1376  ;;  %v1540_v5 = vadd.f32 %v1476_v56, %v995_v38  ;;  %v2378_v38 = vadd.f32 %v5081_v54, %v5122_v37 }
 0x2ac   : > { %v1475_v40 = vmul.f32 %v5068_v57, %v1377_v39 }
 0x2ad   : > { %v4123_v18 = vpop.eup %4122  ;;  %v1608_v31 = vadd.f32 %v5087_v6, %v1540_v5 }
 0x2ae   : > { %v1539_v52 = vadd.f32 %v1475_v40, %v994_v53  ;;  %3777 = vmatmul.msk.f32.gmra.mxu3 %vm1686_vm0, %v4123_v18 }
 0x2af   : > { %v1397_v37 = vpop.permute.xlu0 %1396 }
 0x2b0   : > { %v4125_v50 = vpop.eup %4124  ;;  %v1607_v32 = vadd.f32 %v5087_v6, %v1539_v52  ;;  %1415 = vperm.xlu2 %3925, %v6182_v26  }
 0x2b1   : > { %v4127_v55 = vpop.eup %4126  ;;  %934 = vperm.xlu1 %3924, %v923_v30   ;;  %v2500_v28 = vpop.f32.mrf.mxu3  ;;  %3687 = vmatmul.msk.f32.gmra.mxu0 %vm1686_vm0, %v4125_v50  ;;  %v2486_v50 = vadd.f32 %v5081_v54, %v5186_v41 }
 0x2b2   : > { %4128 = vtanh.f32 %v1607_v32  ;;  %3749 = vmatmul.msk.f32.gmra.mxu1 %vm1686_vm0, %v4127_v55  ;;  %v2501_v29 = vadd.f32 %v5081_v54, %v2500_v28  ;;  %v1208_v3 = vpop.permute.xlu2 %1207 }
 0x2b3   : > { %v1449_v12 = vmul.f32 %v5068_v57, %v1208_v3 }
 0x2b4   : > { %4130 = vtanh.f32 %v2501_v29 }
 0x2b5   : > { %v1965_v23 = vpop.f32.mrf.mxu0  ;;  %4132 = vtanh.f32 %v2402_v1 }
 0x2b6   : > { %v1966_v59 = vadd.f32 %v5234_v8, %v1965_v23  ;;  %v2381_v23 = vadd.f32 %v5081_v54, %v5133_v9 }
 0x2b8   : > { %v4129_v61 = vpop.eup %4128  ;;  %4134 = vtanh.f32 %v1966_v59 }
 0x2b9   : > { %3715 = vmatmul.msk.f32.gmra.mxu2 %vm1686_vm0, %v4129_v61  ;;  %4136 = vtanh.f32 %v1608_v31  ;;  %v1478_v61 = vmul.f32 %v5068_v57, %v1397_v37 }
 0x2ba   : > { %v4131_v30 = vpop.eup %4130  ;;  %v1390_v19 = vpop.permute.xlu2 %1389 }
 0x2bb   : > { %v2674_v42 = vmul.f32 %v4131_v30, %v5101_v4  ;;  %v1202_v60 = vpop.permute.xlu1 %1201  ;;  %v4133_v17 = vpop.eup %4132  ;;  %v1477_v56 = vmul.f32 %v5068_v57, %v1390_v19  ;;  %v969_v19 = vmul.f32 %v5075_v0, %v5284_v46 }
 0x2bc   : > { %v1448_v10 = vmul.f32 %v5068_v57, %v1202_v60  ;;  %v2641_v24 = vmul.f32 %v4133_v17, %v5101_v4  ;;  %v2387_v60 = vadd.f32 %v5081_v54, %v5181_v51  ;;  %v5312_v17 = vpop.f32.mrf.mxu1 }
 0x2bd   : > { %v2824_v13 = vsel %vm1686_vm0, %v2674_v42, 0.0 }
 0x2be   : > { %2825 = vadd.xlane.f32.xlu0 %v2824_v13  ;;  %v1512_v58 = vadd.f32 %v1448_v10, %v967_v33  ;;  %v4135_v22 = vpop.eup %4134  ;;  %v2725_v62 = vsel %vm1686_vm0, %v2641_v24, 0.0 }
 0x2bf   : > { %v4137_v35 = vpop.eup %4136  ;;  %3750 = vmatmul.msk.f32.gmra.mxu1 %vm1686_vm0, %v4135_v22 }
 0x2c0   : > { %v1580_v49 = vadd.f32 %v5087_v6, %v1512_v58 }
 0x2c1   : > { %3716 = vmatmul.msk.f32.gmra.mxu2 %vm1686_vm0, %v4137_v35  ;;  %v2489_v35 = vadd.f32 %v5081_v54, %v5198_v44 }
 0x2c2   : > { %4138 = vtanh.f32 %v1580_v49 }
 0x2c3   : > { %v2049_v16 = vpop.f32.mrf.mxu2 }
 0x2c4   : > { %v2050_v34 = vadd.f32 %v5234_v8, %v2049_v16 }
 0x2c6   : > { %4140 = vtanh.f32 %v2050_v34  ;;  %2726 = vadd.xlane.f32.xlu0 %v2725_v62  ;;  %v2495_v62 = vadd.f32 %v5081_v54, %v5240_v63  ;;  %v5329_v63 = vpop.f32.mrf.mxu1 }
 0x2c7   : > { %4142 = vtanh.f32 %v2480_v2 }
 0x2c8   : > { %v4139_v20 = vpop.eup %4138  ;;  %4144 = vtanh.f32 %v2375_v36 }
 0x2c9   : > { %3688 = vmatmul.msk.f32.gmra.mxu0 %vm1686_vm0, %v4139_v20 }
 0x2ca   : > { %v916_v26 = vpop.permute.xlu2 %915 }
 0x2cb   : > { %v727_v11 = vpop.permute.xlu1 %726  ;;  %v2052_v25 = vpop.f32.mrf.mxu2  ;;  %v997_v1 = vmul.f32 %v5075_v0, %v916_v26 }
 0x2cc   : > { %v4141_v39 = vpop.eup %4140  ;;  %v968_v53 = vmul.f32 %v5075_v0, %v727_v11  ;;  %v2053_v40 = vadd.f32 %v5234_v8, %v2052_v25 }
 0x2cd   : > { %v1968_v15 = vpop.f32.mrf.mxu0  ;;  %3778 = vmatmul.msk.f32.gmra.mxu3 %vm1686_vm0, %v4141_v39  ;;  %v4143_v7 = vpop.eup %4142  ;;  %v1542_v10 = vadd.f32 %v1478_v61, %v997_v1 }
 0x2ce   : > { %v1513_v48 = vadd.f32 %v1449_v12, %v968_v53  ;;  %4146 = vtanh.f32 %v2053_v40  ;;  %v1969_v18 = vadd.f32 %v5234_v8, %v1968_v15  ;;  %v4145_v32 = vpop.eup %4144  ;;  %v2667_v5 = vmul.f32 %v4143_v7, %v5101_v4 }
 0x2cf   : > { %v2632_v31 = vmul.f32 %v4145_v32, %v5101_v4  ;;  %v1610_v22 = vadd.f32 %v5087_v6, %v1542_v10  ;;  %v2390_v40 = vadd.f32 %v5081_v54, %v5193_v47 }
 0x2d0   : > { %v1581_v52 = vadd.f32 %v5087_v6, %v1513_v48  ;;  %4148 = vtanh.f32 %v1969_v18  ;;  %v2803_v33 = vsel %vm1686_vm0, %v2667_v5, 0.0 }
 0x2d1   : > { %v2698_v9 = vsel %vm1686_vm0, %v2632_v31, 0.0  ;;  %v2503_v2 = vpop.f32.mrf.mxu3 }
 0x2d2   : > { %4150 = vtanh.f32 %v1581_v52  ;;  %v2396_v52 = vadd.f32 %v5081_v54, %v5229_v14 }
 0x2d3   : > { %4152 = vtanh.f32 %v2378_v38  ;;  %v909_v55 = vpop.permute.xlu1 %908 }
 0x2d4   : > { %v4147_v27 = vpop.eup %4146  ;;  %v996_v28 = vmul.f32 %v5075_v0, %v909_v55  ;;  %4154 = vtanh.f32 %v2486_v50  ;;  %v2498_v55 = vadd.f32 %v5081_v54, %v5251_v21 }
 0x2d5   : > { %3779 = vmatmul.msk.f32.gmra.mxu3 %vm1686_vm0, %v4147_v27 }
 0x2d6   : > { %v4149_v29 = vpop.eup %4148  ;;  %v1541_v41 = vadd.f32 %v1477_v56, %v996_v28  ;;  %v2410_v28 = vpop.f32.mrf.mxu1 }
 0x2d7   : > { %3751 = vmatmul.msk.f32.gmra.mxu1 %vm1686_vm0, %v4149_v29  ;;  %v2504_v29 = vadd.f32 %v5081_v54, %v2503_v2  ;;  %v2411_v61 = vadd.f32 %v5081_v54, %v2410_v28 }
 0x2d8   : > { %v4151_v59 = vpop.eup %4150  ;;  %v1609_v30 = vadd.f32 %v5087_v6, %v1541_v41 }
 0x2d9   : > { %v4153_v42 = vpop.eup %4152  ;;  %2804 = vadd.xlane.f32.xlu2 %v2803_v33  ;;  %3689 = vmatmul.msk.f32.gmra.mxu0 %vm1686_vm0, %v4151_v59 }
 0x2da   : > { %4156 = vtanh.f32 %v1609_v30  ;;  %v4155_v13 = vpop.eup %4154  ;;  %v2633_v58 = vmul.f32 %v4153_v42, %v5101_v4  ;;  %v1221_v15 = vpop.permute.xlu2 %1220 }
 0x2db   : > { %4158 = vtanh.f32 %v2381_v23  ;;  %2699 = vadd.xlane.f32.xlu1 %v2698_v9  ;;  %v2669_v3 = vmul.f32 %v4155_v13, %v5101_v4  ;;  %v1451_v31 = vmul.f32 %v5068_v57, %v1221_v15 }
 0x2dc   : > { %4160 = vtanh.f32 %v2387_v60  ;;  %v2701_v16 = vsel %vm1686_vm0, %v2633_v58, 0.0 }
 0x2dd   : > { %v1971_v51 = vpop.f32.mrf.mxu0  ;;  %v2809_v20 = vsel %vm1686_vm0, %v2669_v3, 0.0 }
 0x2de   : > { %v1972_v49 = vadd.f32 %v5234_v8, %v1971_v51  ;;  %v2399_v51 = vadd.f32 %v5081_v54, %v5247_v45 }
 0x2e0   : > { %v4157_v24 = vpop.eup %4156  ;;  %4162 = vtanh.f32 %v1972_v49 }
 0x2e1   : > { %v4159_v34 = vpop.eup %4158  ;;  %3717 = vmatmul.msk.f32.gmra.mxu2 %vm1686_vm0, %v4157_v24  ;;  %2702 = vadd.xlane.f32.xlu2 %v2701_v16  ;;  %4164 = vtanh.f32 %v1610_v22  ;;  %v5339_v7 = vpop.f32.mrf.mxu3  ;;  %v2405_v16 = vadd.f32 %v5081_v54, %v5312_v17 }
 0x2e2   : > { %v4161_v36 = vpop.eup %4160  ;;  %4166 = vtanh.f32 %v2489_v35  ;;  %v2634_v11 = vmul.f32 %v4159_v34, %v5101_v4 }
 0x2e3   : > { %v1215_v44 = vpop.permute.xlu1 %1214  ;;  %2810 = vadd.xlane.f32.xlu1 %v2809_v20  ;;  %4168 = vtanh.f32 %v2495_v62  ;;  %v2636_v39 = vmul.f32 %v4161_v36, %v5101_v4 }
 0x2e4   : > { %v1450_v12 = vmul.f32 %v5068_v57, %v1215_v44  ;;  %v2704_v46 = vsel %vm1686_vm0, %v2634_v11, 0.0 }
 0x2e5   : > { %v2710_v47 = vsel %vm1686_vm0, %v2636_v39, 0.0 }
 0x2e6   : > { %v1514_v25 = vadd.f32 %v1450_v12, %v969_v19  ;;  %v4163_v53 = vpop.eup %4162  ;;  %v998_v19 = vmul.f32 %v5075_v0, %v4701_v43  ;;  %v2507_v43 = vadd.f32 %v5081_v54, %v5339_v7 }
 0x2e7   : > { %v4165_v48 = vpop.eup %4164  ;;  %3752 = vmatmul.msk.f32.gmra.mxu1 %vm1686_vm0, %v4163_v53 }
 0x2e8   : > { %v1582_v18 = vadd.f32 %v5087_v6, %v1514_v25  ;;  %v4167_v38 = vpop.eup %4166  ;;  %v1410_v25 = vpop.permute.xlu0 %1409 }
 0x2e9   : > { %3718 = vmatmul.msk.f32.gmra.mxu2 %vm1686_vm0, %v4165_v48  ;;  %2705 = vadd.xlane.f32.xlu2 %v2704_v46  ;;  %v4169_v50 = vpop.eup %4168  ;;  %v2670_v26 = vmul.f32 %v4167_v38, %v5101_v4  ;;  %v1480_v46 = vmul.f32 %v5068_v57, %v1410_v25 }
 0x2ea   : > { %4170 = vtanh.f32 %v1582_v18  ;;  %v2672_v14 = vmul.f32 %v4169_v50, %v5101_v4  ;;  %v5350_v1 = vpop.permute.xlu2 %746 }
 0x2eb   : > { %4172 = vtanh.f32 %v2390_v40  ;;  %2711 = vadd.xlane.f32.xlu1 %v2710_v47  ;;  %v2055_v56 = vpop.f32.mrf.mxu2  ;;  %v2812_v5 = vsel %vm1686_vm0, %v2670_v26, 0.0 }
 0x2ec   : > { %v2056_v32 = vadd.f32 %v5234_v8, %v2055_v56  ;;  %4174 = vtanh.f32 %v2396_v52  ;;  %v2818_v59 = vsel %vm1686_vm0, %v2672_v14, 0.0 }
 0x2ee   : > { %4176 = vtanh.f32 %v2056_v32 }
 0x2ef   : > { %4178 = vtanh.f32 %v2498_v55  ;;  %v2413_v55 = vpop.f32.mrf.mxu1 }
 0x2f0   : > { %v4171_v27 = vpop.eup %4170 }
 0x2f1   : > { %v4173_v37 = vpop.eup %4172  ;;  %3690 = vmatmul.msk.f32.gmra.mxu0 %vm1686_vm0, %v4171_v27  ;;  %v2509_v41 = vpop.f32.mrf.mxu3  ;;  %2813 = vadd.xlane.f32.xlu2 %v2812_v5 }
 0x2f2   : > { %v2510_v23 = vadd.f32 %v5081_v54, %v2509_v41  ;;  %v4175_v21 = vpop.eup %4174  ;;  %v2637_v9 = vmul.f32 %v4173_v37, %v5101_v4  ;;  %v929_v20 = vpop.permute.xlu2 %928 }
 0x2f3   : > { %v740_v30 = vpop.permute.xlu1 %739  ;;  %2819 = vadd.xlane.f32.xlu1 %v2818_v59  ;;  %v2058_v33 = vpop.f32.mrf.mxu2  ;;  %v2639_v22 = vmul.f32 %v4175_v21, %v5101_v4  ;;  %v999_v40 = vmul.f32 %v5075_v0, %v929_v20 }
 0x2f4   : > { %v4177_v42 = vpop.eup %4176  ;;  %4180 = vtanh.f32 %v2510_v23  ;;  %v970_v60 = vmul.f32 %v5075_v0, %v740_v30  ;;  %v2059_v10 = vadd.f32 %v5234_v8, %v2058_v33  ;;  %v2713_v49 = vsel %vm1686_vm0, %v2637_v9, 0.0  ;;  %v4359_v33 = vld [vmem:[%s6153_s1 + $0x1] ss:$0 sm:$0xff] }
 0x2f5   : > { %4182 = vtanh.f32 %v2504_v29  ;;  %3780 = vmatmul.msk.f32.gmra.mxu3 %vm1686_vm0, %v4177_v42  ;;  %v1974_v13 = vpop.f32.mrf.mxu0  ;;  %v4179_v24 = vpop.eup %4178  ;;  %v2719_v62 = vsel %vm1686_vm0, %v2639_v22, 0.0  ;;  %v1544_v56 = vadd.f32 %v1480_v46, %v999_v40 }
 0x2f6   : > { %v1515_v58 = vadd.f32 %v1451_v31, %v970_v60  ;;  %4184 = vtanh.f32 %v2059_v10  ;;  %v1975_v3 = vadd.f32 %v5234_v8, %v1974_v13  ;;  %v2673_v17 = vmul.f32 %v4179_v24, %v5101_v4  ;;  %v5418_v60 = vld [vmem:[%s6157_s5] ss:$0 sm:$0xff] }
 0x2f7   : > { %4186 = vtanh.f32 %v2411_v61  ;;  %v1612_v27 = vadd.f32 %v5087_v6, %v1544_v56 }
 0x2f8   : > { %v1583_v35 = vadd.f32 %v5087_v6, %v1515_v58  ;;  %4188 = vtanh.f32 %v1975_v3  ;;  %v2821_v52 = vsel %vm1686_vm0, %v2673_v17, 0.0  ;;  %v4361_v3 = vld [vmem:[%s6154_s2] ss:$0 sm:$0xff] }
 0x2f9   : > { %2714 = vadd.xlane.f32.xlu2 %v2713_v49 }
 0x2fa   : > { %v4181_v34 = vpop.eup %4180  ;;  %4190 = vtanh.f32 %v1583_v35 }
 0x2fb   : > { %v4183_v2 = vpop.eup %4182  ;;  %4192 = vtanh.f32 %v2399_v51  ;;  %v1403_v36 = vpop.permute.xlu1 %1402  ;;  %2720 = vadd.xlane.f32.xlu1 %v2719_v62  ;;  %v2677_v45 = vmul.f32 %v4181_v34, %v5101_v4 }
 0x2fc   : > { %v4185_v44 = vpop.eup %4184  ;;  %v1479_v12 = vmul.f32 %v5068_v57, %v1403_v36  ;;  %4194 = vtanh.f32 %v2405_v16  ;;  %v2675_v48 = vmul.f32 %v4183_v2, %v5101_v4  ;;  %v2416_v62 = vpop.f32.mrf.mxu1 }
 0x2fd   : > { %v4187_v11 = vpop.eup %4186  ;;  %v2833_v39 = vsel %vm1686_vm0, %v2677_v45, 0.0  ;;  %3781 = vmatmul.msk.f32.gmra.mxu3 %vm1686_vm0, %v4185_v44 }
 0x2fe   : > { %v4189_v53 = vpop.eup %4188  ;;  %v1543_v15 = vadd.f32 %v1479_v12, %v998_v19  ;;  %2834 = vadd.xlane.f32.xlu0 %v2833_v39  ;;  %v2644_v0 = vmul.f32 %v4187_v11, %v5101_v4  ;;  %v2827_v32 = vsel %vm1686_vm0, %v2675_v48, 0.0 }
 0x2ff   : > { %3753 = vmatmul.msk.f32.gmra.mxu1 %vm1686_vm0, %v4189_v53 }
 0x300   : > { %v4191_v18 = vpop.eup %4190  ;;  %v1611_v38 = vadd.f32 %v5087_v6, %v1543_v15  ;;  %v2734_v14 = vsel %vm1686_vm0, %v2644_v0, 0.0 }
 0x301   : > { %v4193_v47 = vpop.eup %4192  ;;  %v2512_v50 = vpop.f32.mrf.mxu3  ;;  %2822 = vadd.xlane.f32.xlu2 %v2821_v52  ;;  %3691 = vmatmul.msk.f32.gmra.mxu0 %vm1686_vm0, %v4191_v18 }
 0x302   : > { %4196 = vtanh.f32 %v1611_v38  ;;  %v2513_v7 = vadd.f32 %v5081_v54, %v2512_v50  ;;  %v4195_v26 = vpop.eup %4194  ;;  %v2640_v57 = vmul.f32 %v4193_v47, %v5101_v4  ;;  %v5396_v54 = vld [vmem:[%s6156_s4 + $0x1] ss:$0 sm:$0xff]  ;;  %v1234_v36 = vpop.permute.xlu2 %1233 }
 0x303   : > { %4198 = vtanh.f32 %v2507_v43  ;;  %2828 = vadd.xlane.f32.xlu1 %v2827_v32  ;;  %v2642_v28 = vmul.f32 %v4195_v26, %v5101_v4  ;;  %v2408_v37 = vadd.f32 %v5396_v54, %v5329_v63  ;;  %v2414_v6 = vadd.f32 %v5396_v54, %v2413_v55  ;;  %v5407_v4 = vld [vmem:[%s6153_s1] ss:$0 sm:$0xff] }
 0x304   : > { %4200 = vtanh.f32 %v2513_v7  ;;  %v2722_v31 = vsel %vm1686_vm0, %v2640_v57, 0.0  ;;  %v971_v63 = vmul.f32 %v5407_v4, %v5350_v1  ;;  %v2417_v44 = vadd.f32 %v5396_v54, %v2416_v62 }
 0x305   : > { %v1977_v5 = vpop.f32.mrf.mxu0  ;;  %v2728_v59 = vsel %vm1686_vm0, %v2642_v28, 0.0  ;;  %v1453_v11 = vmul.f32 %v4359_v33, %v1234_v36 }
 0x306   : > { %2735 = vadd.xlane.f32.xlu0 %v2734_v14  ;;  %v1978_v29 = vadd.f32 %v5234_v8, %v1977_v5 }
 0x308   : > { %v4197_v41 = vpop.eup %4196  ;;  %4202 = vtanh.f32 %v1978_v29 }
 0x309   : > { %v4199_v23 = vpop.eup %4198  ;;  %3719 = vmatmul.msk.f32.gmra.mxu2 %vm1686_vm0, %v4197_v41  ;;  %2723 = vadd.xlane.f32.xlu2 %v2722_v31  ;;  %4204 = vtanh.f32 %v1612_v27  ;;  %v2515_v30 = vpop.f32.mrf.mxu3 }
 0x30a   : > { %v4201_v21 = vpop.eup %4200  ;;  %4206 = vtanh.f32 %v2408_v37  ;;  %v2676_v1 = vmul.f32 %v5418_v60, %v4199_v23  ;;  %v2516_v58 = vadd.f32 %v5396_v54, %v2515_v30  ;;  %v1416_v52 = vpop.permute.xlu2 %1415  ;;  %v4390_v37 = vmov 0  }
 0x30b   : > { %2729 = vadd.xlane.f32.xlu1 %v2728_v59  ;;  %v1228_v61 = vpop.permute.xlu1 %1227  ;;  %4208 = vtanh.f32 %v2414_v6  ;;  %v2678_v9 = vmul.f32 %v5418_v60, %v4201_v21  ;;  %v1481_v56 = vmul.f32 %v4359_v33, %v1416_v52  ;;  %3926 = vset.pattern.permute.xlu0 %v4390_v37 }
 0x30c   : > { %v1452_v42 = vmul.f32 %v4359_v33, %v1228_v61  ;;  %v2830_v35 = vsel %vm1686_vm0, %v2676_v1, 0.0  ;;  %3928 = vset.pattern.permute.xlu2 %v4390_v37  ;;  %3927 = vset.pattern.permute.xlu1 %v4390_v37 }
 0x30d   : > { %v2836_v24 = vsel %vm1686_vm0, %v2678_v9, 0.0 }
 0x30e   : > { %v1516_v10 = vadd.f32 %v1452_v42, %v971_v63  ;;  %v4203_v13 = vpop.eup %4202 }
 0x30f   : > { %v4205_v22 = vpop.eup %4204  ;;  %3754 = vmatmul.msk.f32.gmra.mxu1 %vm1686_vm0, %v4203_v13  ;;  %v5459_v13 = vld [vmem:[#allocation2] ss:$0 sm:$0xff] }
 0x310   : > { %v1584_v51 = vadd.f32 %v4361_v3, %v1516_v10  ;;  %v4207_v49 = vpop.eup %4206 }
 0x311   : > { %3720 = vmatmul.msk.f32.gmra.mxu2 %vm1686_vm0, %v4205_v22  ;;  %2831 = vadd.xlane.f32.xlu2 %v2830_v35  ;;  %v4209_v16 = vpop.eup %4208  ;;  %v2643_v20 = vmul.f32 %v5418_v60, %v4207_v49 }
 0x312   : > { %4210 = vtanh.f32 %v1584_v51  ;;  %v2645_v45 = vmul.f32 %v5418_v60, %v4209_v16 }
 0x313   : > { %4212 = vtanh.f32 %v2516_v58  ;;  %2837 = vadd.xlane.f32.xlu1 %v2836_v24  ;;  %v2061_v34 = vpop.f32.mrf.mxu2  ;;  %v2731_v12 = vsel %vm1686_vm0, %v2643_v20, 0.0 }
 0x314   : > { %v2062_v2 = vadd.f32 %v5234_v8, %v2061_v34  ;;  %v2737_v25 = vsel %vm1686_vm0, %v2645_v45, 0.0 }
 0x316   : > { %4214 = vtanh.f32 %v2062_v2 }
 0x317   : > { %4216 = vtanh.f32 %v2417_v44 }
 0x318   : > { %v4211_v19 = vpop.eup %4210 }
 0x319   : > { %v4213_v17 = vpop.eup %4212  ;;  %2732 = vadd.xlane.f32.xlu2 %v2731_v12  ;;  %3692 = vmatmul.msk.f32.gmra.mxu0 %vm1686_vm0, %v4211_v19 }
 0x31a   : > { %v2679_v48 = vmul.f32 %v5418_v60, %v4213_v17  ;;  %v2419_v17 = vpop.f32.mrf.mxu1 }
 0x31b   : > { %v753_v39 = vpop.permute.xlu1 %752  ;;  %2738 = vadd.xlane.f32.xlu1 %v2737_v25 }
 0x31c   : > { %v4215_v53 = vpop.eup %4214  ;;  %v972_v40 = vmul.f32 %v5407_v4, %v753_v39  ;;  %v2064_v15 = vpop.f32.mrf.mxu2  ;;  %v2839_v50 = vsel %vm1686_vm0, %v2679_v48, 0.0 }
 0x31d   : > { %v2065_v43 = vadd.f32 %v5234_v8, %v2064_v15  ;;  %v1980_v18 = vpop.f32.mrf.mxu0  ;;  %3782 = vmatmul.msk.f32.gmra.mxu3 %vm1686_vm0, %v4215_v53  ;;  %v4217_v0 = vpop.eup %4216 }
 0x31e   : > { %v1517_v46 = vadd.f32 %v1453_v11, %v972_v40  ;;  %v1981_v38 = vadd.f32 %v5234_v8, %v1980_v18  ;;  %v2646_v26 = vmul.f32 %v5418_v60, %v4217_v0  ;;  %v2420_v11 = vadd.f32 %v5396_v54, %v2419_v17 }
 0x31f   : > { %4218 = vtanh.f32 %v2065_v43 }
 0x320   : > { %v1585_v47 = vadd.f32 %v4361_v3, %v1517_v46  ;;  %4220 = vtanh.f32 %v1981_v38  ;;  %v2740_v5 = vsel %vm1686_vm0, %v2646_v26, 0.0 }
 0x321   : > { %2840 = vadd.xlane.f32.xlu2 %v2839_v50 }
 0x322   : > { %4222 = vtanh.f32 %v1585_v47  ;;  %v2422_v43 = vpop.f32.mrf.mxu1 }
 0x323   : > { %v935_v7 = vpop.permute.xlu1 %934  ;;  %v2423_v47 = vadd.f32 %v5396_v54, %v2422_v43 }
 0x324   : > { %v1000_v32 = vmul.f32 %v5407_v4, %v935_v7 }
 0x325   : > { %v4219_v57 = vpop.eup %4218 }
 0x326   : > { %v4221_v14 = vpop.eup %4220  ;;  %v1545_v55 = vadd.f32 %v1481_v56, %v1000_v32  ;;  %3783 = vmatmul.msk.f32.gmra.mxu3 %vm1686_vm0, %v4219_v57 }
 0x327   : > { %3755 = vmatmul.msk.f32.gmra.mxu1 %vm1686_vm0, %v4221_v14 }
 0x328   : > { %v4223_v27 = vpop.eup %4222  ;;  %v1613_v28 = vadd.f32 %v4361_v3, %v1545_v55  ;;  %v2697_v3 = vpop.xlane.xlu0 %2696 }
 0x329   : > { %v2518_v29 = vpop.f32.mrf.mxu3  ;;  %2741 = vadd.xlane.f32.xlu2 %v2740_v5  ;;  %3693 = vmatmul.msk.f32.gmra.mxu0 %vm1686_vm0, %v4223_v27  ;;  %v2891_v24 = vadd.f32 %v5459_v13, %v2697_v3 }
 0x32a   : > { %4224 = vtanh.f32 %v1613_v28  ;;  %v2519_v41 = vadd.f32 %v5396_v54, %v2518_v29 }
 0x32c   : > { %4226 = vtanh.f32 %v2519_v41 }
 0x32e   : > { %v1983_v31 = vpop.f32.mrf.mxu0 }
 0x32f   : > { %v1984_v23 = vadd.f32 %v5234_v8, %v1983_v31 }
 0x330   : > { %v4225_v6 = vpop.eup %4224  ;;  %v2808_v55 = vpop.xlane.xlu0 %2807 }
 0x331   : > { %3721 = vmatmul.msk.f32.gmra.mxu2 %vm1686_vm0, %v4225_v6  ;;  %v2521_v4 = vpop.f32.mrf.mxu3  ;;  %4228 = vtanh.f32 %v1984_v23 }
 0x332   : > { %v4227_v63 = vpop.eup %4226  ;;  %v2522_v59 = vadd.f32 %v5396_v54, %v2521_v4 }
 0x333   : > { %v2680_v21 = vmul.f32 %v5418_v60, %v4227_v63 }
 0x334   : > { %4230 = vtanh.f32 %v2522_v59 }
 0x335   : > { %v2842_v61 = vsel %vm1686_vm0, %v2680_v21, 0.0 }
 0x336   : > { %2843 = vadd.xlane.f32.xlu0 %v2842_v61 }
 0x337   : > { %v4229_v30 = vpop.eup %4228 }
 0x338   : > { %3756 = vmatmul.msk.f32.gmra.mxu1 %vm1686_vm0, %v4229_v30  ;;  %v5491_v4 = vpop.xlane.xlu0 %2708 }
 0x33a   : > { %v4231_v33 = vpop.eup %4230 }
 0x33b   : > { %v2681_v42 = vmul.f32 %v5418_v60, %v4231_v33 }
 0x33c   : > { %v2067_v1 = vpop.f32.mrf.mxu2 }
 0x33d   : > { %v2068_v10 = vadd.f32 %v5234_v8, %v2067_v1  ;;  %v2845_v9 = vsel %vm1686_vm0, %v2681_v42, 0.0  ;;  %v2928_v1 = vadd.f32 %v5459_v13, %v2808_v55 }
 0x33e   : > { %2846 = vadd.xlane.f32.xlu1 %v2845_v9 }
 0x33f   : > { %4232 = vtanh.f32 %v2068_v10 }
 0x340   : > { %v5496_v61 = vpop.xlane.xlu0 %2816 }
 0x344   : > { %v2070_v58 = vpop.f32.mrf.mxu2 }
 0x345   : > { %v4233_v22 = vpop.eup %4232  ;;  %v2071_v51 = vadd.f32 %v5234_v8, %v2070_v58 }
 0x346   : > { %3784 = vmatmul.msk.f32.gmra.mxu3 %vm1686_vm0, %v4233_v22  ;;  %v1986_v35 = vpop.f32.mrf.mxu0 }
 0x347   : > { %4234 = vtanh.f32 %v2071_v51  ;;  %v1987_v49 = vadd.f32 %v5234_v8, %v1986_v35 }
 0x348   : > { %v5504_v58 = vpop.xlane.xlu0 %2717 }
 0x349   : > { %4236 = vtanh.f32 %v1987_v49 }
 0x34a   : > { %3026 = vperm.xlu0 %3926, %v2891_v24  }
 0x34c   : > { %v2805_v16 = vpop.xlane.xlu2 %2804 }
 0x34d   : > { %v4235_v34 = vpop.eup %4234  ;;  %v2927_v62 = vadd.f32 %v5459_v13, %v2805_v16 }
 0x34e   : > { %3785 = vmatmul.msk.f32.gmra.mxu3 %vm1686_vm0, %v4235_v34  ;;  %v2700_v20 = vpop.xlane.xlu1 %2699  ;;  %v2425_v34 = vpop.f32.mrf.mxu1 }
 0x34f   : > { %v4237_v2 = vpop.eup %4236  ;;  %3134 = vperm.xlu2 %3928, %v2927_v62   ;;  %v2892_v36 = vadd.f32 %v5459_v13, %v2700_v20 }
 0x350   : > { %3757 = vmatmul.msk.f32.gmra.mxu1 %vm1686_vm0, %v4237_v2  ;;  %v2524_v19 = vpop.f32.mrf.mxu3  ;;  %v5510_v62 = vpop.xlane.xlu0 %2825 }
 0x351   : > { %v2525_v53 = vadd.f32 %v5396_v54, %v2524_v19 }
 0x354   : > { %v2703_v30 = vpop.xlane.xlu2 %2702 }
 0x355   : > { %v2893_v10 = vadd.f32 %v5459_v13, %v2703_v30 }
 0x356   : > { %v1989_v45 = vpop.f32.mrf.mxu0  ;;  %v2811_v7 = vpop.xlane.xlu1 %2810 }
 0x357   : > { %3029 = vperm.xlu1 %3927, %v2892_v36   ;;  %v1990_v44 = vadd.f32 %v5234_v8, %v1989_v45  ;;  %v2428_v19 = vpop.f32.mrf.mxu1 }
 0x358   : > { %v2527_v40 = vpop.f32.mrf.mxu3 }
 0x359   : > { %4238 = vtanh.f32 %v1990_v44  ;;  %v2528_v15 = vadd.f32 %v5396_v54, %v2527_v40  ;;  %v2929_v44 = vadd.f32 %v5459_v13, %v2811_v7  ;;  %v2429_v40 = vadd.f32 %v5396_v54, %v2428_v19 }
 0x35a   : > { %4240 = vtanh.f32 %v2420_v11 }
 0x35c   : > { %v2706_v51 = vpop.xlane.xlu2 %2705 }
 0x35d   : > { %v2894_v16 = vadd.f32 %v5459_v13, %v2706_v51 }
 0x35e   : > { %v5488_v31 = vpop.xlane.xlu1 %2711 }
 0x35f   : > { %v4239_v12 = vpop.eup %4238  ;;  %v2896_v19 = vadd.f32 %v5459_v13, %v5488_v31 }
 0x360   : > { %3758 = vmatmul.msk.f32.gmra.mxu1 %vm1686_vm0, %v4239_v12  ;;  %v4241_v48 = vpop.eup %4240  ;;  %v5517_v12 = vpop.xlane.xlu0 %2726 }
 0x361   : > { %v2647_v0 = vmul.f32 %v5418_v60, %v4241_v48 }
 0x363   : > { %v2743_v32 = vsel %vm1686_vm0, %v2647_v0, 0.0 }
 0x364   : > { %v2073_v25 = vpop.f32.mrf.mxu2 }
 0x365   : > { %v2074_v39 = vadd.f32 %v5234_v8, %v2073_v25 }
 0x366   : > { %v5494_v21 = vpop.xlane.xlu1 %2819 }
 0x367   : > { %4242 = vtanh.f32 %v2074_v39  ;;  %v2426_v39 = vadd.f32 %v5396_v54, %v2425_v34  ;;  %v2898_v34 = vadd.f32 %v5459_v13, %v5504_v58 }
 0x368   : > { %4244 = vtanh.f32 %v2525_v53 }
 0x369   : > { %4246 = vtanh.f32 %v2528_v15  ;;  %v5526_v15 = vpop.xlane.xlu2 %2813 }
 0x36c   : > { %v2076_v18 = vpop.f32.mrf.mxu2 }
 0x36d   : > { %v4243_v46 = vpop.eup %4242  ;;  %v2077_v38 = vadd.f32 %v5234_v8, %v2076_v18 }
 0x36e   : > { %v1992_v52 = vpop.f32.mrf.mxu0  ;;  %3786 = vmatmul.msk.f32.gmra.mxu3 %vm1686_vm0, %v4243_v46  ;;  %v4245_v56 = vpop.eup %4244 }
 0x36f   : > { %4248 = vtanh.f32 %v2077_v38  ;;  %v1993_v50 = vadd.f32 %v5234_v8, %v1992_v52  ;;  %v2682_v26 = vmul.f32 %v5418_v60, %v4245_v56  ;;  %v4247_v57 = vpop.eup %4246  ;;  %v5502_v9 = vpop.xlane.xlu1 %2720  ;;  %v4362_v56 = vld [vmem:[%s6156_s4] ss:$0 sm:$0xff] }
 0x370   : > { %v2683_v5 = vmul.f32 %v5418_v60, %v4247_v57 }
 0x371   : > { %4250 = vtanh.f32 %v1993_v50  ;;  %v2848_v28 = vsel %vm1686_vm0, %v2682_v26, 0.0  ;;  %v5528_v48 = vpop.xlane.xlu0 %2834 }
 0x372   : > { %4252 = vtanh.f32 %v2423_v47  ;;  %v2851_v29 = vsel %vm1686_vm0, %v2683_v5, 0.0 }
 0x374   : > { %2744 = vadd.xlane.f32.xlu0 %v2743_v32 }
 0x375   : > { %v4249_v14 = vpop.eup %4248 }
 0x376   : > { %3787 = vmatmul.msk.f32.gmra.mxu3 %vm1686_vm0, %v4249_v14 }
 0x377   : > { %v4251_v27 = vpop.eup %4250  ;;  %v5512_v2 = vpop.xlane.xlu1 %2828 }
 0x378   : > { %3759 = vmatmul.msk.f32.gmra.mxu1 %vm1686_vm0, %v4251_v27  ;;  %2849 = vadd.xlane.f32.xlu2 %v2848_v28  ;;  %v4253_v37 = vpop.eup %4252  ;;  %v2530_v20 = vpop.f32.mrf.mxu3 }
 0x379   : > { %v2648_v41 = vmul.f32 %v5418_v60, %v4253_v37  ;;  %v5541_v26 = vpop.xlane.xlu0 %2735  ;;  %v2531_v28 = vadd.f32 %v5396_v54, %v2530_v20  ;;  %v2431_v20 = vpop.f32.mrf.mxu1 }
 0x37b   : > { %v2746_v63 = vsel %vm1686_vm0, %v2648_v41, 0.0 }
 0x37c   : > { %2852 = vadd.xlane.f32.xlu0 %v2851_v29 }
 0x37e   : > { %v1995_v23 = vpop.f32.mrf.mxu0 }
 0x37f   : > { %v1996_v6 = vadd.f32 %v5234_v8, %v1995_v23  ;;  %v5519_v17 = vpop.xlane.xlu1 %2729 }
 0x380   : > { %v5521_v11 = vpop.f32.mrf.mxu3 }
 0x381   : > { %2747 = vadd.xlane.f32.xlu1 %v2746_v63  ;;  %4254 = vtanh.f32 %v1996_v6 }
 0x387   : > { %v4255_v59 = vpop.eup %4254  ;;  %v5530_v46 = vpop.xlane.xlu1 %2837 }
 0x388   : > { %3760 = vmatmul.msk.f32.gmra.mxu1 %vm1686_vm0, %v4255_v59  ;;  %v6183_v59 = vlaneseq }
 0x38a   : > { %v5558_v30 = vand.u32 127, %v6183_v59 }
 0x38c   : > { %v2079_v33 = vpop.f32.mrf.mxu2 }
 0x38d   : > { %v2080_v42 = vadd.f32 %v5234_v8, %v2079_v33  ;;  %v5561_v33 = vadd.s32 4294967288, %v5558_v30 }
 0x38f   : > { %4256 = vtanh.f32 %v2080_v42  ;;  %v5544_v14 = vpop.xlane.xlu1 %2738 }
 0x390   : > { %3137 = vperm.xlu0 %3926, %v2928_v1   ;;  %3032 = vperm.xlu2 %3928, %v2893_v10  }
 0x394   : > { %v2082_v22 = vpop.f32.mrf.mxu2 }
 0x395   : > { %v4257_v3 = vpop.eup %4256  ;;  %v2083_v35 = vadd.f32 %v5234_v8, %v2082_v22 }
 0x396   : > { %3788 = vmatmul.msk.f32.gmra.mxu3 %vm1686_vm0, %v4257_v3  ;;  %v1998_v49 = vpop.f32.mrf.mxu0 }
 0x397   : > { %4258 = vtanh.f32 %v2083_v35  ;;  %v1999_v24 = vadd.f32 %v5234_v8, %v1998_v49 }
 0x399   : > { %4260 = vtanh.f32 %v1999_v24  ;;  %v2895_v24 = vadd.f32 %v5459_v13, %v5491_v4  ;;  %v2534_v4 = vadd.f32 %v5396_v54, %v5521_v11 }
 0x39a   : > { %3035 = vperm.xlu1 %3927, %v2894_v16  }
 0x39d   : > { %v4259_v36 = vpop.eup %4258 }
 0x39e   : > { %3789 = vmatmul.msk.f32.gmra.mxu3 %vm1686_vm0, %v4259_v36 }
 0x39f   : > { %v4261_v45 = vpop.eup %4260 }
 0x3a0   : > { %3761 = vmatmul.msk.f32.gmra.mxu1 %vm1686_vm0, %v4261_v45  ;;  %v2536_v43 = vpop.f32.mrf.mxu3 }
 0x3a1   : > { %v2537_v38 = vadd.f32 %v5396_v54, %v2536_v43 }
 0x3a2   : > { %3140 = vperm.xlu1 %3927, %v2929_v44   ;;  %v2434_v44 = vpop.f32.mrf.mxu1 }
 0x3a6   : > { %v2001_v25 = vpop.f32.mrf.mxu0 }
 0x3a7   : > { %v2002_v53 = vadd.f32 %v5234_v8, %v2001_v25  ;;  %v5534_v8 = vpop.xlane.xlu2 %2714 }
 0x3a9   : > { %4262 = vtanh.f32 %v2002_v53  ;;  %v5552_v41 = vpop.xlane.xlu0 %2843  ;;  %v2539_v45 = vpop.f32.mrf.mxu3 }
 0x3aa   : > { %4264 = vtanh.f32 %v2426_v39  ;;  %v2437_v53 = vpop.f32.mrf.mxu1 }
 0x3ab   : > { %4266 = vtanh.f32 %v2429_v40  ;;  %v2438_v58 = vadd.f32 %v5396_v54, %v2437_v53 }
 0x3ac   : > { %4268 = vtanh.f32 %v2537_v38 }
 0x3af   : > { %v4263_v18 = vpop.eup %4262  ;;  %v5549_v29 = vpop.xlane.xlu2 %2822 }
 0x3b0   : > { %3762 = vmatmul.msk.f32.gmra.mxu1 %vm1686_vm0, %v4263_v18  ;;  %v4265_v52 = vpop.eup %4264 }
 0x3b1   : > { %v4267_v47 = vpop.eup %4266  ;;  %v2649_v0 = vmul.f32 %v5418_v60, %v4265_v52  ;;  %v5554_v23 = vpop.xlane.xlu1 %2846 }
 0x3b2   : > { %v2650_v32 = vmul.f32 %v5418_v60, %v4267_v47  ;;  %v4269_v27 = vpop.eup %4268 }
 0x3b3   : > { %v2749_v57 = vsel %vm1686_vm0, %v2649_v0, 0.0  ;;  %v2686_v37 = vmul.f32 %v5418_v60, %v4269_v27 }
 0x3b4   : > { %v2085_v50 = vpop.f32.mrf.mxu2  ;;  %v2752_v55 = vsel %vm1686_vm0, %v2650_v32, 0.0 }
 0x3b5   : > { %v2086_v7 = vadd.f32 %v4362_v56, %v2085_v50  ;;  %v2860_v6 = vsel %vm1686_vm0, %v2686_v37, 0.0 }
 0x3b7   : > { %4270 = vtanh.f32 %v2086_v7  ;;  %v5564_v10 = vpop.xlane.xlu2 %2723  ;;  %v2432_v7 = vadd.f32 %v5396_v54, %v2431_v20 }
 0x3b8   : > { %4272 = vtanh.f32 %v2531_v28 }
 0x3b9   : > { %2750 = vadd.xlane.f32.xlu2 %v2749_v57  ;;  %4274 = vtanh.f32 %v2534_v4 }
 0x3ba   : > { %2753 = vadd.xlane.f32.xlu0 %v2752_v55  ;;  %4276 = vtanh.f32 %v2438_v58 }
 0x3bc   : > { %v3027_v42 = vpop.permute.xlu0 %3026 }
 0x3bd   : > { %v4271_v5 = vpop.eup %4270  ;;  %v3219_v3 = vperm.slane %v3027_v42, %v5558_v30 }
 0x3be   : > { %3790 = vmatmul.msk.f32.gmra.mxu3 %vm1686_vm0, %v4271_v5  ;;  %v4273_v63 = vpop.eup %4272 }
 0x3bf   : > { %v2684_v1 = vmul.f32 %v5418_v60, %v4273_v63  ;;  %v5572_v16 = vpop.xlane.xlu2 %2831  ;;  %v4275_v18 = vpop.eup %4274  ;;  %v2540_v63 = vadd.f32 %v5396_v54, %v2539_v45 }
 0x3c0   : > { %v2685_v31 = vmul.f32 %v5418_v60, %v4275_v18  ;;  %v4277_v47 = vpop.eup %4276  ;;  %v2901_v18 = vadd.f32 %v5459_v13, %v5517_v12 }
 0x3c1   : > { %v2854_v35 = vsel %vm1686_vm0, %v2684_v1, 0.0  ;;  %v2653_v56 = vmul.f32 %v5418_v60, %v4277_v47 }
 0x3c2   : > { %2861 = vadd.xlane.f32.xlu0 %v2860_v6  ;;  %v2857_v11 = vsel %vm1686_vm0, %v2685_v31, 0.0 }
 0x3c3   : > { %v2761_v32 = vsel %vm1686_vm0, %v2653_v56, 0.0 }
 0x3c7   : > { %v5576_v36 = vpop.xlane.xlu2 %2732 }
 0x3c9   : > { %v3030_v22 = vpop.permute.xlu1 %3029  ;;  %v2542_v39 = vpop.f32.mrf.mxu3 }
 0x3ca   : > { %v3221_v51 = vperm.slane %v3030_v22, %v5561_v33 }
 0x3cc   : > { %v3223_v49 = vsel %vm3222_vm1, %v3221_v51, %v3219_v3  ;;  %2855 = vadd.xlane.f32.xlu1 %v2854_v35 }
 0x3cf   : > { %v5580_v25 = vpop.xlane.xlu2 %2840 }
 0x3d1   : > { %3038 = vperm.xlu2 %3928, %v2895_v24   ;;  %v2545_v38 = vpop.f32.mrf.mxu3 }
 0x3d2   : > { %v2546_v52 = vadd.f32 %v5396_v54, %v2545_v38  ;;  %v2440_v38 = vpop.f32.mrf.mxu1 }
 0x3d4   : > { %4278 = vtanh.f32 %v2546_v52  ;;  %v2435_v52 = vadd.f32 %v5396_v54, %v2434_v44 }
 0x3d5   : > { %4280 = vtanh.f32 %v2432_v7 }
 0x3d6   : > { %3047 = vperm.xlu0 %3926, %v2898_v34   ;;  %4282 = vtanh.f32 %v2540_v63 }
 0x3d7   : > { %v5585_v40 = vpop.xlane.xlu2 %2741  ;;  %4284 = vtanh.f32 %v2435_v52 }
 0x3da   : > { %v4279_v57 = vpop.eup %4278  ;;  %v2443_v47 = vpop.f32.mrf.mxu1 }
 0x3db   : > { %v2689_v37 = vmul.f32 %v5418_v60, %v4279_v57  ;;  %v4281_v42 = vpop.eup %4280 }
 0x3dc   : > { %v2651_v3 = vmul.f32 %v5418_v60, %v4281_v42  ;;  %v4283_v20 = vpop.eup %4282 }
 0x3dd   : > { %v2869_v1 = vsel %vm1686_vm0, %v2689_v37, 0.0  ;;  %v2687_v53 = vmul.f32 %v5418_v60, %v4283_v20  ;;  %v4285_v56 = vpop.eup %4284 }
 0x3de   : > { %v2755_v34 = vsel %vm1686_vm0, %v2651_v3, 0.0  ;;  %v2652_v12 = vmul.f32 %v5418_v60, %v4285_v56 }
 0x3df   : > { %v3135_v50 = vpop.permute.xlu2 %3134  ;;  %v2863_v58 = vsel %vm1686_vm0, %v2687_v53, 0.0 }
 0x3e0   : > { %v3275_v28 = vperm.slane %v3135_v50, %v5558_v30  ;;  %v2543_v50 = vadd.f32 %v5396_v54, %v2542_v39  ;;  %v2758_v44 = vsel %vm1686_vm0, %v2652_v12, 0.0 }
 0x3e2   : > { %4286 = vtanh.f32 %v2543_v50  ;;  %v2904_v50 = vadd.f32 %v5459_v13, %v5541_v26 }
 0x3e5   : > { %3041 = vperm.xlu1 %3927, %v2896_v19   ;;  %v2897_v19 = vadd.f32 %v5459_v13, %v5534_v8  ;;  %v2899_v8 = vadd.f32 %v5459_v13, %v5502_v9 }
 0x3e7   : > { %v5587_v43 = vpop.xlane.xlu0 %2744 }
 0x3e8   : > { %v4287_v57 = vpop.eup %4286 }
 0x3eb   : > { %v5597_v55 = vpop.xlane.xlu2 %2849 }
 0x3ef   : > { %v5592_v0 = vpop.xlane.xlu0 %2852 }
 0x3f1   : > { %v2548_v31 = vpop.f32.mrf.mxu3 }
 0x3f3   : > { %v3033_v22 = vpop.permute.xlu2 %3032 }
 0x3f4   : > { %v5602_v6 = vpop.xlane.xlu1 %2747  ;;  %v3224_v35 = vperm.slane %v3033_v22, %v5558_v30 }
 0x3fa   : > { %2858 = vadd.xlane.f32.xlu2 %v2857_v11  ;;  %v5625_v11 = vpop.f32.mrf.mxu3 }
 0x400   : > { %2762 = vadd.xlane.f32.xlu0 %v2761_v32 }
 0x402   : > { %v3138_v27 = vpop.permute.xlu0 %3137 }
 0x403   : > { %v3276_v5 = vperm.slane %v3138_v27, %v5561_v33 }
 0x405   : > { %v5606_v59 = vsel %vm3222_vm1, %v3276_v5, %v3275_v28  ;;  %v2688_v28 = vmul.f32 %v5418_v60, %v4287_v57 }
 0x407   : > { %v2866_v5 = vsel %vm1686_vm0, %v2688_v28, 0.0 }
 0x408   : > { %2870 = vadd.xlane.f32.xlu0 %v2869_v1  ;;  %v2441_v1 = vadd.f32 %v5396_v54, %v2440_v38 }
 0x40c   : > { %v3036_v51 = vpop.permute.xlu1 %3035 }
 0x40d   : > { %v3225_v24 = vperm.slane %v3036_v51, %v5561_v33 }
 0x40f   : > { %v3226_v45 = vsel %vm3222_vm1, %v3225_v24, %v3224_v35  ;;  %2756 = vadd.xlane.f32.xlu1 %v2755_v34  ;;  %v2549_v24 = vadd.f32 %v5396_v54, %v2548_v31 }
 0x410   : > { %v3318_v4 = vsel %vm3317_vm2, %v3226_v45, %v3223_v49  ;;  %v2446_v49 = vpop.f32.mrf.mxu1 }
 0x411   : > { %v2447_v7 = vadd.f32 %v5396_v54, %v2446_v49 }
 0x412   : > { %3044 = vperm.xlu2 %3928, %v2897_v19  }
 0x413   : > { %4288 = vtanh.f32 %v2447_v7 }
 0x414   : > { %v5635_v42 = vpop.permute.xlu1 %3140 }
 0x417   : > { %2864 = vadd.xlane.f32.xlu1 %v2863_v58 }
 0x419   : > { %v2554_v32 = vpop.f32.mrf.mxu3  ;;  %v4289_v27 = vpop.eup %4288 }
 0x41a   : > { %v2555_v9 = vadd.f32 %v5396_v54, %v2554_v32  ;;  %v2656_v39 = vmul.f32 %v5418_v60, %v4289_v27 }
 0x41c   : > { %3056 = vperm.xlu0 %3926, %v2901_v18   ;;  %4290 = vtanh.f32 %v2555_v9  ;;  %v2770_v37 = vsel %vm1686_vm0, %v2656_v39, 0.0  ;;  %v2900_v18 = vadd.f32 %v5459_v13, %v5564_v10  ;;  %v2449_v10 = vpop.f32.mrf.mxu1 }
 0x41d   : > { %4292 = vtanh.f32 %v2441_v1 }
 0x41e   : > { %4294 = vtanh.f32 %v2549_v24 }
 0x422   : > { %v4291_v63 = vpop.eup %4290 }
 0x423   : > { %v2692_v22 = vmul.f32 %v5418_v60, %v4291_v63  ;;  %v4293_v34 = vpop.eup %4292 }
 0x424   : > { %v2654_v45 = vmul.f32 %v5418_v60, %v4293_v34  ;;  %v4295_v52 = vpop.eup %4294 }
 0x425   : > { %v2878_v51 = vsel %vm1686_vm0, %v2692_v22, 0.0  ;;  %v2690_v49 = vmul.f32 %v5418_v60, %v4295_v52 }
 0x426   : > { %v2764_v38 = vsel %vm1686_vm0, %v2654_v45, 0.0 }
 0x427   : > { %v2872_v7 = vsel %vm1686_vm0, %v2690_v49, 0.0 }
 0x42c   : > { %v5639_v3 = vpop.xlane.xlu2 %2750 }
 0x42d   : > { %v5656_v56 = vpop.xlane.xlu0 %2753 }
 0x430   : > { %3050 = vperm.xlu1 %3927, %v2899_v8  }
 0x434   : > { %v3039_v20 = vpop.permute.xlu2 %3038 }
 0x435   : > { %v3227_v53 = vperm.slane %v3039_v20, %v5558_v30  ;;  %v5659_v12 = vpop.xlane.xlu0 %2861 }
 0x43b   : > { %2759 = vadd.xlane.f32.xlu2 %v2758_v44  ;;  %v2452_v44 = vpop.f32.mrf.mxu1 }
 0x43f   : > { %v5642_v35 = vpop.xlane.xlu1 %2855 }
 0x443   : > { %2867 = vadd.xlane.f32.xlu2 %v2866_v5  ;;  %v2455_v27 = vpop.f32.mrf.mxu1  ;;  %v2902_v5 = vadd.f32 %v5459_v13, %v5519_v17 }
 0x446   : > { %2771 = vadd.xlane.f32.xlu0 %v2770_v37  ;;  %v2456_v37 = vadd.f32 %v5396_v54, %v2455_v27 }
 0x448   : > { %v3048_v57 = vpop.permute.xlu0 %3047 }
 0x449   : > { %v3231_v26 = vperm.slane %v3048_v57, %v5561_v33  ;;  %v2453_v57 = vadd.f32 %v5396_v54, %v2452_v44 }
 0x44e   : > { %2879 = vadd.xlane.f32.xlu0 %v2878_v51 }
 0x457   : > { %v3042_v19 = vpop.permute.xlu1 %3041 }
 0x458   : > { %v3228_v58 = vperm.slane %v3042_v19, %v5561_v33 }
 0x45a   : > { %v3229_v8 = vsel %vm3222_vm1, %v3228_v58, %v3227_v53  ;;  %2765 = vadd.xlane.f32.xlu1 %v2764_v38  ;;  %v2557_v53 = vpop.f32.mrf.mxu3  ;;  %v2931_v38 = vadd.f32 %v5459_v13, %v5496_v61 }
 0x45b   : > { %v3320_v31 = vsel %vm3319_vm3, %v3229_v8, %v3318_v4  ;;  %3053 = vperm.xlu2 %3928, %v2900_v18   ;;  %v2444_v4 = vadd.f32 %v5396_v54, %v2443_v47  ;;  %v2552_v47 = vadd.f32 %v5396_v54, %v5625_v11  ;;  %v2450_v11 = vadd.f32 %v5396_v54, %v2449_v10  ;;  %v2458_v10 = vpop.f32.mrf.mxu1 }
 0x45c   : > { %v2558_v58 = vadd.f32 %v5396_v54, %v2557_v53  ;;  %v2903_v8 = vadd.f32 %v5459_v13, %v5576_v36 }
 0x45d   : > { %4296 = vtanh.f32 %v2444_v4 }
 0x45e   : > { %4298 = vtanh.f32 %v2456_v37 }
 0x45f   : > { %4300 = vtanh.f32 %v2552_v47 }
 0x460   : > { %4302 = vtanh.f32 %v2450_v11 }
 0x461   : > { %4304 = vtanh.f32 %v2558_v58 }
 0x462   : > { %2873 = vadd.xlane.f32.xlu1 %v2872_v7  ;;  %3065 = vperm.xlu0 %3926, %v2904_v50   ;;  %v2907_v50 = vadd.f32 %v5459_v13, %v5587_v43  ;;  %4306 = vtanh.f32 %v2453_v57  ;;  %v2560_v27 = vpop.f32.mrf.mxu3  ;;  %v2905_v43 = vadd.f32 %v5459_v13, %v5544_v14 }
 0x463   : > { %v4297_v1 = vpop.eup %4296  ;;  %v2461_v4 = vpop.f32.mrf.mxu1 }
 0x464   : > { %v2655_v22 = vmul.f32 %v5418_v60, %v4297_v1  ;;  %v4299_v51 = vpop.eup %4298 }
 0x465   : > { %v4301_v34 = vpop.eup %4300  ;;  %v2659_v17 = vmul.f32 %v5418_v60, %v4299_v51  ;;  %v2459_v51 = vadd.f32 %v5396_v54, %v2458_v10 }
 0x466   : > { %v2767_v24 = vsel %vm1686_vm0, %v2655_v22, 0.0  ;;  %v2691_v20 = vmul.f32 %v5418_v60, %v4301_v34  ;;  %v4303_v18 = vpop.eup %4302 }
 0x467   : > { %v2779_v45 = vsel %vm1686_vm0, %v2659_v17, 0.0  ;;  %v2657_v52 = vmul.f32 %v5418_v60, %v4303_v18  ;;  %v4305_v49 = vpop.eup %4304  ;;  %v2906_v17 = vadd.f32 %v5459_v13, %v5585_v40  ;;  %v2932_v40 = vadd.f32 %v5459_v13, %v5494_v21 }
 0x468   : > { %v2875_v19 = vsel %vm1686_vm0, %v2691_v20, 0.0  ;;  %v2693_v7 = vmul.f32 %v5418_v60, %v4305_v49 }
 0x46a   : > { %v2881_v61 = vsel %vm1686_vm0, %v2693_v7, 0.0 }
 0x46d   : > { %v5661_v32 = vpop.xlane.xlu2 %2858 }
 0x473   : > { %v2763_v49 = vpop.xlane.xlu0 %2762 }
 0x475   : > { %v3045_v9 = vpop.permute.xlu2 %3044 }
 0x476   : > { %v3230_v28 = vperm.slane %v3045_v9, %v5558_v30  ;;  %v2464_v9 = vpop.f32.mrf.mxu1 }
 0x477   : > { %v2465_v36 = vadd.f32 %v5396_v54, %v2464_v9 }
 0x478   : > { %v3232_v39 = vsel %vm3222_vm1, %v3231_v26, %v3230_v28  ;;  %v2561_v26 = vadd.f32 %v5396_v54, %v2560_v27  ;;  %v4307_v28 = vpop.eup %4306 }
 0x479   : > { %v5671_v63 = vsel %vm3321_vm4, %v3232_v39, %v3320_v31  ;;  %v2773_v31 = vsel %vm1686_vm0, %v2657_v52, 0.0  ;;  %4308 = vtanh.f32 %v2465_v36  ;;  %v2658_v39 = vmul.f32 %v5418_v60, %v4307_v28 }
 0x47a   : > { %4310 = vtanh.f32 %v2561_v26  ;;  %v5742_v26 = vld [vmem:[%s6156_s4 + $0x1] ss:$0 sm:$0xff] }
 0x47b   : > { %3059 = vperm.xlu1 %3927, %v2902_v5   ;;  %v2776_v37 = vsel %vm1686_vm0, %v2658_v39, 0.0  ;;  %4312 = vtanh.f32 %v2459_v51  ;;  %v5733_v57 = vpop.xlane.xlu0 %2870  ;;  %v2930_v39 = vadd.f32 %v5459_v13, %v5526_v15  ;;  %v2955_v15 = vld [vmem:[%s6159_s7] sm:$0xff] }
 0x47e   : > { %v2467_v11 = vpop.f32.mrf.mxu1 }
 0x47f   : > { %v4309_v5 = vpop.eup %4308 }
 0x480   : > { %v4311_v44 = vpop.eup %4310  ;;  %v2662_v47 = vmul.f32 %v5418_v60, %v4309_v5 }
 0x481   : > { %v2694_v1 = vmul.f32 %v5418_v60, %v4311_v44  ;;  %v4313_v34 = vpop.eup %4312  ;;  %v2940_v44 = vadd.f32 %v5459_v13, %v5552_v41  ;;  %v5768_v41 = vld [vmem:[%s6157_s5] ss:$0 sm:$0xff] }
 0x482   : > { %v2788_v22 = vsel %vm1686_vm0, %v2662_v47, 0.0  ;;  %v2660_v20 = vmul.f32 %v5418_v60, %v4313_v34 }
 0x483   : > { %v2884_v14 = vsel %vm1686_vm0, %v2694_v1, 0.0  ;;  %v2956_v1 = vld [vmem:[%s6159_s7 + $0x8] sm:$0xff] }
 0x484   : > { %2768 = vadd.xlane.f32.xlu2 %v2767_v24  ;;  %v2934_v24 = vadd.f32 %v5459_v13, %v5510_v62  ;;  %v2462_v62 = vadd.f32 %v5396_v54, %v2461_v4  ;;  %3375 = vmatpush.msrb.mxu2 %v2956_v1 }
 0x486   : > { %v5713_v53 = vpop.f32.mrf.mxu1  ;;  %4314 = vtanh.f32 %v2462_v62  ;;  %3376 = vmatpush.msrb.mxu2 %v2955_v15 }
 0x48c   : > { %2780 = vadd.xlane.f32.xlu0 %v2779_v45  ;;  %2876 = vadd.xlane.f32.xlu2 %v2875_v19  ;;  %v2910_v45 = vadd.f32 %v5459_v13, %v5656_v56  ;;  %v2782_v19 = vsel %vm1686_vm0, %v2660_v20, 0.0  ;;  %v4315_v52 = vpop.eup %4314 }
 0x48e   : > { %v2473_v58 = vpop.f32.mrf.mxu1  ;;  %v3057_v36 = vpop.permute.xlu0 %3056 }
 0x48f   : > { %v2474_v18 = vadd.f32 %v5396_v54, %v2473_v58 }
 0x491   : > { %4316 = vtanh.f32 %v2474_v18  ;;  %v2946_v18 = vadd.f32 %v5459_v13, %v5659_v12 }
 0x4a0   : > { %3146 = vperm.xlu0 %3926, %v2931_v38   ;;  %v5719_v38 = vpop.xlane.xlu1 %2756 }
 0x4a4   : > { %3062 = vperm.xlu2 %3928, %v2903_v8   ;;  %v2908_v8 = vadd.f32 %v5459_v13, %v5602_v6 }
 0x4a5   : > { %2774 = vadd.xlane.f32.xlu1 %v2773_v31  ;;  %v4317_v31 = vpop.eup %4316 }
 0x4a6   : > { %v2665_v21 = vmul.f32 %v5418_v60, %v4317_v31 }
 0x4a8   : > { %3074 = vperm.xlu0 %3926, %v2907_v50   ;;  %v2661_v50 = vmul.f32 %v5418_v60, %v4315_v52  ;;  %v5726_v54 = vpop.xlane.xlu1 %2864  ;;  %v2797_v10 = vsel %vm1686_vm0, %v2665_v21, 0.0  ;;  %v2468_v60 = vadd.f32 %v5742_v26, %v2467_v11 }
 0x4aa   : > { %4318 = vtanh.f32 %v2468_v60 }
 0x4ad   : > { %2882 = vadd.xlane.f32.xlu1 %v2881_v61  ;;  %v2785_v61 = vsel %vm1686_vm0, %v2661_v50, 0.0 }
 0x4ae   : > { %v5721_v56 = vpop.xlane.xlu2 %2759 }
 0x4b0   : > { %v3051_v4 = vpop.permute.xlu1 %3050  ;;  %v4319_v47 = vpop.eup %4318 }
 0x4b1   : > { %v2663_v51 = vmul.f32 %v5768_v41, %v4319_v47  ;;  %v3233_v31 = vperm.slane %v3051_v4, %v5558_v30 }
 0x4b3   : > { %v2791_v34 = vsel %vm1686_vm0, %v2663_v51, 0.0 }
 0x4b6   : > { %v5728_v7 = vpop.xlane.xlu2 %2867 }
 0x4b9   : > { %v2772_v28 = vpop.xlane.xlu0 %2771 }
 0x4be   : > { %v3054_v6 = vpop.permute.xlu2 %3053 }
 0x4c6   : > { %3068 = vperm.xlu1 %3927, %v2905_v43   ;;  %v2937_v43 = vadd.f32 %v5459_v13, %v5528_v48  ;;  %v2909_v48 = vadd.f32 %v5459_v13, %v5639_v3  ;;  %v2913_v3 = vadd.f32 %v5459_v13, %v2763_v49  ;;  %v3236_v49 = vperm.slane %v3057_v36, %v5558_v30 }
 0x4cd   : > { %2777 = vadd.xlane.f32.xlu2 %v2776_v37  ;;  %v5735_v9 = vpop.xlane.xlu1 %2765 }
 0x4d2   : > { %2789 = vadd.xlane.f32.xlu0 %v2788_v22 }
 0x4d5   : > { %2885 = vadd.xlane.f32.xlu2 %v2884_v14  ;;  %v5749_v5 = vpop.xlane.xlu1 %2873  ;;  %v5763_v14 = vpop.xlane.xlu0 %2879 }
 0x4dd   : > { %v3066_v20 = vpop.permute.xlu0 %3065 }
 0x4de   : > { %v3240_v12 = vperm.slane %v3066_v20, %v5561_v33 }
 0x4e6   : > { %3155 = vperm.xlu0 %3926, %v2934_v24  }
 0x4ed   : > { %3071 = vperm.xlu2 %3928, %v2906_v17   ;;  %v3060_v22 = vpop.permute.xlu1 %3059 }
 0x4ee   : > { %3083 = vperm.xlu0 %3926, %v2910_v45   ;;  %v3237_v52 = vperm.slane %v3060_v22, %v5561_v33 }
 0x4f0   : > { %2783 = vadd.xlane.f32.xlu1 %v2782_v19  ;;  %v2943_v19 = vadd.f32 %v5459_v13, %v5592_v0 }
 0x4f7   : > { %v5737_v27 = vpop.xlane.xlu2 %2768 }
 0x4ff   : > { %v5751_v37 = vpop.xlane.xlu2 %2876  ;;  %v2781_v11 = vpop.xlane.xlu0 %2780 }
 0x507   : > { %v3063_v24 = vpop.permute.xlu2 %3062 }
 0x508   : > { %v3239_v0 = vperm.slane %v3063_v24, %v5558_v30 }
 0x509   : > { %3149 = vperm.xlu1 %3927, %v2932_v40   ;;  %v3234_v40 = vperm.slane %v3054_v6, %v5561_v33 }
 0x50b   : > { %v3235_v21 = vsel %vm3222_vm1, %v3234_v40, %v3233_v31 }
 0x50c   : > { %v3324_v6 = vsel %vm3323_vm5, %v3235_v21, %v5671_v63 }
 0x511   : > { %3077 = vperm.xlu1 %3927, %v2908_v8   ;;  %v2471_v8 = vadd.f32 %v5742_v26, %v5713_v53  ;;  %v3241_v53 = vsel %vm3222_vm1, %v3240_v12, %v3239_v0 }
 0x512   : > { %v3147_v50 = vpop.permute.xlu0 %3146 }
 0x513   : > { %4320 = vtanh.f32 %v2471_v8  ;;  %v2936_v8 = vadd.f32 %v5459_v13, %v5572_v16 }
 0x516   : > { %2786 = vadd.xlane.f32.xlu2 %v2785_v61 }
 0x518   : > { %2798 = vadd.xlane.f32.xlu0 %v2797_v10  ;;  %v5773_v17 = vpop.xlane.xlu1 %2774  ;;  %v3238_v10 = vsel %vm3222_vm1, %v3237_v52, %v3236_v49  ;;  %v3281_v52 = vperm.slane %v3147_v50, %v5558_v30 }
 0x51a   : > { %v3075_v22 = vpop.permute.xlu0 %3074 }
 0x51b   : > { %v3245_v49 = vperm.slane %v3075_v22, %v5558_v30 }
 0x520   : > { %v5779_v58 = vpop.xlane.xlu1 %2882 }
 0x52c   : > { %3164 = vperm.xlu0 %3926, %v2937_v43   ;;  %v2935_v43 = vadd.f32 %v5459_v13, %v5512_v2  ;;  %v2938_v2 = vadd.f32 %v5459_v13, %v5530_v46  ;;  %v2933_v46 = vadd.f32 %v5459_v13, %v5549_v29 }
 0x52e   : > { %3143 = vperm.xlu2 %3928, %v2930_v39   ;;  %v2916_v39 = vadd.f32 %v5459_v13, %v2772_v28  ;;  %v2919_v28 = vadd.f32 %v5459_v13, %v2781_v11 }
 0x534   : > { %3173 = vperm.xlu0 %3926, %v2940_v44   ;;  %v3326_v44 = vsel %vm3325_vm6, %v3238_v10, %v3324_v6 }
 0x535   : > { %v3328_v47 = vsel %vm3327_vm7, %v3241_v53, %v3326_v44  ;;  %v5836_v53 = vld [vmem:[#allocation2] ss:$0 sm:$0xff] }
 0x536   : > { %3080 = vperm.xlu2 %3928, %v2909_v48   ;;  %v4321_v48 = vpop.eup %4320  ;;  %v2939_v6 = vadd.f32 %v5836_v53, %v5580_v25  ;;  %v2942_v25 = vadd.f32 %v5836_v53, %v5597_v55  ;;  %v2941_v55 = vadd.f32 %v5836_v53, %v5554_v23  ;;  %v2944_v22 = vadd.f32 %v5836_v53, %v5642_v35 }
 0x537   : > { %v2664_v15 = vmul.f32 %v5768_v41, %v4321_v48  ;;  %v2945_v48 = vadd.f32 %v5836_v53, %v5661_v32  ;;  %v2948_v23 = vadd.f32 %v5836_v53, %v5728_v7  ;;  %v3403_v32 = vld [vmem:[%s6161_s9 + $0x48] sm:$0xff]  ;;  %v2914_v35 = vadd.f32 %v5836_v53, %v5735_v9  ;;  %v3398_v9 = vld [vmem:[%s6161_s9 + $0x20] sm:$0xff] }
 0x538   : > { %v3069_v61 = vpop.permute.xlu1 %3068 }
 0x539   : > { %v3242_v36 = vperm.slane %v3069_v61, %v5558_v30  ;;  %v2794_v51 = vsel %vm1686_vm0, %v2664_v15, 0.0  ;;  %v3400_v15 = vld [vmem:[%s6161_s9 + $0x30] sm:$0xff] }
 0x53b   : > { %2792 = vadd.xlane.f32.xlu1 %v2791_v34 }
 0x53c   : > { %3092 = vperm.xlu0 %3926, %v2913_v3   ;;  %v2911_v3 = vadd.f32 %v5459_v13, %v5719_v38 }
 0x540   : > { %v5775_v45 = vpop.xlane.xlu2 %2777 }
 0x541   : > { %v2918_v7 = vadd.f32 %v5836_v53, %v5775_v45  ;;  %v2947_v45 = vadd.f32 %v5836_v53, %v5726_v54  ;;  %v3394_v54 = vld [vmem:[%s6161_s9] sm:$0xff] }
 0x544   : > { %3182 = vperm.xlu0 %3926, %v2943_v19   ;;  %v2476_v19 = vpop.f32.mrf.mxu1 }
 0x545   : > { %v2790_v24 = vpop.xlane.xlu0 %2789  ;;  %v2477_v40 = vadd.f32 %v5742_v26, %v2476_v19  ;;  %v2912_v26 = vadd.f32 %v5459_v13, %v5721_v56  ;;  %v3278_v56 = vperm.slane %v5635_v42, %v5558_v30  ;;  %v2952_v42 = vadd.f32 %v5836_v53, %v5763_v14  ;;  %v3405_v14 = vld [vmem:[%s6161_s9 + $0x58] sm:$0xff]  ;;  %v3395_v19 = vld [vmem:[%s6161_s9 + $0x8] sm:$0xff] }
 0x546   : > { %v2922_v34 = vadd.f32 %v5459_v13, %v2790_v24  ;;  %3427 = vmatpush.msrb.mxu3 %v3405_v14 }
 0x547   : > { %4322 = vtanh.f32 %v2477_v40 }
 0x548   : > { %v5781_v62 = vpop.xlane.xlu2 %2885 }
 0x54c   : > { %3191 = vperm.xlu0 %3926, %v2946_v18  }
 0x54d   : > { %v4323_v50 = vpop.eup %4322 }
 0x54e   : > { %v2666_v16 = vmul.f32 %v5768_v41, %v4323_v50  ;;  %v2949_v41 = vadd.f32 %v5836_v53, %v5733_v57  ;;  %v2915_v57 = vadd.f32 %v5836_v53, %v5737_v27  ;;  %v3404_v27 = vld [vmem:[%s6161_s9 + $0x50] sm:$0xff]  ;;  %v5927_v50 = vld [vmem:[%s6160_s8] ss:$0 sm:$0xff] }
 0x54f   : > { %3428 = vmatpush.msrb.mxu3 %v3404_v27 }
 0x550   : > { %v3072_v4 = vpop.permute.xlu2 %3071 }
 0x551   : > { %v3243_v60 = vperm.slane %v3072_v4, %v5561_v33  ;;  %3429 = vmatpush.msrb.mxu3 %v3403_v32 }
 0x553   : > { %v3244_v1 = vsel %vm3222_vm1, %v3243_v60, %v3242_v36  ;;  %v2800_v36 = vsel %vm1686_vm0, %v2666_v16, 0.0  ;;  %v2951_v16 = vadd.f32 %v5836_v53, %v5751_v37 }
 0x554   : > { %3158 = vperm.xlu1 %3927, %v2935_v43   ;;  %3101 = vperm.xlu0 %3926, %v2916_v39   ;;  %v3330_v63 = vsel %vm3329_vm8, %v3244_v1, %v3328_v47 }
 0x555   : > { %3791 = vmatmul.msk.f32.vlgmr.msrb.gmra.mxu2 %vm3352_vm9, %v3330_v63 }
 0x558   : > { %v5820_v11 = vpop.permute.xlu0 %3155 }
 0x55c   : > { %3167 = vperm.xlu1 %3927, %v2938_v2   ;;  %3110 = vperm.xlu0 %3926, %v2919_v28   ;;  %v3402_v2 = vld [vmem:[%s6161_s9 + $0x40] sm:$0xff]  ;;  %v3401_v28 = vld [vmem:[%s6161_s9 + $0x38] sm:$0xff] }
 0x55d   : > { %3430 = vmatpush.msrb.mxu3 %v3402_v2 }
 0x55f   : > { %2795 = vadd.xlane.f32.xlu2 %v2794_v51  ;;  %3431 = vmatpush.msrb.mxu3 %v3401_v28  ;;  %v3399_v51 = vld [vmem:[%s6161_s9 + $0x28] sm:$0xff] }
 0x560   : > { %v3084_v29 = vpop.permute.xlu0 %3083 }
 0x561   : > { %v3249_v44 = vperm.slane %v3084_v29, %v5561_v33  ;;  %3432 = vmatpush.msrb.mxu3 %v3400_v15 }
 0x563   : > { %v5816_v20 = vpop.xlane.xlu1 %2783  ;;  %3433 = vmatpush.msrb.mxu3 %v3399_v51 }
 0x564   : > { %3086 = vperm.xlu1 %3927, %v2911_v3   ;;  %3119 = vperm.xlu0 %3926, %v2922_v34   ;;  %v3397_v3 = vld [vmem:[%s6161_s9 + $0x18] sm:$0xff]  ;;  %v3396_v34 = vld [vmem:[%s6161_s9 + $0x10] sm:$0xff] }
 0x565   : > { %3434 = vmatpush.msrb.mxu3 %v3398_v9  ;;  %v2953_v9 = vadd.f32 %v5836_v53, %v5779_v58 }
 0x567   : > { %3435 = vmatpush.msrb.mxu3 %v3397_v3 }
 0x569   : > { %3436 = vmatpush.msrb.mxu3 %v3396_v34 }
 0x56b   : > { %3437 = vmatpush.msrb.mxu3 %v3395_v19 }
 0x56d   : > { %3438 = vmatpush.msrb.mxu3 %v3394_v54 }
 0x577   : > { %3152 = vperm.xlu2 %3928, %v2933_v46  }
 0x57b   : > { %v3150_v18 = vpop.permute.xlu1 %3149 }
 0x57c   : > { %v3282_v38 = vperm.slane %v3150_v18, %v5561_v33  ;;  %v2917_v18 = vadd.f32 %v5836_v53, %v5773_v17 }
 0x57e   : > { %v5828_v31 = vsel %vm3222_vm1, %v3282_v38, %v3281_v52  ;;  %v2920_v38 = vadd.f32 %v5836_v53, %v5816_v20 }
 0x57f   : > { %3161 = vperm.xlu2 %3928, %v2936_v8  }
 0x583   : > { %v3078_v0 = vpop.permute.xlu1 %3077 }
 0x584   : > { %v3246_v21 = vperm.slane %v3078_v0, %v5561_v33 }
 0x586   : > { %v3247_v12 = vsel %vm3222_vm1, %v3246_v21, %v3245_v49 }
 0x587   : > { %3089 = vperm.xlu2 %3928, %v2912_v26  }
 0x589   : > { %v2787_v61 = vpop.xlane.xlu2 %2786 }
 0x58a   : > { %v2921_v24 = vadd.f32 %v5836_v53, %v2787_v61 }
 0x58b   : > { %v2799_v10 = vpop.xlane.xlu0 %2798 }
 0x58c   : > { %v2925_v4 = vadd.f32 %v5836_v53, %v2799_v10  ;;  %v3285_v10 = vperm.slane %v5820_v11, %v5561_v33 }
 0x58e   : > { %2801 = vadd.xlane.f32.xlu1 %v2800_v36  ;;  %3128 = vperm.xlu0 %3926, %v2925_v4  }
 0x58f   : > { %3170 = vperm.xlu2 %3928, %v2939_v6  }
 0x591   : > { %v3144_v13 = vpop.permute.xlu2 %3143 }
 0x592   : > { %v3279_v60 = vperm.slane %v3144_v13, %v5561_v33 }
 0x594   : > { %v5848_v43 = vsel %vm3222_vm1, %v3279_v60, %v3278_v56  ;;  %v2954_v56 = vadd.f32 %v5836_v53, %v5781_v62 }
 0x596   : > { %3200 = vperm.xlu0 %3926, %v2949_v41  }
 0x597   : > { %3179 = vperm.xlu2 %3928, %v2942_v25  }
 0x599   : > { %v3081_v39 = vpop.permute.xlu2 %3080 }
 0x59a   : > { %v3248_v47 = vperm.slane %v3081_v39, %v5558_v30 }
 0x59c   : > { %v3250_v1 = vsel %vm3222_vm1, %v3249_v44, %v3248_v47 }
 0x59d   : > { %v5860_v63 = vsel %vm3317_vm2, %v3250_v1, %v3247_v12 }
 0x59e   : > { %3209 = vperm.xlu0 %3926, %v2952_v42   ;;  %v3165_v52 = vpop.permute.xlu0 %3164 }
 0x59f   : > { %3098 = vperm.xlu2 %3928, %v2915_v57   ;;  %v3290_v29 = vperm.slane %v3165_v52, %v5558_v30 }
 0x5a6   : > { %v3174_v25 = vpop.permute.xlu0 %3173 }
 0x5a7   : > { %3176 = vperm.xlu1 %3927, %v2941_v55   ;;  %3188 = vperm.xlu2 %3928, %v2945_v48   ;;  %v3294_v57 = vperm.slane %v3174_v25, %v5561_v33 }
 0x5ae   : > { %v2793_v46 = vpop.xlane.xlu1 %2792  ;;  %v3093_v48 = vpop.permute.xlu0 %3092 }
 0x5af   : > { %3185 = vperm.xlu1 %3927, %v2944_v22   ;;  %3197 = vperm.xlu2 %3928, %v2948_v23   ;;  %v2923_v17 = vadd.f32 %v5836_v53, %v2793_v46 }
 0x5b6   : > { %v3183_v22 = vpop.permute.xlu0 %3182 }
 0x5b7   : > { %3095 = vperm.xlu1 %3927, %v2914_v35   ;;  %3107 = vperm.xlu2 %3928, %v2918_v7   ;;  %v2950_v35 = vadd.f32 %v5836_v53, %v5749_v5  ;;  %v3299_v19 = vperm.slane %v3183_v22, %v5558_v30 }
 0x5be   : > { %v3192_v28 = vpop.permute.xlu0 %3191 }
 0x5bf   : > { %3194 = vperm.xlu1 %3927, %v2947_v45   ;;  %3116 = vperm.xlu2 %3928, %v2921_v24   ;;  %v3303_v7 = vperm.slane %v3192_v28, %v5561_v33  ;;  %v3807_v28 = vld [vmem:[%s6161_s9 + $0xa0] sm:$0xff] }
 0x5c6   : > { %v3159_v40 = vpop.permute.xlu1 %3158 }
 0x5c7   : > { %3104 = vperm.xlu1 %3927, %v2917_v18   ;;  %v3287_v37 = vperm.slane %v3159_v40, %v5558_v30 }
 0x5ce   : > { %v3168_v8 = vpop.permute.xlu1 %3167 }
 0x5cf   : > { %v3291_v0 = vperm.slane %v3168_v8, %v5561_v33  ;;  %3113 = vperm.xlu1 %3927, %v2920_v38   ;;  %v3102_v38 = vpop.permute.xlu0 %3101 }
 0x5d1   : > { %v5920_v49 = vsel %vm3222_vm1, %v3291_v0, %v3290_v29 }
 0x5d2   : > { %v2796_v21 = vpop.xlane.xlu2 %2795 }
 0x5d3   : > { %v2924_v26 = vadd.f32 %v5836_v53, %v2796_v21 }
 0x5d5   : > { %3125 = vperm.xlu2 %3928, %v2924_v26  }
 0x5d6   : > { %v3087_v41 = vpop.permute.xlu1 %3086 }
 0x5d7   : > { %3122 = vperm.xlu1 %3927, %v2923_v17   ;;  %v3251_v44 = vperm.slane %v3087_v41, %v5558_v30 }
 0x5d8   : > { %v3378_v20 = vpop.f32.mrf.mxu2 }
 0x5d9   : > { %v3379_v12 = vadd.f32 %v5927_v50, %v3378_v20  ;;  %v3111_v20 = vpop.permute.xlu0 %3110 }
 0x5da   : > { %v3153_v61 = vpop.permute.xlu2 %3152 }
 0x5db   : > { %4324 = vtanh.f32 %v3379_v12  ;;  %v3284_v4 = vperm.slane %v3153_v61, %v5558_v30 }
 0x5dd   : > { %v5936_v6 = vsel %vm3222_vm1, %v3285_v10, %v3284_v4  ;;  %3206 = vperm.xlu2 %3928, %v2951_v16   ;;  %v3254_v16 = vperm.slane %v3093_v48, %v5558_v30 }
 0x5e1   : > { %v4325_v36 = vpop.eup %4324 }
 0x5e2   : > { %v3162_v13 = vpop.permute.xlu2 %3161  ;;  %3795 = vmatmul.msk.f32.vlgmr.msrb.gmra.mxu3 %vm3410_vm10, %v4325_v36 }
 0x5e3   : > { %v3288_v60 = vperm.slane %v3162_v13, %v5561_v33 }
 0x5e5   : > { %v5944_v11 = vsel %vm3222_vm1, %v3288_v60, %v3287_v37  ;;  %3215 = vperm.xlu2 %3928, %v2954_v56   ;;  %v3258_v37 = vperm.slane %v3102_v38, %v5561_v33  ;;  %v3120_v60 = vpop.permute.xlu0 %3119 }
 0x5ea   : > { %v3090_v39 = vpop.permute.xlu2 %3089 }
 0x5eb   : > { %v3252_v47 = vperm.slane %v3090_v39, %v5561_v33 }
 0x5ed   : > { %v3253_v42 = vsel %vm3222_vm1, %v3252_v47, %v3251_v44  ;;  %v3263_v47 = vperm.slane %v3111_v20, %v5558_v30 }
 0x5ee   : > { %v3332_v62 = vsel %vm3319_vm3, %v3253_v42, %v5860_v63 }
 0x5f2   : > { %v3171_v1 = vpop.permute.xlu2 %3170 }
 0x5f3   : > { %v3293_v55 = vperm.slane %v3171_v1, %v5558_v30 }
 0x5f5   : > { %v3295_v14 = vsel %vm3222_vm1, %v3294_v57, %v3293_v55  ;;  %v3267_v57 = vperm.slane %v3120_v60, %v5561_v33 }
 0x5fa   : > { %v3180_v27 = vpop.permute.xlu2 %3179 }
 0x5fb   : > { %v3297_v24 = vperm.slane %v3180_v27, %v5561_v33 }
 0x601   : > { %v2802_v23 = vpop.xlane.xlu1 %2801 }
 0x602   : > { %v2926_v32 = vadd.f32 %v5836_v53, %v2802_v23  ;;  %v3099_v2 = vpop.permute.xlu2 %3098  ;;  %v3810_v23 = vld [vmem:[%s6161_s9 + $0xb8] sm:$0xff] }
 0x603   : > { %v3257_v36 = vperm.slane %v3099_v2, %v5558_v30  ;;  %3490 = vmatpush.msra.mxu2 %v3810_v23  ;;  %v3808_v2 = vld [vmem:[%s6161_s9 + $0xa8] sm:$0xff]  ;;  %v3521_v23 = vld [vmem:[%s6163_s11 + $0x10] sm:$0xff] }
 0x604   : > { %3131 = vperm.xlu1 %3927, %v2926_v32   ;;  %v3809_v32 = vld [vmem:[%s6161_s9 + $0xb0] sm:$0xff] }
 0x605   : > { %v3259_v42 = vsel %vm3222_vm1, %v3258_v37, %v3257_v36  ;;  %3491 = vmatpush.msra.mxu2 %v3809_v32  ;;  %v3520_v32 = vld [vmem:[%s6163_s11 + $0x8] sm:$0xff] }
 0x607   : > { %3492 = vmatpush.msra.mxu2 %v3808_v2  ;;  %v3519_v2 = vld [vmem:[%s6163_s11] sm:$0xff] }
 0x609   : > { %3493 = vmatpush.msra.mxu2 %v3807_v28 }
 0x60a   : > { %v3189_v63 = vpop.permute.xlu2 %3188 }
 0x60b   : > { %v3302_v15 = vperm.slane %v3189_v63, %v5558_v30  ;;  %v3805_v63 = vld [vmem:[%s6161_s9 + $0x90] sm:$0xff] }
 0x60c   : > { %3203 = vperm.xlu1 %3927, %v2950_v35   ;;  %v3806_v35 = vld [vmem:[%s6161_s9 + $0x98] sm:$0xff] }
 0x60d   : > { %v3304_v51 = vsel %vm3222_vm1, %v3303_v7, %v3302_v15  ;;  %3494 = vmatpush.msra.mxu2 %v3806_v35  ;;  %v3804_v7 = vld [vmem:[%s6161_s9 + $0x88] sm:$0xff]  ;;  %v3803_v15 = vld [vmem:[%s6161_s9 + $0x80] sm:$0xff] }
 0x60f   : > { %3495 = vmatpush.msra.mxu2 %v3805_v63 }
 0x611   : > { %3496 = vmatpush.msra.mxu2 %v3804_v7 }
 0x612   : > { %v3198_v52 = vpop.permute.xlu2 %3197 }
 0x613   : > { %v3306_v29 = vperm.slane %v3198_v52, %v5561_v33  ;;  %3497 = vmatpush.msra.mxu2 %v3803_v15 }
 0x614   : > { %3212 = vperm.xlu1 %3927, %v2953_v9  }
 0x619   : > { %v3177_v45 = vpop.permute.xlu1 %3176 }
 0x61a   : > { %v3296_v3 = vperm.slane %v3177_v45, %v5558_v30  ;;  %v3108_v21 = vpop.permute.xlu2 %3107  ;;  %v3801_v45 = vld [vmem:[%s6161_s9 + $0x70] sm:$0xff] }
 0x61b   : > { %v3261_v56 = vperm.slane %v3108_v21, %v5561_v33 }
 0x61c   : > { %v3298_v34 = vsel %vm3222_vm1, %v3297_v24, %v3296_v3  ;;  %v3129_v24 = vpop.permute.xlu0 %3128 }
 0x61d   : > { %v3345_v5 = vsel %vm3317_vm2, %v3298_v34, %v3295_v14  ;;  %v3800_v34 = vld [vmem:[%s6161_s9 + $0x68] sm:$0xff] }
 0x621   : > { %v3186_v46 = vpop.permute.xlu1 %3185 }
 0x622   : > { %v3300_v54 = vperm.slane %v3186_v46, %v5561_v33  ;;  %v3117_v13 = vpop.permute.xlu2 %3116 }
 0x623   : > { %v3266_v25 = vperm.slane %v3117_v13, %v5558_v30 }
 0x624   : > { %v3301_v18 = vsel %vm3222_vm1, %v3300_v54, %v3299_v19  ;;  %v3272_v54 = vperm.slane %v3129_v24, %v5558_v30 }
 0x625   : > { %v3346_v40 = vsel %vm3319_vm3, %v3301_v18, %v3345_v5  ;;  %v3799_v5 = vld [vmem:[%s6161_s9 + $0x60] sm:$0xff] }
 0x626   : > { %v3347_v58 = vsel %vm3321_vm4, %v3304_v51, %v3346_v40  ;;  %v3802_v51 = vld [vmem:[%s6161_s9 + $0x78] sm:$0xff] }
 0x627   : > { %3498 = vmatpush.msra.mxu2 %v3802_v51  ;;  %v3938_v51 = vld [vmem:[%s6162_s10 + $0x1] ss:$0 sm:$0xff] }
 0x629   : > { %v3096_v53 = vpop.permute.xlu1 %3095  ;;  %3499 = vmatpush.msra.mxu2 %v3801_v45 }
 0x62a   : > { %v3255_v12 = vperm.slane %v3096_v53, %v5561_v33 }
 0x62b   : > { %3500 = vmatpush.msra.mxu2 %v3800_v34 }
 0x62c   : > { %v3256_v10 = vsel %vm3222_vm1, %v3255_v12, %v3254_v16 }
 0x62d   : > { %v3333_v41 = vsel %vm3321_vm4, %v3256_v10, %v3332_v62  ;;  %v3268_v62 = vsel %vm3222_vm1, %v3267_v57, %v3266_v25  ;;  %3501 = vmatpush.msra.mxu2 %v3799_v5  ;;  %v3528_v57 = vld [vmem:[%s6163_s11 + $0x48] sm:$0xff] }
 0x62e   : > { %v3334_v55 = vsel %vm3323_vm5, %v3259_v42, %v3333_v41  ;;  %v3530_v42 = vld [vmem:[%s6163_s11 + $0x58] sm:$0xff] }
 0x62f   : > { %v3126_v3 = vpop.permute.xlu2 %3125  ;;  %3551 = vmatpush.msra.mxu3 %v3530_v42 }
 0x630   : > { %v3270_v18 = vperm.slane %v3126_v3, %v5561_v33 }
 0x631   : > { %v3195_v8 = vpop.permute.xlu1 %3194 }
 0x632   : > { %v3305_v0 = vperm.slane %v3195_v8, %v5558_v30 }
 0x634   : > { %v3307_v26 = vsel %vm3222_vm1, %v3306_v29, %v3305_v0 }
 0x635   : > { %v5975_v17 = vsel %vm3323_vm5, %v3307_v26, %v3347_v58  ;;  %v3201_v58 = vpop.permute.xlu0 %3200 }
 0x637   : > { %v3207_v38 = vpop.permute.xlu2 %3206 }
 0x639   : > { %v3105_v61 = vpop.permute.xlu1 %3104 }
 0x63a   : > { %v3260_v4 = vperm.slane %v3105_v61, %v5558_v30 }
 0x63c   : > { %v3262_v39 = vsel %vm3222_vm1, %v3261_v56, %v3260_v4 }
 0x63d   : > { %v3335_v48 = vsel %vm3325_vm6, %v3262_v39, %v3334_v55  ;;  %v3527_v55 = vld [vmem:[%s6163_s11 + $0x40] sm:$0xff] }
 0x63f   : > { %v3216_v4 = vpop.permute.xlu2 %3215 }
 0x640   : > { %v3315_v56 = vperm.slane %v3216_v4, %v5561_v33 }
 0x641   : > { %v3114_v44 = vpop.permute.xlu1 %3113 }
 0x642   : > { %v3264_v1 = vperm.slane %v3114_v44, %v5561_v33 }
 0x644   : > { %v3265_v14 = vsel %vm3222_vm1, %v3264_v1, %v3263_v47  ;;  %v3529_v1 = vld [vmem:[%s6163_s11 + $0x50] sm:$0xff] }
 0x645   : > { %v3336_v27 = vsel %vm3327_vm7, %v3265_v14, %v3335_v48  ;;  %3552 = vmatpush.msra.mxu3 %v3529_v1  ;;  %v3526_v48 = vld [vmem:[%s6163_s11 + $0x38] sm:$0xff]  ;;  %v3525_v14 = vld [vmem:[%s6163_s11 + $0x30] sm:$0xff] }
 0x646   : > { %v3337_v22 = vsel %vm3329_vm8, %v3268_v62, %v3336_v27  ;;  %v3524_v62 = vld [vmem:[%s6163_s11 + $0x28] sm:$0xff]  ;;  %v3523_v27 = vld [vmem:[%s6163_s11 + $0x20] sm:$0xff] }
 0x647   : > { %3792 = vmatmul.msk.f32.gmra.mxu2 %vm3352_vm9, %v3337_v22  ;;  %3553 = vmatpush.msra.mxu3 %v3528_v57  ;;  %v3522_v22 = vld [vmem:[%s6163_s11 + $0x18] sm:$0xff] }
 0x649   : > { %v3123_v9 = vpop.permute.xlu1 %3122  ;;  %3554 = vmatpush.msra.mxu3 %v3527_v55 }
 0x64a   : > { %v3269_v46 = vperm.slane %v3123_v9, %v5558_v30 }
 0x64b   : > { %3555 = vmatpush.msra.mxu3 %v3526_v48 }
 0x64c   : > { %v3271_v53 = vsel %vm3222_vm1, %v3270_v18, %v3269_v46 }
 0x64d   : > { %3556 = vmatpush.msra.mxu3 %v3525_v14 }
 0x64f   : > { %3557 = vmatpush.msra.mxu3 %v3524_v62 }
 0x651   : > { %3558 = vmatpush.msra.mxu3 %v3523_v27 }
 0x653   : > { %3559 = vmatpush.msra.mxu3 %v3522_v22 }
 0x655   : > { %3560 = vmatpush.msra.mxu3 %v3521_v23 }
 0x657   : > { %3561 = vmatpush.msra.mxu3 %v3520_v32 }
 0x659   : > { %3562 = vmatpush.msra.mxu3 %v3519_v2 }
 0x665   : > { %v3440_v36 = vpop.f32.mrf.mxu3 }
 0x676   : > { %v3132_v19 = vpop.permute.xlu1 %3131 }
 0x677   : > { %v3273_v40 = vperm.slane %v3132_v19, %v5561_v33 }
 0x679   : > { %v3274_v52 = vsel %vm3222_vm1, %v3273_v40, %v3272_v54 }
 0x67a   : > { %v3338_v8 = vsel %vm3317_vm2, %v3274_v52, %v3271_v53 }
 0x67b   : > { %v3339_v29 = vsel %vm3319_vm3, %v5606_v59, %v3338_v8  ;;  %v3308_v59 = vperm.slane %v3201_v58, %v5558_v30  ;;  %v3939_v58 = vld [vmem:[%s6164_s12] ss:$0 sm:$0xff] }
 0x67c   : > { %v3340_v0 = vsel %vm3321_vm4, %v5848_v43, %v3339_v29  ;;  %v3210_v43 = vpop.permute.xlu0 %3209 }
 0x67d   : > { %v3341_v21 = vsel %vm3323_vm5, %v5828_v31, %v3340_v0  ;;  %v3311_v31 = vperm.slane %v3207_v38, %v5558_v30 }
 0x67e   : > { %v3204_v26 = vpop.permute.xlu1 %3203  ;;  %v3342_v20 = vsel %vm3325_vm6, %v5936_v6, %v3341_v21  ;;  %v6061_v6 = vld [vmem:[%s6162_s10] ss:$0 sm:$0xff] }
 0x67f   : > { %v3309_v12 = vperm.slane %v3204_v26, %v5561_v33  ;;  %v3343_v61 = vsel %vm3327_vm7, %v5944_v11, %v3342_v20  ;;  %v3312_v11 = vperm.slane %v3210_v43, %v5561_v33  ;;  %v3441_v41 = vadd.f32 %v6061_v6, %v3440_v36 }
 0x680   : > { %v3344_v16 = vsel %vm3329_vm8, %v5920_v49, %v3343_v61 }
 0x681   : > { %3793 = vmatmul.msk.f32.gmra.mxu2 %vm3352_vm9, %v3344_v16  ;;  %v3310_v10 = vsel %vm3222_vm1, %v3309_v12, %v3308_v59  ;;  %v3313_v60 = vsel %vm3222_vm1, %v3312_v11, %v3311_v31  ;;  %4326 = vtanh.f32 %v3441_v41 }
 0x682   : > { %v3349_v49 = vsel %vm3325_vm6, %v3310_v10, %v5975_v17 }
 0x683   : > { %v3350_v39 = vsel %vm3327_vm7, %v3313_v60, %v3349_v49 }
 0x686   : > { %v3213_v13 = vpop.permute.xlu1 %3212 }
 0x687   : > { %v3314_v37 = vperm.slane %v3213_v13, %v5558_v30  ;;  %v4327_v47 = vpop.eup %4326 }
 0x689   : > { %v3316_v25 = vsel %vm3222_vm1, %v3315_v56, %v3314_v37 }
 0x68a   : > { %v3351_v44 = vsel %vm3329_vm8, %v3316_v25, %v3350_v39 }
 0x68b   : > { %3794 = vmatmul.msk.f32.gmra.mxu2 %vm3352_vm9, %v3351_v44 }
 0x693   : > { %3812 = vmatmul.msk.f32.vlgmr.msra.gmra.mxu2 %vm3410_vm10, %v4327_v47 }
 0x6ca   : > { %v3381_v17 = vpop.f32.mrf.mxu2 }
 0x6cb   : > { %v3382_v33 = vadd.f32 %v5927_v50, %v3381_v17 }
 0x6cd   : > { %4328 = vtanh.f32 %v3382_v33 }
 0x6d3   : > { %v4329_v30 = vpop.eup %4328 }
 0x6d4   : > { %3796 = vmatmul.msk.f32.gmra.mxu3 %vm3410_vm10, %v4329_v30 }
 0x704   : > { %v3384_v28 = vpop.f32.mrf.mxu2 }
 0x705   : > { %v3385_v35 = vadd.f32 %v5927_v50, %v3384_v28 }
 0x707   : > { %4330 = vtanh.f32 %v3385_v35 }
 0x70d   : > { %v4331_v63 = vpop.eup %4330 }
 0x70e   : > { %v3387_v7 = vpop.f32.mrf.mxu2  ;;  %3797 = vmatmul.msk.f32.gmra.mxu3 %vm3410_vm10, %v4331_v63 }
 0x70f   : > { %v3388_v15 = vadd.f32 %v5927_v50, %v3387_v7 }
 0x711   : > { %4332 = vtanh.f32 %v3388_v15 }
 0x716   : > { %v3503_v9 = vpop.f32.mrf.mxu2 }
 0x717   : > { %v4333_v45 = vpop.eup %4332  ;;  %v3504_v24 = vadd.f32 %v3938_v51, %v3503_v9 }
 0x718   : > { %3798 = vmatmul.msk.f32.gmra.mxu3 %vm3410_vm10, %v4333_v45 }
 0x719   : > { %4334 = vtanh.f32 %v3504_v24 }
 0x71f   : > { %v4335_v3 = vpop.eup %4334 }
 0x720   : > { %3816 = vmatmul.msk.f32.vlgmr.msra.gmra.mxu3 %vm3410_vm10, %v4335_v3 }
 0x757   : > { %v3443_v34 = vpop.f32.mrf.mxu3 }
 0x758   : > { %v3444_v5 = vadd.f32 %v6061_v6, %v3443_v34 }
 0x75a   : > { %4336 = vtanh.f32 %v3444_v5 }
 0x760   : > { %v4337_v50 = vpop.eup %4336 }
 0x761   : > { %3813 = vmatmul.msk.f32.gmra.mxu2 %vm3410_vm10, %v4337_v50 }
 0x791   : > { %v3446_v46 = vpop.f32.mrf.mxu3 }
 0x792   : > { %v3447_v19 = vadd.f32 %v6061_v6, %v3446_v46 }
 0x794   : > { %4338 = vtanh.f32 %v3447_v19 }
 0x79a   : > { %v4339_v54 = vpop.eup %4338 }
 0x79b   : > { %v3449_v18 = vpop.f32.mrf.mxu3  ;;  %3814 = vmatmul.msk.f32.gmra.mxu2 %vm3410_vm10, %v4339_v54 }
 0x79c   : > { %v3450_v40 = vadd.f32 %v6061_v6, %v3449_v18 }
 0x79e   : > { %4340 = vtanh.f32 %v3450_v40 }
 0x7a3   : > { %v3564_v53 = vpop.f32.mrf.mxu3 }
 0x7a4   : > { %v4341_v52 = vpop.eup %4340  ;;  %v3565_v38 = vadd.f32 %v3939_v58, %v3564_v53 }
 0x7a5   : > { %3815 = vmatmul.msk.f32.gmra.mxu2 %vm3410_vm10, %v4341_v52 }
 0x7a6   : > { %3577 = vst.msk [vmem:[%s507_s25] sm:$0xff] %vm3576_vm11, %v3565_v38 }
 0x7e4   : > { %v3506_v8 = vpop.f32.mrf.mxu2 }
 0x7e5   : > { %v3507_v29 = vadd.f32 %v3938_v51, %v3506_v8 }
 0x7e7   : > { %4342 = vtanh.f32 %v3507_v29 }
 0x7ed   : > { %v4343_v0 = vpop.eup %4342 }
 0x7ee   : > { %3817 = vmatmul.msk.f32.gmra.mxu3 %vm3410_vm10, %v4343_v0 }
 0x81e   : > { %v3509_v21 = vpop.f32.mrf.mxu2 }
 0x81f   : > { %v3510_v26 = vadd.f32 %v3938_v51, %v3509_v21 }
 0x821   : > { %4344 = vtanh.f32 %v3510_v26 }
 0x827   : > { %v4345_v20 = vpop.eup %4344 }
 0x828   : > { %v3512_v12 = vpop.f32.mrf.mxu2  ;;  %3818 = vmatmul.msk.f32.gmra.mxu3 %vm3410_vm10, %v4345_v20 }
 0x829   : > { %v3513_v61 = vadd.f32 %v3938_v51, %v3512_v12 }
 0x82b   : > { %4346 = vtanh.f32 %v3513_v61 }
 0x831   : > { %v4347_v16 = vpop.eup %4346 }
 0x832   : > { %3819 = vmatmul.msk.f32.gmra.mxu3 %vm3410_vm10, %v4347_v16 }
 0x871   : > { %v3567_v59 = vpop.f32.mrf.mxu3 }
 0x872   : > { %v3568_v43 = vadd.f32 %v3939_v58, %v3567_v59 }
 0x874   : > { %3578 = vst.msk [vmem:[%s507_s25 + $0x8] sm:$0xff] %vm3576_vm11, %v3568_v43 }
 0x8ab   : > { %v3570_v10 = vpop.f32.mrf.mxu3 }
 0x8ac   : > { %v3571_v31 = vadd.f32 %v3939_v58, %v3570_v10 }
 0x8ae   : > { %3579 = vst.msk [vmem:[%s507_s25 + $0x10] sm:$0xff] %vm3576_vm11, %v3571_v31 }
 0x8b5   : > { %v3573_v4 = vpop.f32.mrf.mxu3 }
 0x8b6   : > { %v3574_v6 = vadd.f32 %v3939_v58, %v3573_v4 }
 0x8b8   : > { %3580 = vst.msk [vmem:[%s507_s25 + $0x18] sm:$0xff] %vm3576_vm11, %v3574_v6 }
 0x8b9 PF: > { %p22_p9 = scmp.ge.s32.totalorder %s4481_s30, 4   ;;  %s6184_s27 = smov %s4384_s28 }
 0x8ba   : > { %s6185_s28 = smov %s4490_s16  ;;  %s6186_s29 = smov %s4481_s30 }
 0x8bb   :  { %24 = sbr.rel (!%p22_p9) target bundleno = 5 (0x5), region = 150 }

</bundles_post_ra>
